<compile_context>
chip_gen: v5e
topology: v5e:2x2
jax: 0.10.0
libtpu: 0.0.40
codegen_flags: <defaults>
</compile_context>

<pallas_src>
import functools

import jax
import jax.numpy as jnp
from jax.experimental import pallas as pl
from jax.experimental.pallas import tpu as pltpu

CLIP_DIM = 768   # ViT-L-14 token_embedding width
PROJ_DIM = 1024  # ln_proj output width (fixed by the module)

_MEAN = (0.48145466, 0.4578275, 0.40821073)
_STD = (0.26862954, 0.26130258, 0.27577711)

_MAX_TILE = 6144  # spatial-tile width target (columns of the flattened NHWC row)


def _encode_kernel(img_ref, onehot_ref, w_embed_ref, w_proj_ref, b_proj_ref,
                   out_ref, acc_ref, *, spatial, apply_proj):
    """grid = (batch_blocks, num_spatial_tiles); img_ref is (Bb, TILE)."""
    s = pl.program_id(1)

    @pl.when(s == 0)
    def _():
        acc_ref[...] = jnp.zeros_like(acc_ref)

    # Hot loop: raw per-channel pixel sums via one MXU matmul per tile.
    # onehot[r, c] = 1.0 iff (r % 3) == c (c < 3), so acc[:, c] accumulates the
    # spatial sum of channel c. No per-pixel VALU work at all.
    acc_ref[...] += jnp.dot(img_ref[...], onehot_ref[...],
                            preferred_element_type=jnp.float32)

    @pl.when(s == pl.num_programs(1) - 1)
    def _():
        # pooled_c = (sum_c / (255*S) - mean_c) / std_c   (exact: mean is linear)
        # feats    = pooled @ w_embed, done as 3 broadcast FMAs (K=3 is a bad MXU shape)
        feats = None
        for c in range(3):
            scale = 1.0 / (255.0 * spatial * _STD[c])
            shift = _MEAN[c] / _STD[c]
            p_c = acc_ref[:, c:c + 1] * scale - shift          # (Bb, 1)
            term = p_c * w_embed_ref[c:c + 1, :]               # (Bb, CLIP_DIM)
            feats = term if feats is None else feats + term

        # img_features /= img_features.norm(dim=-1, keepdim=True)
        # (no epsilon, for parity with the PyTorch module)
        inv_norm = jax.lax.rsqrt(jnp.sum(feats * feats, axis=-1, keepdims=True))
        feats = feats * inv_norm

        if apply_proj:
            # ln_proj: x @ W^T + b (W passed pre-transposed as (in, out))
            out = jnp.dot(feats, w_proj_ref[...],
                          preferred_element_type=jnp.float32) + b_proj_ref[...]
        else:
            out = feats
        out_ref[...] = out.astype(out_ref.dtype)


def _pick_tile(total_cols: int) -> int:
    """Largest TILE <= _MAX_TILE with TILE % 384 == 0 and TILE | total_cols."""
    if total_cols % 384 != 0:
        # Fallback: single monolithic tile (block dims equal to full array dims
        # are always legal). Only hit when H*W is not a multiple of 128.
        return total_cols
    units = total_cols // 384
    best = 1
    for k in range(1, min(units, _MAX_TILE // 384) + 1):
        if units % k == 0:
            best = k
    return 384 * best


@functools.partial(jax.jit, static_argnames=("projection",))
def encode_image(image_nhwc, params, projection=True):
    """image_nhwc: (B, H, W, 3) float32 with pixel values in [0, 255]."""
    B, H, W, C = image_nhwc.shape
    assert C == 3
    S = H * W
    total = 3 * S                              # flattened NHWC row length
    img = image_nhwc.reshape(B, total)         # contiguous flatten: no data movement

    tile = _pick_tile(total)
    num_tiles = total // tile
    Bb = 8 if B % 8 == 0 else B                # batch block (8|B -> shardable axis)
    b_blocks = B // Bb

    # Channel-selector matrix: column j%3 of a flattened NHWC row is channel j%3.
    onehot = (jnp.arange(tile, dtype=jnp.int32)[:, None] % 3
              == jnp.arange(128, dtype=jnp.int32)[None, :]).astype(jnp.float32)

    w_embed = params["w_embed"]
    w_proj = params["w_proj"]
    b_proj = params["b_proj"]
    out_dim = PROJ_DIM if projection else CLIP_DIM

    kernel = functools.partial(_encode_kernel, spatial=S, apply_proj=projection)

    cost = pl.CostEstimate(
        flops=int(2 * B * total * 128 + 2 * B * CLIP_DIM * PROJ_DIM),
        transcendentals=int(B),
        bytes_accessed=int(4 * (img.size + onehot.size + w_embed.size
                                + w_proj.size + b_proj.size + B * out_dim)),
    )

    return pl.pallas_call(
        kernel,
        out_shape=jax.ShapeDtypeStruct((B, out_dim), jnp.float32),
        grid=(b_blocks, num_tiles),
        in_specs=[
            pl.BlockSpec((Bb, tile), lambda b, s: (b, s)),          # image tiles (pipelined)
            pl.BlockSpec((tile, 128), lambda b, s: (0, 0)),         # channel selector (resident)
            pl.BlockSpec((3, CLIP_DIM), lambda b, s: (0, 0)),       # synthetic embed (resident)
            pl.BlockSpec((CLIP_DIM, PROJ_DIM), lambda b, s: (0, 0)),  # ln_proj W (resident)
            pl.BlockSpec((1, PROJ_DIM), lambda b, s: (0, 0)),       # ln_proj b (resident)
        ],
        out_specs=pl.BlockSpec((Bb, out_dim), lambda b, s: (b, 0)),
        scratch_shapes=[pltpu.VMEM((Bb, 128), jnp.float32)],        # per-channel sum accumulator
        compiler_params=pltpu.CompilerParams(
            dimension_semantics=("parallel", "arbitrary")),
        cost_estimate=cost,
    )(img, onehot, w_embed, w_proj, b_proj)


def forward(image, text_like, params, projection=True):
    # Mirrors ClipEncoder.forward: it routes BOTH arguments through encode_image
    # (the original even passes `text` into encode_image), so the second input
    # here is an image-like tensor as well.
    image_features = encode_image(image, params, projection)
    text_features = encode_image(text_like, params, projection)
    return image_features, text_features


def init_params(key):
    k_we, k_wp, k_bp = jax.random.split(key, 3)
    return {
        # synthetic stand-in embedding for the frozen CLIP backbone
        "w_embed": 0.02 * jax.random.normal(k_we, (3, CLIP_DIM), jnp.float32),
        # ln_proj weight, stored pre-transposed as (in, out) for x @ W
        "w_proj": 0.02 * jax.random.normal(k_wp, (CLIP_DIM, PROJ_DIM), jnp.float32),
        "b_proj": 0.02 * jax.random.normal(k_bp, (1, PROJ_DIM), jnp.float32),
    }


def _reference(image_nhwc, params, projection=True):
    x = image_nhwc.astype(jnp.float32) / 255.0
    mean = jnp.array(_MEAN, jnp.float32)
    std = jnp.array(_STD, jnp.float32)
    pooled = (jnp.mean(x, axis=(1, 2)) - mean) / std            # (B, 3)
    feats = pooled @ params["w_embed"]
    feats = feats / jnp.linalg.norm(feats, axis=-1, keepdims=True)
    if projection:
        feats = feats @ params["w_proj"] + params["b_proj"]
    return feats


if __name__ == "__main__":
    key = jax.random.PRNGKey(0)
    k_params, k_img, k_txt = jax.random.split(key, 3)

    params = init_params(k_params)

    B, H, W, C = 2, 16, 16, 3
    image = jax.random.uniform(k_img, (B, H, W, C), jnp.float32, 0.0, 255.0)
    text_image = jax.random.uniform(k_txt, (B, H, W, C), jnp.float32, 0.0, 255.0)

    img_feat, txt_feat = forward(image, text_image, params, projection=True)
    jax.block_until_ready((img_feat, txt_feat))

    assert img_feat.shape == (B, PROJ_DIM) and img_feat.dtype == jnp.float32
    assert txt_feat.shape == (B, PROJ_DIM) and txt_feat.dtype == jnp.float32
    assert bool(jnp.all(jnp.isfinite(img_feat))) and bool(jnp.all(jnp.isfinite(txt_feat)))

    ref_img = _reference(image, params, projection=True)
    ref_txt = _reference(text_image, params, projection=True)
    assert bool(jnp.allclose(img_feat, ref_img, rtol=2e-3, atol=2e-3))
    assert bool(jnp.allclose(txt_feat, ref_txt, rtol=2e-3, atol=2e-3))

    print("KERNEL_OK")
</pallas_src>

<mosaic_0001>
module attributes {stable_mosaic.version = 11 : i64} {
  func.func @_encode_kernel(%arg0: i32, %arg1: i32, %arg2: memref<2x768xf32, #tpu.memory_space<vmem>>, %arg3: memref<768x128xf32, #tpu.memory_space<vmem>>, %arg4: memref<3x768xf32, #tpu.memory_space<vmem>>, %arg5: memref<768x1024xf32, #tpu.memory_space<vmem>>, %arg6: memref<1x1024xf32, #tpu.memory_space<vmem>>, %arg7: memref<2x1024xf32, #tpu.memory_space<vmem>>, %arg8: memref<2x128xf32, #tpu.memory_space<vmem>>) attributes {dimension_semantics = [#tpu.dimension_semantics<parallel>, #tpu.dimension_semantics<arbitrary>], iteration_bounds = array<i64: 1, 1>, scalar_prefetch = 0 : i64, scratch_operands = 1 : i64, tpu.core_type = #tpu.core_type<tc>, window_params = [{transform_indices = @transform_0, window_bounds = array<i64: 2, 768>}, {pipeline_mode = #tpu.pipeline_mode<synchronous>, transform_indices = @transform_1, window_bounds = array<i64: 768, 128>}, {pipeline_mode = #tpu.pipeline_mode<synchronous>, transform_indices = @transform_2, window_bounds = array<i64: 3, 768>}, {pipeline_mode = #tpu.pipeline_mode<synchronous>, transform_indices = @transform_3, window_bounds = array<i64: 768, 1024>}, {pipeline_mode = #tpu.pipeline_mode<synchronous>, transform_indices = @transform_4, window_bounds = array<i64: 1, 1024>}, {transform_indices = @transform_5, window_bounds = array<i64: 2, 1024>}]} {
    %c0_i32 = arith.constant 0 : i32
    %0 = arith.cmpi eq, %arg1, %c0_i32 : i32
    %1 = arith.extui %0 : i1 to i32
    %c0_i32_0 = arith.constant 0 : i32
    %2 = arith.cmpi ne, %1, %c0_i32_0 : i32
    scf.if %2 {
      %cst_10 = arith.constant 0.000000e+00 : f32
      %12 = vector.broadcast %cst_10 : f32 to vector<2x128xf32>
      %c0_11 = arith.constant 0 : index
      %c0_12 = arith.constant 0 : index
      %13 = vector.load %arg8[%c0_11, %c0_12] : memref<2x128xf32, #tpu.memory_space<vmem>>, vector<2x128xf32>
      tpu.vector_store %arg8[%c0_11, %c0_12], %12 {strides = array<i32>} : memref<2x128xf32, #tpu.memory_space<vmem>>, vector<2x128xf32>,
    } else {
    }
    %c0 = arith.constant 0 : index
    %c0_1 = arith.constant 0 : index
    %3 = vector.load %arg8[%c0, %c0_1] : memref<2x128xf32, #tpu.memory_space<vmem>>, vector<2x128xf32>
    %c0_2 = arith.constant 0 : index
    %c0_3 = arith.constant 0 : index
    %4 = vector.load %arg2[%c0_2, %c0_3] : memref<2x768xf32, #tpu.memory_space<vmem>>, vector<2x768xf32>
    %c0_4 = arith.constant 0 : index
    %c0_5 = arith.constant 0 : index
    %5 = vector.load %arg3[%c0_4, %c0_5] : memref<768x128xf32, #tpu.memory_space<vmem>>, vector<768x128xf32>
    %cst = arith.constant dense<0.000000e+00> : vector<2x128xf32>
    %6 = tpu.matmul %4, %5, %cst {dimension_numbers = #tpu.dot_dimension_numbers<[1], [0], [0], [1], [0, 0, 1, 1], [], []>} : vector<2x768xf32>, vector<768x128xf32>, vector<2x128xf32> -> vector<2x128xf32>
    %7 = arith.addf %3, %6 : vector<2x128xf32>
    %c0_6 = arith.constant 0 : index
    %c0_7 = arith.constant 0 : index
    %8 = vector.load %arg8[%c0_6, %c0_7] : memref<2x128xf32, #tpu.memory_space<vmem>>, vector<2x128xf32>
    tpu.vector_store %arg8[%c0_6, %c0_7], %7 {strides = array<i32>} : memref<2x128xf32, #tpu.memory_space<vmem>>, vector<2x128xf32>,
    %c0_i32_8 = arith.constant 0 : i32
    %9 = arith.cmpi eq, %arg1, %c0_i32_8 : i32
    %10 = arith.extui %9 : i1 to i32
    %c0_i32_9 = arith.constant 0 : i32
    %11 = arith.cmpi ne, %10, %c0_i32_9 : i32
    scf.if %11 {
      %c0_10 = arith.constant 0 : index
      %c0_11 = arith.constant 0 : index
      %12 = vector.load %arg8[%c0_10, %c0_11] : memref<2x128xf32, #tpu.memory_space<vmem>>, vector<2x1xf32>
      %cst_12 = arith.constant 5.70251032E-5 : f32
      %13 = vector.broadcast %cst_12 : f32 to vector<2x1xf32>
      %14 = arith.mulf %12, %13 : vector<2x1xf32>
      %cst_13 = arith.constant 1.79226255 : f32
      %15 = vector.broadcast %cst_13 : f32 to vector<2x1xf32>
      %16 = arith.subf %14, %15 : vector<2x1xf32>
      %c0_14 = arith.constant 0 : index
      %c0_15 = arith.constant 0 : index
      %17 = vector.load %arg4[%c0_14, %c0_15] : memref<3x768xf32, #tpu.memory_space<vmem>>, vector<1x768xf32>
      %18 = vector.broadcast %16 : vector<2x1xf32> to vector<2x768xf32>
      %19 = vector.broadcast %17 : vector<1x768xf32> to vector<2x768xf32>
      %20 = arith.mulf %18, %19 : vector<2x768xf32>
      %c0_16 = arith.constant 0 : index
      %c1 = arith.constant 1 : index
      %21 = vector.load %arg8[%c0_16, %c1] : memref<2x128xf32, #tpu.memory_space<vmem>>, vector<2x1xf32>
      %cst_17 = arith.constant 5.86240967E-5 : f32
      %22 = vector.broadcast %cst_17 : f32 to vector<2x1xf32>
      %23 = arith.mulf %21, %22 : vector<2x1xf32>
      %cst_18 = arith.constant 1.75209713 : f32
      %24 = vector.broadcast %cst_18 : f32 to vector<2x1xf32>
      %25 = arith.subf %23, %24 : vector<2x1xf32>
      %c1_19 = arith.constant 1 : index
      %c0_20 = arith.constant 0 : index
      %26 = vector.load %arg4[%c1_19, %c0_20] : memref<3x768xf32, #tpu.memory_space<vmem>>, vector<1x768xf32>
      %27 = vector.broadcast %25 : vector<2x1xf32> to vector<2x768xf32>
      %28 = vector.broadcast %26 : vector<1x768xf32> to vector<2x768xf32>
      %29 = arith.mulf %27, %28 : vector<2x768xf32>
      %30 = arith.addf %20, %29 : vector<2x768xf32>
      %c0_21 = arith.constant 0 : index
      %c2 = arith.constant 2 : index
      %31 = vector.load %arg8[%c0_21, %c2] : memref<2x128xf32, #tpu.memory_space<vmem>>, vector<2x1xf32>
      %cst_22 = arith.constant 5.55471306E-5 : f32
      %32 = vector.broadcast %cst_22 : f32 to vector<2x1xf32>
      %33 = arith.mulf %31, %32 : vector<2x1xf32>
      %cst_23 = arith.constant 1.48021972 : f32
      %34 = vector.broadcast %cst_23 : f32 to vector<2x1xf32>
      %35 = arith.subf %33, %34 : vector<2x1xf32>
      %c2_24 = arith.constant 2 : index
      %c0_25 = arith.constant 0 : index
      %36 = vector.load %arg4[%c2_24, %c0_25] : memref<3x768xf32, #tpu.memory_space<vmem>>, vector<1x768xf32>
      %37 = vector.broadcast %35 : vector<2x1xf32> to vector<2x768xf32>
      %38 = vector.broadcast %36 : vector<1x768xf32> to vector<2x768xf32>
      %39 = arith.mulf %37, %38 : vector<2x768xf32>
      %40 = arith.addf %30, %39 : vector<2x768xf32>
      %41 = arith.mulf %40, %40 : vector<2x768xf32>
      %cst_26 = arith.constant dense<0.000000e+00> : vector<2xf32>
      %42 = vector.multi_reduction <add>, %41, %cst_26 [1] : vector<2x768xf32> to vector<2xf32>
      %43 = vector.shape_cast %42 : vector<2xf32> to vector<2x1xf32>
      %44 = math.rsqrt %43 : vector<2x1xf32>
      %45 = vector.broadcast %44 : vector<2x1xf32> to vector<2x768xf32>
      %46 = arith.mulf %40, %45 : vector<2x768xf32>
      %c0_27 = arith.constant 0 : index
      %c0_28 = arith.constant 0 : index
      %47 = vector.load %arg5[%c0_27, %c0_28] : memref<768x1024xf32, #tpu.memory_space<vmem>>, vector<768x1024xf32>
      %cst_29 = arith.constant dense<0.000000e+00> : vector<2x1024xf32>
      %48 = tpu.matmul %46, %47, %cst_29 {dimension_numbers = #tpu.dot_dimension_numbers<[1], [0], [0], [1], [0, 0, 1, 1], [], []>} : vector<2x768xf32>, vector<768x1024xf32>, vector<2x1024xf32> -> vector<2x1024xf32>
      %c0_30 = arith.constant 0 : index
      %c0_31 = arith.constant 0 : index
      %49 = vector.load %arg6[%c0_30, %c0_31] : memref<1x1024xf32, #tpu.memory_space<vmem>>, vector<1x1024xf32>
      %50 = vector.broadcast %49 : vector<1x1024xf32> to vector<2x1024xf32>
      %51 = arith.addf %48, %50 : vector<2x1024xf32>
      %c0_32 = arith.constant 0 : index
      %c0_33 = arith.constant 0 : index
      %52 = vector.load %arg7[%c0_32, %c0_33] : memref<2x1024xf32, #tpu.memory_space<vmem>>, vector<2x1024xf32>
      tpu.vector_store %arg7[%c0_32, %c0_33], %51 {strides = array<i32>} : memref<2x1024xf32, #tpu.memory_space<vmem>>, vector<2x1024xf32>,
    } else {
    }
    return
  }
  func.func @transform_0(%arg0: i32, %arg1: i32) -> (i32, i32) {
    %c0_i32 = arith.constant 0 : i32
    return %arg0, %arg1 : i32, i32
  }
  func.func @transform_1(%arg0: i32, %arg1: i32) -> (i32, i32) {
    %c0_i32 = arith.constant 0 : i32
    %c0_i32_0 = arith.constant 0 : i32
    %c0_i32_1 = arith.constant 0 : i32
    return %c0_i32, %c0_i32_0 : i32, i32
  }
  func.func @transform_2(%arg0: i32, %arg1: i32) -> (i32, i32) {
    %c0_i32 = arith.constant 0 : i32
    %c0_i32_0 = arith.constant 0 : i32
    %c0_i32_1 = arith.constant 0 : i32
    return %c0_i32, %c0_i32_0 : i32, i32
  }
  func.func @transform_3(%arg0: i32, %arg1: i32) -> (i32, i32) {
    %c0_i32 = arith.constant 0 : i32
    %c0_i32_0 = arith.constant 0 : i32
    %c0_i32_1 = arith.constant 0 : i32
    return %c0_i32, %c0_i32_0 : i32, i32
  }
  func.func @transform_4(%arg0: i32, %arg1: i32) -> (i32, i32) {
    %c0_i32 = arith.constant 0 : i32
    %c0_i32_0 = arith.constant 0 : i32
    %c0_i32_1 = arith.constant 0 : i32
    return %c0_i32, %c0_i32_0 : i32, i32
  }
  func.func @transform_5(%arg0: i32, %arg1: i32) -> (i32, i32) {
    %c0_i32 = arith.constant 0 : i32
    %c0_i32_0 = arith.constant 0 : i32
    return %arg0, %c0_i32 : i32, i32
  }
}

</mosaic_0001>

<bundles_post_ra>
// kernel: encode_image.1
= control target key start
LH: loop header
LB: loop body
LE: loop exit
PB: predicated region body
PF: predicated region fallthrough
CT: control target
= control target key end

     0   :  { %10 = vsyncpa [#allocation4], 0  ;;  %s2887_s0 = inlined_call_operand.vmem [shape: f32[2,768], index: 0, kind: input, shape index: {}]   ;;  %s2888_s1 = inlined_call_operand.vmem [shape: f32[768,128], index: 1, kind: input, shape index: {}]   ;;  %s2889_s2 = inlined_call_operand.hbm [shape: f32[3,768], index: 2, kind: input, shape index: {}]   ;;  %s2890_s3 = inlined_call_operand.hbm [shape: f32[768,1024], index: 3, kind: input, shape index: {}]   ;;  %s2891_s4 = inlined_call_operand.hbm [shape: f32[1,1024], index: 4, kind: input, shape index: {}]   ;;  %s2892_s5 = inlined_call_operand.hbm [shape: f32[2,1024], index: 5, kind: output, shape index: {}]  }
   0x1   :  { %11 = vsyncpa [#allocation7], 0  ;;  %s32_s20 = sshll.u32 %s2890_s3, 4  ;;  %s33_s20 = int_to_ptr.hbm [resolvable:$true] %s32_s20 }
   0x2   :  { %12 = vsyncpa [#allocation5], 0  ;;  %s2353_s21 = smov [#allocation6]   ;;  %s22_s25 = sshll.u32 %s2889_s2, 4  ;;  %s23_s25 = int_to_ptr.hbm [resolvable:$true] %s22_s25 }
   0x3   :  { %s34_s22 = sshll.u32 %s2353_s21, 4  ;;  %s2354_s26 = smov 1024   ;;  %s35_s22 = int_to_ptr.vmem [resolvable:$true] %s34_s22 }
   0x4   :  { %s2355_s27 = smov 64   ;;  %s2356_s28 = smov [#allocation3]  }
   0x5   :  { %40 = dma.hbm_to_vmem [thread:$0]  %s33_s20, 98304, %s35_s22, [#allocation7], %s2354_s26, %s2354_s26, %s2355_s27  }
   0x6   :  { %s24_s29 = sshll.u32 %s2356_s28, 4  ;;  %s46_s7 = sshll.u32 %s2891_s4, 4  ;;  %s25_s29 = int_to_ptr.vmem [resolvable:$true] %s24_s29  ;;  %s47_s7 = int_to_ptr.hbm [resolvable:$true] %s46_s7 }
   0x7   :  { %27 = dma.hbm_to_vmem [thread:$0]  %s23_s25, 384, %s25_s29, [#allocation4]  }
   0x8   :  { %s2357_s3 = smov [#allocation8]  }
   0x9   :  { %s48_s8 = sshll.u32 %s2357_s3, 4  ;;  %s49_s8 = int_to_ptr.vmem [resolvable:$true] %s48_s8 }
   0xa   :  { %51 = dma.hbm_to_vmem [thread:$0]  %s47_s7, 128, %s49_s8, [#allocation7]  }
   0xb   :  { %2347 = dma.done.wait [#allocation4], 384  }
   0xc   :  { %2348 = vsyncadd [#allocation4], 4294966912 }
   0xd   :  { %2349 = dma.done.wait [#allocation7], 98432  }
   0xe   :  { %2350 = vsyncadd [#allocation7], 4294868864  ;;  %v87_v0 = vld [vmem:[%s2888_s1 + $0x78] sm:$0xff]  ;;  %v86_v1 = vld [vmem:[%s2888_s1 + $0x70] sm:$0xff]  ;;  %vm412_vm0 = vcmask 1041408   ;;  %vm2203_vm4 = vcmask 1045508  }
   0xf   :  { %v103_v2 = vld [vmem:[%s2888_s1 + $0xf8] sm:$0xff]  ;;  %185 = vmatpush.msra.mxu0 %v87_v0  ;;  %v102_v3 = vld [vmem:[%s2888_s1 + $0xf0] sm:$0xff]  ;;  %v85_v4 = vld [vmem:[%s2888_s1 + $0x68] sm:$0xff]  ;;  %vm2205_vm5 = vcmask 1043456   ;;  %s2221_s2 = sshll.u32 %s2892_s5, 4  ;;  %s2222_s2 = int_to_ptr.hbm [resolvable:$true] %s2221_s2 }
  0x10   :  { %205 = vmatpush.msra.mxu1 %v103_v2  ;;  %v101_v5 = vld [vmem:[%s2888_s1 + $0xe8] sm:$0xff]  ;;  %v84_v6 = vld [vmem:[%s2888_s1 + $0x60] sm:$0xff]  ;;  %v83_v8 = vld [vmem:[%s2888_s1 + $0x58] sm:$0xff] }
  0x11   :  { %186 = vmatpush.msra.mxu0 %v86_v1  ;;  %v100_v7 = vld [vmem:[%s2888_s1 + $0xe0] sm:$0xff]  ;;  %v99_v9 = vld [vmem:[%s2888_s1 + $0xd8] sm:$0xff]  ;;  %v118_v11 = vld [vmem:[%s2888_s1 + $0x170] sm:$0xff] }
  0x12   :  { %206 = vmatpush.msra.mxu1 %v102_v3  ;;  %v119_v10 = vld [vmem:[%s2888_s1 + $0x178] sm:$0xff]  ;;  %v82_v13 = vld [vmem:[%s2888_s1 + $0x50] sm:$0xff]  ;;  %v117_v15 = vld [vmem:[%s2888_s1 + $0x168] sm:$0xff] }
  0x13   :  { %187 = vmatpush.msra.mxu0 %v85_v4  ;;  %v135_v12 = vld [vmem:[%s2888_s1 + $0x1f8] sm:$0xff]  ;;  %v98_v14 = vld [vmem:[%s2888_s1 + $0xd0] sm:$0xff]  ;;  %225 = vmatpush.msra.mxu2 %v119_v10  ;;  %v81_v17 = vld [vmem:[%s2888_s1 + $0x48] sm:$0xff] }
  0x14   :  { %207 = vmatpush.msra.mxu1 %v101_v5  ;;  %245 = vmatpush.msra.mxu3 %v135_v12  ;;  %v134_v16 = vld [vmem:[%s2888_s1 + $0x1f0] sm:$0xff]  ;;  %v97_v18 = vld [vmem:[%s2888_s1 + $0xc8] sm:$0xff]  ;;  %v116_v20 = vld [vmem:[%s2888_s1 + $0x160] sm:$0xff] }
  0x15   :  { %188 = vmatpush.msra.mxu0 %v84_v6  ;;  %226 = vmatpush.msra.mxu2 %v118_v11  ;;  %v133_v19 = vld [vmem:[%s2888_s1 + $0x1e8] sm:$0xff]  ;;  %v132_v21 = vld [vmem:[%s2888_s1 + $0x1e0] sm:$0xff]  ;;  %v115_v24 = vld [vmem:[%s2888_s1 + $0x158] sm:$0xff] }
  0x16   :  { %208 = vmatpush.msra.mxu1 %v100_v7  ;;  %246 = vmatpush.msra.mxu3 %v134_v16  ;;  %v80_v22 = vld [vmem:[%s2888_s1 + $0x40] sm:$0xff]  ;;  %v131_v25 = vld [vmem:[%s2888_s1 + $0x1d8] sm:$0xff]  ;;  %v114_v28 = vld [vmem:[%s2888_s1 + $0x150] sm:$0xff] }
  0x17   :  { %189 = vmatpush.msra.mxu0 %v83_v8  ;;  %v96_v23 = vld [vmem:[%s2888_s1 + $0xc0] sm:$0xff]  ;;  %227 = vmatpush.msra.mxu2 %v117_v15  ;;  %v79_v26 = vld [vmem:[%s2888_s1 + $0x38] sm:$0xff]  ;;  %v130_v29 = vld [vmem:[%s2888_s1 + $0x1d0] sm:$0xff] }
  0x18   :  { %209 = vmatpush.msra.mxu1 %v99_v9  ;;  %247 = vmatpush.msra.mxu3 %v133_v19  ;;  %v95_v27 = vld [vmem:[%s2888_s1 + $0xb8] sm:$0xff]  ;;  %v78_v30 = vld [vmem:[%s2888_s1 + $0x30] sm:$0xff]  ;;  %v113_v32 = vld [vmem:[%s2888_s1 + $0x148] sm:$0xff] }
  0x19   :  { %190 = vmatpush.msra.mxu0 %v82_v13  ;;  %228 = vmatpush.msra.mxu2 %v116_v20  ;;  %v94_v31 = vld [vmem:[%s2888_s1 + $0xb0] sm:$0xff]  ;;  %v129_v33 = vld [vmem:[%s2888_s1 + $0x1c8] sm:$0xff]  ;;  %v112_v36 = vld [vmem:[%s2888_s1 + $0x140] sm:$0xff] }
  0x1a   :  { %210 = vmatpush.msra.mxu1 %v98_v14  ;;  %248 = vmatpush.msra.mxu3 %v132_v21  ;;  %v77_v34 = vld [vmem:[%s2888_s1 + $0x28] sm:$0xff]  ;;  %v128_v37 = vld [vmem:[%s2888_s1 + $0x1c0] sm:$0xff]  ;;  %v111_v40 = vld [vmem:[%s2888_s1 + $0x138] sm:$0xff] }
  0x1b   :  { %191 = vmatpush.msra.mxu0 %v81_v17  ;;  %229 = vmatpush.msra.mxu2 %v115_v24  ;;  %v93_v35 = vld [vmem:[%s2888_s1 + $0xa8] sm:$0xff]  ;;  %v76_v38 = vld [vmem:[%s2888_s1 + $0x20] sm:$0xff]  ;;  %v127_v41 = vld [vmem:[%s2888_s1 + $0x1b8] sm:$0xff] }
  0x1c   :  { %211 = vmatpush.msra.mxu1 %v97_v18  ;;  %249 = vmatpush.msra.mxu3 %v131_v25  ;;  %v92_v39 = vld [vmem:[%s2888_s1 + $0xa0] sm:$0xff]  ;;  %v75_v42 = vld [vmem:[%s2888_s1 + $0x18] sm:$0xff]  ;;  %v110_v44 = vld [vmem:[%s2888_s1 + $0x130] sm:$0xff] }
  0x1d   :  { %192 = vmatpush.msra.mxu0 %v80_v22  ;;  %230 = vmatpush.msra.mxu2 %v114_v28  ;;  %v91_v43 = vld [vmem:[%s2888_s1 + $0x98] sm:$0xff]  ;;  %v126_v45 = vld [vmem:[%s2888_s1 + $0x1b0] sm:$0xff]  ;;  %v109_v48 = vld [vmem:[%s2888_s1 + $0x128] sm:$0xff] }
  0x1e   :  { %212 = vmatpush.msra.mxu1 %v96_v23  ;;  %250 = vmatpush.msra.mxu3 %v130_v29  ;;  %v74_v46 = vld [vmem:[%s2888_s1 + $0x10] sm:$0xff]  ;;  %v125_v49 = vld [vmem:[%s2888_s1 + $0x1a8] sm:$0xff]  ;;  %v108_v52 = vld [vmem:[%s2888_s1 + $0x120] sm:$0xff] }
  0x1f   :  { %193 = vmatpush.msra.mxu0 %v79_v26  ;;  %231 = vmatpush.msra.mxu2 %v113_v32  ;;  %v90_v47 = vld [vmem:[%s2888_s1 + $0x90] sm:$0xff]  ;;  %v73_v50 = vld [vmem:[%s2888_s1 + $0x8] sm:$0xff]  ;;  %v124_v53 = vld [vmem:[%s2888_s1 + $0x1a0] sm:$0xff] }
  0x20   :  { %213 = vmatpush.msra.mxu1 %v95_v27  ;;  %251 = vmatpush.msra.mxu3 %v129_v33  ;;  %v89_v51 = vld [vmem:[%s2888_s1 + $0x88] sm:$0xff]  ;;  %v70_v54 = vld [vmem:[%s2887_s0] sm:$0xff]  ;;  %v151_v57 = vld [vmem:[%s2888_s1 + $0x278] sm:$0xff] }
  0x21   :  { %194 = vmatpush.msra.mxu0 %v78_v30  ;;  %232 = vmatpush.msra.mxu2 %v112_v36  ;;  %v72_v55 = vld [vmem:[%s2888_s1] sm:$0xff]  ;;  %170 = vst [vmem:[#allocation1] ss:$4 sm:$0xff] %v70_v54  ;;  %v167_v58 = vld [vmem:[%s2888_s1 + $0x2f8] sm:$0xff]  ;;  %v150_v61 = vld [vmem:[%s2888_s1 + $0x270] sm:$0xff] }
  0x22   :  { %214 = vmatpush.msra.mxu1 %v94_v31  ;;  %252 = vmatpush.msra.mxu3 %v128_v37  ;;  %v88_v56 = vld [vmem:[%s2888_s1 + $0x80] sm:$0xff]  ;;  %v107_v59 = vld [vmem:[%s2888_s1 + $0x118] sm:$0xff]  ;;  %v166_v62 = vld [vmem:[%s2888_s1 + $0x2f0] sm:$0xff] }
  0x23   :  { %195 = vmatpush.msra.mxu0 %v77_v34  ;;  %233 = vmatpush.msra.mxu2 %v111_v40  ;;  %v123_v60 = vld [vmem:[%s2888_s1 + $0x198] sm:$0xff]  ;;  %v106_v63 = vld [vmem:[%s2888_s1 + $0x110] sm:$0xff]  ;;  %v71_v1 = vld [vmem:[%s2887_s0 + $0x8] sm:$0xf]  ;;  %v2358_v40 = vmov 0.0  }
  0x24   :  { %215 = vmatpush.msra.mxu1 %v93_v35  ;;  %253 = vmatpush.msra.mxu3 %v127_v41  ;;  %v122_v0 = vld [vmem:[%s2888_s1 + $0x190] sm:$0xff]  ;;  %v149_v2 = vld [vmem:[%s2888_s1 + $0x268] sm:$0xff]  ;;  %172 = vst [vmem:[#allocation1 + $0x20] ss:$4 sm:$0xff] %v71_v1  ;;  %v148_v6 = vld [vmem:[%s2888_s1 + $0x260] sm:$0xff]  ;;  %v2359_v41 = vmov 2  }
  0x25   :  { %196 = vmatpush.msra.mxu0 %v76_v38  ;;  %234 = vmatpush.msra.mxu2 %v110_v44  ;;  %v165_v3 = vld [vmem:[%s2888_s1 + $0x2e8] sm:$0xff]  ;;  %v164_v7 = vld [vmem:[%s2888_s1 + $0x2e0] sm:$0xff]  ;;  %v147_v10 = vld [vmem:[%s2888_s1 + $0x258] sm:$0xff]  ;;  %68 = vst [vmem:[#allocation2] sm:$0x3] %v2358_v40 }
  0x26   :  { %216 = vmatpush.msra.mxu1 %v92_v39  ;;  %254 = vmatpush.msra.mxu3 %v126_v45  ;;  %v105_v4 = vld [vmem:[%s2888_s1 + $0x108] sm:$0xff]  ;;  %v104_v8 = vld [vmem:[%s2888_s1 + $0x100] sm:$0xff]  ;;  %v163_v11 = vld [vmem:[%s2888_s1 + $0x2d8] sm:$0xff] }
  0x27   :  { %197 = vmatpush.msra.mxu0 %v75_v42  ;;  %235 = vmatpush.msra.mxu2 %v109_v48  ;;  %v121_v5 = vld [vmem:[%s2888_s1 + $0x188] sm:$0xff]  ;;  %v120_v9 = vld [vmem:[%s2888_s1 + $0x180] sm:$0xff]  ;;  %v146_v14 = vld [vmem:[%s2888_s1 + $0x250] sm:$0xff]  ;;  %v2360_v42 = vmov 0  }
  0x28   :  { %217 = vmatpush.msra.mxu1 %v91_v43  ;;  %255 = vmatpush.msra.mxu3 %v125_v49  ;;  %v175_v12 = vld.sshfl [vmem:[#allocation1 + $0x10] sm:$0xff pattern:$0x73625140]  ;;  %v176_v13 = vld.sshfl [vmem:[#allocation1 + $0x18] sm:$0xff pattern:$0x73625140] }
  0x29   :  { %198 = vmatpush.msra.mxu0 %v74_v46  ;;  %236 = vmatpush.msra.mxu2 %v108_v52  ;;  %v162_v15 = vld [vmem:[%s2888_s1 + $0x2d0] sm:$0xff]  ;;  %v173_v16 = vld.sshfl [vmem:[#allocation1] sm:$0xff pattern:$0x73625140]  ;;  %v145_v18 = vld [vmem:[%s2888_s1 + $0x248] sm:$0xff] }
  0x2a   :  { %218 = vmatpush.msra.mxu1 %v90_v47  ;;  %256 = vmatpush.msra.mxu3 %v124_v53  ;;  %v174_v17 = vld.sshfl [vmem:[#allocation1 + $0x8] sm:$0xff pattern:$0x73625140]  ;;  %v144_v20 = vld [vmem:[%s2888_s1 + $0x240] sm:$0xff]  ;;  %v143_v22 = vld [vmem:[%s2888_s1 + $0x238] sm:$0xff] }
  0x2b   :  { %199 = vmatpush.msra.mxu0 %v73_v50  ;;  %237 = vmatpush.msra.mxu2 %v107_v59  ;;  %v161_v19 = vld [vmem:[%s2888_s1 + $0x2c8] sm:$0xff]  ;;  %v160_v21 = vld [vmem:[%s2888_s1 + $0x2c0] sm:$0xff]  ;;  %v159_v23 = vld [vmem:[%s2888_s1 + $0x2b8] sm:$0xff] }
  0x2c   :  { %219 = vmatpush.msra.mxu1 %v89_v51  ;;  %257 = vmatpush.msra.mxu3 %v123_v60  ;;  %v142_v24 = vld [vmem:[%s2888_s1 + $0x230] sm:$0xff]  ;;  %v141_v26 = vld [vmem:[%s2888_s1 + $0x228] sm:$0xff]  ;;  %v140_v28 = vld [vmem:[%s2888_s1 + $0x220] sm:$0xff] }
  0x2d   :  { %200 = vmatpush.msra.mxu0 %v72_v55  ;;  %238 = vmatpush.msra.mxu2 %v106_v63  ;;  %v158_v25 = vld [vmem:[%s2888_s1 + $0x2b0] sm:$0xff]  ;;  %v157_v27 = vld [vmem:[%s2888_s1 + $0x2a8] sm:$0xff]  ;;  %v156_v29 = vld [vmem:[%s2888_s1 + $0x2a0] sm:$0xff]  ;;  %v2361_v63 = vmov 1  }
  0x2e   :  { %220 = vmatpush.msra.mxu1 %v88_v56  ;;  %258 = vmatpush.msra.mxu3 %v122_v0  ;;  %v139_v30 = vld [vmem:[%s2888_s1 + $0x218] sm:$0xff]  ;;  %v138_v32 = vld [vmem:[%s2888_s1 + $0x210] sm:$0xff]  ;;  %v137_v34 = vld [vmem:[%s2888_s1 + $0x208] sm:$0xff] }
  0x2f   :  { %265 = vmatpush.msrb.mxu0 %v151_v57  ;;  %239 = vmatpush.msra.mxu2 %v105_v4  ;;  %v155_v31 = vld [vmem:[%s2888_s1 + $0x298] sm:$0xff]  ;;  %v154_v33 = vld [vmem:[%s2888_s1 + $0x290] sm:$0xff]  ;;  %v153_v35 = vld [vmem:[%s2888_s1 + $0x288] sm:$0xff] }
  0x30   :  { %285 = vmatpush.msrb.mxu1 %v167_v58  ;;  %259 = vmatpush.msra.mxu3 %v121_v5  ;;  %v136_v36 = vld [vmem:[%s2888_s1 + $0x200] sm:$0xff]  ;;  %v178_v39 = vld.sshfl [vmem:[#allocation1 + $0x28] sm:$0xff pattern:$0x73625140] }
  0x31   :  { %266 = vmatpush.msrb.mxu0 %v150_v61  ;;  %240 = vmatpush.msra.mxu2 %v104_v8  ;;  %v152_v37 = vld [vmem:[%s2888_s1 + $0x280] sm:$0xff]  ;;  %v69_v53 = vld [vmem:[#allocation2] sm:$0x3]  ;;  %s2362_s1 = smov [#allocation9]  }
  0x32   :  { %286 = vmatpush.msrb.mxu1 %v166_v62  ;;  %260 = vmatpush.msra.mxu3 %v120_v9  ;;  %v177_v38 = vld.sshfl [vmem:[#allocation1 + $0x20] sm:$0xff pattern:$0x73625140]  ;;  %s2219_s3 = sshll.u32 %s2362_s1, 4  ;;  %s2220_s3 = int_to_ptr.vmem [resolvable:$true] %s2219_s3 }
  0x33   :  { %267 = vmatpush.msrb.mxu0 %v149_v2  ;;  %241 = vmatmul.f32.vlgmr.msra.gmra.mxu2 %v175_v12  ;;  %v562_v0 = vld [vmem:[#allocation6 + $0x3c0] sm:$0xff]  ;;  %v2696_v8 = vld [vmem:[#allocation3 + $0x2] ss:$4 sm:$0x3f] }
  0x34   :  { %287 = vmatpush.msrb.mxu1 %v165_v3  ;;  %261 = vmatmul.f32.vlgmr.msra.gmra.mxu3 %v176_v13  ;;  %v690_v1 = vld [vmem:[#allocation6 + $0x7c0] sm:$0xff] }
  0x35   :  { %268 = vmatpush.msrb.mxu0 %v148_v6  ;;  %221 = vmatmul.f32.vlgmr.msra.gmra.mxu1 %v174_v17  ;;  %v818_v2 = vld [vmem:[#allocation6 + $0xbc0] sm:$0xff]  ;;  %v382_v17 = vperm.slane %v2696_v8, 0 }
  0x36   :  { %288 = vmatpush.msrb.mxu1 %v164_v7  ;;  %201 = vmatmul.f32.vlgmr.msra.gmra.mxu0 %v173_v16  ;;  %v946_v3 = vld [vmem:[#allocation6 + $0xfc0] sm:$0xff] }
  0x37   :  { %269 = vmatpush.msrb.mxu0 %v147_v10  ;;  %2247 = vset.pattern.permute.xlu1 %v2359_v41  ;;  %v554_v4 = vld [vmem:[#allocation6 + $0x380] sm:$0xff] }
  0x38   :  { %289 = vmatpush.msrb.mxu1 %v163_v11  ;;  %2245 = vset.pattern.permute.xlu0 %v2360_v42  ;;  %v682_v5 = vld [vmem:[#allocation6 + $0x780] sm:$0xff]  ;;  %v2700_v11 = vld [vmem:[#allocation3] ss:$4 sm:$0x3f] }
  0x39   :  { %270 = vmatpush.msrb.mxu0 %v146_v14  ;;  %1228 = vmatpush.msrb.mxu2 %v562_v0  ;;  %v810_v6 = vld [vmem:[#allocation6 + $0xb80] sm:$0xff]  ;;  %v2702_v14 = vld [vmem:[#allocation3 + $0x1] ss:$4 sm:$0x3f] }
  0x3a   :  { %290 = vmatpush.msrb.mxu1 %v162_v15  ;;  %1248 = vmatpush.msrb.mxu3 %v690_v1  ;;  %v938_v7 = vld [vmem:[#allocation6 + $0xf80] sm:$0xff] }
  0x3b   :  { %271 = vmatpush.msrb.mxu0 %v145_v18  ;;  %1229 = vmatpush.msrb.mxu2 %v554_v4  ;;  %v546_v10 = vld [vmem:[#allocation6 + $0x340] sm:$0xff]  ;;  %v383_v18 = vperm.slane %v2696_v8, 1 }
  0x3c   :  { %291 = vmatpush.msrb.mxu1 %v161_v19  ;;  %1249 = vmatpush.msrb.mxu3 %v682_v5  ;;  %v674_v12 = vld [vmem:[#allocation6 + $0x740] sm:$0xff]  ;;  %v384_v19 = vperm.slane %v2696_v8, 2 }
  0x3d   :  { %272 = vmatpush.msrb.mxu0 %v144_v20  ;;  %v802_v13 = vld [vmem:[#allocation6 + $0xb40] sm:$0xff]  ;;  %1230 = vmatpush.msrb.mxu2 %v546_v10 }
  0x3e   :  { %292 = vmatpush.msrb.mxu1 %v160_v21  ;;  %v930_v15 = vld [vmem:[#allocation6 + $0xf40] sm:$0xff]  ;;  %1250 = vmatpush.msrb.mxu3 %v674_v12 }
  0x3f   :  { %273 = vmatpush.msrb.mxu0 %v143_v22  ;;  %v538_v16 = vld [vmem:[#allocation6 + $0x300] sm:$0xff]  ;;  %v385_v22 = vperm.slane %v2696_v8, 3 }
  0x40   :  { %293 = vmatpush.msrb.mxu1 %v159_v23  ;;  %v666_v20 = vld [vmem:[#allocation6 + $0x700] sm:$0xff]  ;;  %1231 = vmatpush.msrb.mxu2 %v538_v16 }
  0x41   :  { %274 = vmatpush.msrb.mxu0 %v142_v24  ;;  %v794_v21 = vld [vmem:[#allocation6 + $0xb00] sm:$0xff]  ;;  %v320_v24 = vperm.slane %v2700_v11, 0  ;;  %1251 = vmatpush.msrb.mxu3 %v666_v20 }
  0x42   :  { %294 = vmatpush.msrb.mxu1 %v158_v25  ;;  %v321_v25 = vperm.slane %v2700_v11, 1  ;;  %v522_v40 = vld [vmem:[#allocation6 + $0x280] sm:$0xff] }
  0x43   :  { %275 = vmatpush.msrb.mxu0 %v141_v26  ;;  %v322_v26 = vperm.slane %v2700_v11, 2  ;;  %v506_v10 = vld [vmem:[#allocation6 + $0x200] sm:$0xff] }
  0x44   :  { %295 = vmatpush.msrb.mxu1 %v157_v27  ;;  %v922_v27 = vld [vmem:[#allocation6 + $0xf00] sm:$0xff] }
  0x45   :  { %276 = vmatpush.msrb.mxu0 %v140_v28  ;;  %v530_v28 = vld [vmem:[#allocation6 + $0x2c0] sm:$0xff] }
  0x46   :  { %296 = vmatpush.msrb.mxu1 %v156_v29  ;;  %v323_v29 = vperm.slane %v2700_v11, 3  ;;  %1232 = vmatpush.msrb.mxu2 %v530_v28  ;;  %v882_v28 = vld [vmem:[#allocation6 + $0xdc0] sm:$0xff] }
  0x47   :  { %277 = vmatpush.msrb.mxu0 %v139_v30  ;;  %v324_v30 = vperm.slane %v2700_v11, 4 }
  0x48   :  { %297 = vmatpush.msrb.mxu1 %v155_v31  ;;  %v348_v31 = vperm.slane %v2702_v14, 0  ;;  %1233 = vmatpush.msrb.mxu2 %v522_v40 }
  0x49   :  { %278 = vmatpush.msrb.mxu0 %v138_v32  ;;  %v325_v32 = vperm.slane %v2700_v11, 5  ;;  %v634_v11 = vld [vmem:[#allocation6 + $0x600] sm:$0xff] }
  0x4a   :  { %298 = vmatpush.msrb.mxu1 %v154_v33  ;;  %v658_v33 = vld [vmem:[#allocation6 + $0x6c0] sm:$0xff] }
  0x4b   :  { %279 = vmatpush.msrb.mxu0 %v137_v34  ;;  %v786_v34 = vld [vmem:[#allocation6 + $0xac0] sm:$0xff]  ;;  %1252 = vmatpush.msrb.mxu3 %v658_v33 }
  0x4c   :  { %299 = vmatpush.msrb.mxu1 %v153_v35  ;;  %v349_v35 = vperm.slane %v2702_v14, 1 }
  0x4d   :  { %280 = vmatpush.msrb.mxu0 %v136_v36  ;;  %v350_v36 = vperm.slane %v2702_v14, 2 }
  0x4e   :  { %300 = vmatpush.msrb.mxu1 %v152_v37  ;;  %281 = vmatmul.f32.vlgmr.msrb.gmra.mxu0 %v177_v38  ;;  %v351_v37 = vperm.slane %v2702_v14, 3  ;;  %v352_v38 = vperm.slane %v2702_v14, 4 }
  0x4f   :  { %301 = vmatmul.f32.vlgmr.msrb.gmra.mxu1 %v178_v39  ;;  %1268 = vmatpush.msra.mxu0 %v818_v2  ;;  %v914_v39 = vld [vmem:[#allocation6 + $0xec0] sm:$0xff]  ;;  %v387_v2 = vperm.slane %v2696_v8, 5 }
  0x50   :  { %1288 = vmatpush.msra.mxu1 %v946_v3  ;;  %v898_v3 = vld [vmem:[#allocation6 + $0xe40] sm:$0xff] }
  0x51   :  { %1269 = vmatpush.msra.mxu0 %v810_v6 }
  0x52   :  { %1289 = vmatpush.msra.mxu1 %v938_v7 }
  0x53   :  { %1270 = vmatpush.msra.mxu0 %v802_v13 }
  0x54   :  { %1290 = vmatpush.msra.mxu1 %v930_v15  ;;  %v762_v15 = vld [vmem:[#allocation6 + $0xa00] sm:$0xff] }
  0x55   :  { %1271 = vmatpush.msra.mxu0 %v794_v21  ;;  %v626_v21 = vld [vmem:[#allocation6 + $0x5c0] sm:$0xff] }
  0x56   :  { %1291 = vmatpush.msra.mxu1 %v922_v27 }
  0x57   :  { %1272 = vmatpush.msra.mxu0 %v786_v34 }
  0x58   :  { %1292 = vmatpush.msra.mxu1 %v914_v39  ;;  %v738_v39 = vld [vmem:[#allocation6 + $0x940] sm:$0xff] }
  0xb2   :  { %v222_v44 = vpop.f32.mrf.mxu1 }
  0xb3   :  { %v202_v43 = vpop.f32.mrf.mxu0 }
  0xb4   :  { %v223_v45 = vadd.f32 %v222_v44, %v202_v43  ;;  %v353_v44 = vperm.slane %v2702_v14, 5 }
  0xb6   :  { %v242_v46 = vpop.f32.mrf.mxu2 }
  0xb7   :  { %v243_v47 = vadd.f32 %v242_v46, %v223_v45  ;;  %v262_v48 = vpop.f32.mrf.mxu3  ;;  %v650_v45 = vld [vmem:[#allocation6 + $0x680] sm:$0xff] }
  0xb8   :  { %1253 = vmatpush.msrb.mxu3 %v650_v45  ;;  %v602_v45 = vld [vmem:[#allocation6 + $0x500] sm:$0xff] }
  0xb9   :  { %v263_v49 = vadd.f32 %v262_v48, %v243_v47 }
  0xcb   :  { %v282_v50 = vpop.f32.mrf.mxu0 }
  0xcc   :  { %v302_v51 = vpop.f32.mrf.mxu1  ;;  %v283_v52 = vadd.f32 %v282_v50, %v263_v49  ;;  %v778_v49 = vld [vmem:[#allocation6 + $0xa80] sm:$0xff] }
  0xcd   :  { %v906_v50 = vld [vmem:[#allocation6 + $0xe80] sm:$0xff]  ;;  %1273 = vmatpush.msra.mxu0 %v778_v49 }
  0xce   :  { %v303_v54 = vadd.f32 %v302_v51, %v283_v52  ;;  %1293 = vmatpush.msra.mxu1 %v906_v50  ;;  %v858_v49 = vld [vmem:[#allocation6 + $0xd00] sm:$0xff] }
  0xcf   :  { %v466_v50 = vld [vmem:[#allocation6 + $0xc0] sm:$0xff] }
  0xd0   :  { %v305_v55 = vadd.f32 %v303_v54, %v69_v53  ;;  %1294 = vmatpush.msra.mxu1 %v898_v3  ;;  %v442_v3 = vld [vmem:[#allocation6] sm:$0xff] }
  0xd2   :  { %306 = vst [vmem:[#allocation2] sm:$0x3] %v305_v55  ;;  %v386_v55 = vperm.slane %v2696_v8, 4 }
  0xd9   :  { %v310_v56 = vld [vmem:[#allocation2] sm:$0x3] }
  0xda   :  { %v372_v57 = vmul.f32 5.554713e-05, %v310_v56  ;;  %v311_v58 = vmul.f32 5.7025103e-05, %v310_v56  ;;  %v338_v61 = vmul.f32 5.8624097e-05, %v310_v56 }
  0xdb   :  { %v514_v56 = vld [vmem:[#allocation6 + $0x240] sm:$0xff] }
  0xdc   :  { %v2234_v59 = vadd.f32 -1.4802197, %v372_v57  ;;  %v2232_v60 = vadd.f32 -1.7922626, %v311_v58  ;;  %v2233_v62 = vadd.f32 -1.7520971, %v338_v61  ;;  %1234 = vmatpush.msrb.mxu2 %v514_v56 }
  0xdd   :  { %v642_v61 = vld [vmem:[#allocation6 + $0x640] sm:$0xff] }
  0xde   :  { %378 = vperm.xlu1 %2247, %v2234_v59   ;;  %316 = vperm.xlu0 %2245, %v2232_v60   ;;  %v458_v56 = vld [vmem:[#allocation6 + $0x80] sm:$0xff] }
  0xdf   :  { %1254 = vmatpush.msrb.mxu3 %v642_v61  ;;  %1235 = vmatpush.msrb.mxu2 %v506_v10  ;;  %v842_v61 = vld [vmem:[#allocation6 + $0xc80] sm:$0xff] }
  0xe0   :  { %v1202_v10 = vld [vmem:[#allocation6 + $0x17c0] sm:$0xff] }
  0xe1   :  { %1255 = vmatpush.msrb.mxu3 %v634_v11  ;;  %v563_v11 = vld [vmem:[#allocation6 + $0x3c8] sm:$0xff] }
  0xe3   :  { %1256 = vmatpush.msrb.mxu3 %v626_v21  ;;  %v547_v21 = vld [vmem:[#allocation6 + $0x348] sm:$0xff] }
  0xe6   :  { %2246 = vset.pattern.permute.xlu0 %v2361_v63 }
  0xe7   :  { %344 = vperm.xlu0 %2246, %v2233_v62   ;;  %v770_v62 = vld [vmem:[#allocation6 + $0xa40] sm:$0xff] }
  0xe8   :  { %1274 = vmatpush.msra.mxu0 %v770_v62 }
  0xea   :  { %1275 = vmatpush.msra.mxu0 %v762_v15  ;;  %v555_v15 = vld [vmem:[#allocation6 + $0x388] sm:$0xff] }
  0xef   :  { %2248 = vset.pattern.permute.xlu0 %v2359_v41 }
 0x150   :  { %v2698_v9 = vpop.permute.xlu0 %316  ;;  %v2708_v23 = vpop.permute.xlu1 %378 }
 0x151   :  { %v394_v41 = vmul.f32 %v382_v17, %v2708_v23  ;;  %v395_v42 = vmul.f32 %v383_v18, %v2708_v23  ;;  %v396_v43 = vmul.f32 %v384_v19, %v2708_v23  ;;  %v397_v46 = vmul.f32 %v385_v22, %v2708_v23  ;;  %v890_v18 = vld [vmem:[#allocation6 + $0xe00] sm:$0xff] }
 0x152   :  { %v332_v47 = vmul.f32 %v320_v24, %v2698_v9  ;;  %v333_v48 = vmul.f32 %v321_v25, %v2698_v9  ;;  %v334_v51 = vmul.f32 %v322_v26, %v2698_v9  ;;  %v335_v52 = vmul.f32 %v323_v29, %v2698_v9  ;;  %v498_v19 = vld [vmem:[#allocation6 + $0x1c0] sm:$0xff]  ;;  %1295 = vmatpush.msra.mxu1 %v890_v18  ;;  %v683_v18 = vld [vmem:[#allocation6 + $0x788] sm:$0xff] }
 0x153   :  { %v336_v53 = vmul.f32 %v324_v30, %v2698_v9  ;;  %v337_v1 = vmul.f32 %v325_v32, %v2698_v9  ;;  %v398_v14 = vmul.f32 %v386_v55, %v2708_v23  ;;  %v399_v20 = vmul.f32 %v387_v2, %v2708_v23  ;;  %v754_v22 = vld [vmem:[#allocation6 + $0x9c0] sm:$0xff]  ;;  %1236 = vmatpush.msrb.mxu2 %v498_v19 }
 0x154   :  { %v490_v29 = vld [vmem:[#allocation6 + $0x180] sm:$0xff]  ;;  %1276 = vmatpush.msra.mxu0 %v754_v22  ;;  %1296 = vmatpush.msra.mxu1 %v882_v28  ;;  %v675_v22 = vld [vmem:[#allocation6 + $0x748] sm:$0xff] }
 0x155   :  { %v618_v23 = vld [vmem:[#allocation6 + $0x580] sm:$0xff]  ;;  %1237 = vmatpush.msrb.mxu2 %v490_v29  ;;  %v667_v28 = vld [vmem:[#allocation6 + $0x708] sm:$0xff] }
 0x156   :  { %v746_v30 = vld [vmem:[#allocation6 + $0x980] sm:$0xff]  ;;  %1257 = vmatpush.msrb.mxu3 %v618_v23 }
 0x157   :  { %1277 = vmatpush.msra.mxu0 %v746_v30  ;;  %v850_v55 = vld [vmem:[#allocation6 + $0xcc0] sm:$0xff]  ;;  %v531_v30 = vld [vmem:[#allocation6 + $0x2c8] sm:$0xff] }
 0x158   :  { %v834_v2 = vld [vmem:[#allocation6 + $0xc40] sm:$0xff] }
 0x159   :  { %v345_v54 = vpop.permute.xlu0 %344  ;;  %1278 = vmatpush.msra.mxu0 %v738_v39  ;;  %v1058_v19 = vld [vmem:[#allocation6 + $0x1340] sm:$0xff]  ;;  %v515_v39 = vld [vmem:[#allocation6 + $0x248] sm:$0xff] }
 0x15a   :  { %v360_v57 = vmul.f32 %v348_v31, %v345_v54  ;;  %v361_v58 = vmul.f32 %v349_v35, %v345_v54  ;;  %v362_v59 = vmul.f32 %v350_v36, %v345_v54  ;;  %v363_v60 = vmul.f32 %v351_v37, %v345_v54  ;;  %v874_v35 = vld [vmem:[#allocation6 + $0xd80] sm:$0xff] }
 0x15b   :  { %v364_v63 = vmul.f32 %v352_v38, %v345_v54  ;;  %v365_v0 = vmul.f32 %v353_v44, %v345_v54  ;;  %v482_v36 = vld [vmem:[#allocation6 + $0x140] sm:$0xff]  ;;  %1297 = vmatpush.msra.mxu1 %v874_v35  ;;  %v523_v35 = vld [vmem:[#allocation6 + $0x288] sm:$0xff] }
 0x15c   :  { %v366_v4 = vadd.f32 %v360_v57, %v332_v47  ;;  %v367_v5 = vadd.f32 %v361_v58, %v333_v48  ;;  %v368_v6 = vadd.f32 %v362_v59, %v334_v51  ;;  %v369_v7 = vadd.f32 %v363_v60, %v335_v52  ;;  %v610_v38 = vld [vmem:[#allocation6 + $0x540] sm:$0xff]  ;;  %1238 = vmatpush.msrb.mxu2 %v482_v36  ;;  %v651_v36 = vld [vmem:[#allocation6 + $0x688] sm:$0xff] }
 0x15d   :  { %v370_v12 = vadd.f32 %v364_v63, %v336_v53  ;;  %v371_v13 = vadd.f32 %v365_v0, %v337_v1  ;;  %1258 = vmatpush.msrb.mxu3 %v610_v38  ;;  %v594_v52 = vld [vmem:[#allocation6 + $0x4c0] sm:$0xff] }
 0x15e   :  { %v2735_v9 = vadd.f32 %v394_v41, %v366_v4  ;;  %v2737_v8 = vadd.f32 %v395_v42, %v367_v5  ;;  %v2739_v16 = vadd.f32 %v396_v43, %v368_v6  ;;  %v2741_v17 = vadd.f32 %v397_v46, %v369_v7  ;;  %v866_v42 = vld [vmem:[#allocation6 + $0xd40] sm:$0xff] }
 0x15f   :  { %v2744_v24 = vadd.f32 %v398_v14, %v370_v12  ;;  %v2752_v31 = vadd.f32 %v399_v20, %v371_v13  ;;  %v474_v43 = vld [vmem:[#allocation6 + $0x100] sm:$0xff]  ;;  %1298 = vmatpush.msra.mxu1 %v866_v42  ;;  %1259 = vmatpush.msrb.mxu3 %v602_v45  ;;  %v691_v12 = vld [vmem:[#allocation6 + $0x7c8] sm:$0xff] }
 0x160   :  { %v406_v25 = vmul.f32 %v2735_v9, %v2735_v9  ;;  %v407_v26 = vmul.f32 %v2737_v8, %v2737_v8  ;;  %v408_v27 = vmul.f32 %v2739_v16, %v2739_v16  ;;  %v409_v32 = vmul.f32 %v2741_v17, %v2741_v17  ;;  %v730_v46 = vld [vmem:[#allocation6 + $0x900] sm:$0xff]  ;;  %1239 = vmatpush.msrb.mxu2 %v474_v43  ;;  %v507_v43 = vld [vmem:[#allocation6 + $0x208] sm:$0xff] }
 0x161   :  { %v410_v40 = vmul.f32 %v2744_v24, %v2744_v24  ;;  %v411_v47 = vmul.f32 %v2752_v31, %v2752_v31  ;;  %v722_v53 = vld [vmem:[#allocation6 + $0x8c0] sm:$0xff]  ;;  %1279 = vmatpush.msra.mxu0 %v730_v46  ;;  %1299 = vmatpush.msra.mxu1 %v858_v49 }
 0x162   :  { %v413_v33 = vsel %vm412_vm0, %v406_v25, 0.0  ;;  %v414_v34 = vsel %vm412_vm0, %v407_v26, 0.0  ;;  %v416_v41 = vsel %vm412_vm0, %v408_v27, 0.0  ;;  %v418_v48 = vsel %vm412_vm0, %v409_v32, 0.0  ;;  %1240 = vmatpush.msrb.mxu2 %v466_v50  ;;  %v586_v58 = vld [vmem:[#allocation6 + $0x480] sm:$0xff]  ;;  %1260 = vmatpush.msrb.mxu3 %v594_v52  ;;  %v539_v27 = vld [vmem:[#allocation6 + $0x308] sm:$0xff] }
 0x163   :  { %v415_v37 = vadd.f32 %v414_v34, %v413_v33  ;;  %v420_v54 = vsel %vm412_vm0, %v410_v40, 0.0  ;;  %v714_v59 = vld [vmem:[#allocation6 + $0x880] sm:$0xff]  ;;  %v422_v60 = vsel %vm412_vm0, %v411_v47, 0.0  ;;  %1280 = vmatpush.msra.mxu0 %v722_v53  ;;  %1300 = vmatpush.msra.mxu1 %v850_v55  ;;  %v659_v32 = vld [vmem:[#allocation6 + $0x6c8] sm:$0xff] }
 0x164   :  { %1241 = vmatpush.msrb.mxu2 %v458_v56  ;;  %v450_v63 = vld [vmem:[#allocation6 + $0x40] sm:$0xff]  ;;  %1261 = vmatpush.msrb.mxu3 %v586_v58  ;;  %v643_v40 = vld [vmem:[#allocation6 + $0x648] sm:$0xff] }
 0x165   :  { %v417_v44 = vadd.f32 %v416_v41, %v415_v37  ;;  %v578_v0 = vld [vmem:[#allocation6 + $0x440] sm:$0xff]  ;;  %1281 = vmatpush.msra.mxu0 %v714_v59  ;;  %1301 = vmatpush.msra.mxu1 %v842_v61  ;;  %v499_v47 = vld [vmem:[#allocation6 + $0x1c8] sm:$0xff] }
 0x166   :  { %v706_v1 = vld [vmem:[#allocation6 + $0x840] sm:$0xff]  ;;  %1242 = vmatpush.msrb.mxu2 %v450_v63  ;;  %1262 = vmatpush.msrb.mxu3 %v578_v0  ;;  %v619_v52 = vld [vmem:[#allocation6 + $0x588] sm:$0xff] }
 0x167   :  { %v419_v51 = vadd.f32 %v418_v48, %v417_v44  ;;  %v570_v4 = vld [vmem:[#allocation6 + $0x400] sm:$0xff]  ;;  %1282 = vmatpush.msra.mxu0 %v706_v1  ;;  %1302 = vmatpush.msra.mxu1 %v834_v2  ;;  %v635_v44 = vld [vmem:[#allocation6 + $0x608] sm:$0xff] }
 0x168   :  { %v698_v5 = vld [vmem:[#allocation6 + $0x800] sm:$0xff]  ;;  %1243 = vmatpush.msrb.mxu2 %v442_v3  ;;  %1263 = vmatpush.msrb.mxu3 %v570_v4  ;;  %v627_v48 = vld [vmem:[#allocation6 + $0x5c8] sm:$0xff] }
 0x169   :  { %v421_v57 = vadd.f32 %v420_v54, %v419_v51  ;;  %v826_v6 = vld [vmem:[#allocation6 + $0xc00] sm:$0xff]  ;;  %1283 = vmatpush.msra.mxu0 %v698_v5  ;;  %v491_v51 = vld [vmem:[#allocation6 + $0x188] sm:$0xff] }
 0x16a   :  { %v1074_v7 = vld [vmem:[#allocation6 + $0x13c0] sm:$0xff]  ;;  %1303 = vmatpush.msra.mxu1 %v826_v6  ;;  %1328 = vmatpush.msra.mxu3 %v1202_v10  ;;  %v483_v55 = vld [vmem:[#allocation6 + $0x148] sm:$0xff] }
 0x16b   :  { %v423_v62 = vadd.f32 %v422_v60, %v421_v57  ;;  %v1066_v13 = vld [vmem:[#allocation6 + $0x1380] sm:$0xff]  ;;  %1308 = vmatpush.msra.mxu2 %v1074_v7  ;;  %1348 = vmatpush.msrb.mxu0 %v563_v11  ;;  %v611_v56 = vld [vmem:[#allocation6 + $0x548] sm:$0xff] }
 0x16c   :  { %v1194_v14 = vld [vmem:[#allocation6 + $0x1780] sm:$0xff]  ;;  %1368 = vmatpush.msrb.mxu1 %v691_v12  ;;  %v475_v59 = vld [vmem:[#allocation6 + $0x108] sm:$0xff] }
 0x16d   :  { %424 = vadd.xlane.f32.xlu1 %v423_v62  ;;  %v1186_v20 = vld [vmem:[#allocation6 + $0x1740] sm:$0xff]  ;;  %1309 = vmatpush.msra.mxu2 %v1066_v13  ;;  %v603_v60 = vld [vmem:[#allocation6 + $0x508] sm:$0xff] }
 0x16e   :  { %1329 = vmatpush.msra.mxu3 %v1194_v14  ;;  %1349 = vmatpush.msrb.mxu0 %v555_v15  ;;  %v1050_v25 = vld [vmem:[#allocation6 + $0x1300] sm:$0xff]  ;;  %v467_v63 = vld [vmem:[#allocation6 + $0xc8] sm:$0xff] }
 0x16f   :  { %1369 = vmatpush.msrb.mxu1 %v683_v18  ;;  %v1178_v26 = vld [vmem:[#allocation6 + $0x1700] sm:$0xff]  ;;  %1310 = vmatpush.msra.mxu2 %v1058_v19  ;;  %v595_v0 = vld [vmem:[#allocation6 + $0x4c8] sm:$0xff] }
 0x170   :  { %1330 = vmatpush.msra.mxu3 %v1186_v20  ;;  %1350 = vmatpush.msrb.mxu0 %v547_v21  ;;  %v1042_v29 = vld [vmem:[#allocation6 + $0x12c0] sm:$0xff]  ;;  %v459_v3 = vld [vmem:[#allocation6 + $0x88] sm:$0xff] }
 0x171   :  { %1370 = vmatpush.msrb.mxu1 %v675_v22  ;;  %v1170_v23 = vld [vmem:[#allocation6 + $0x16c0] sm:$0xff]  ;;  %1311 = vmatpush.msra.mxu2 %v1050_v25  ;;  %v587_v4 = vld [vmem:[#allocation6 + $0x488] sm:$0xff] }
 0x172   :  { %1331 = vmatpush.msra.mxu3 %v1178_v26  ;;  %1351 = vmatpush.msrb.mxu0 %v539_v27  ;;  %v1034_v33 = vld [vmem:[#allocation6 + $0x1280] sm:$0xff]  ;;  %v451_v7 = vld [vmem:[#allocation6 + $0x48] sm:$0xff] }
 0x173   :  { %1371 = vmatpush.msrb.mxu1 %v667_v28  ;;  %v1162_v34 = vld [vmem:[#allocation6 + $0x1680] sm:$0xff]  ;;  %1312 = vmatpush.msra.mxu2 %v1042_v29  ;;  %v579_v10 = vld [vmem:[#allocation6 + $0x448] sm:$0xff] }
 0x174   :  { %1332 = vmatpush.msra.mxu3 %v1170_v23  ;;  %1352 = vmatpush.msrb.mxu0 %v531_v30  ;;  %v1026_v37 = vld [vmem:[#allocation6 + $0x1240] sm:$0xff]  ;;  %v443_v13 = vld [vmem:[#allocation6 + $0x8] sm:$0xff] }
 0x175   :  { %1372 = vmatpush.msrb.mxu1 %v659_v32  ;;  %1313 = vmatpush.msra.mxu2 %v1034_v33  ;;  %v1154_v38 = vld [vmem:[#allocation6 + $0x1640] sm:$0xff]  ;;  %v571_v14 = vld [vmem:[#allocation6 + $0x408] sm:$0xff] }
 0x176   :  { %1333 = vmatpush.msra.mxu3 %v1162_v34  ;;  %1353 = vmatpush.msrb.mxu0 %v523_v35  ;;  %v1018_v41 = vld [vmem:[#allocation6 + $0x1200] sm:$0xff]  ;;  %v819_v30 = vld [vmem:[#allocation6 + $0xbc8] sm:$0xff] }
 0x177   :  { %1373 = vmatpush.msrb.mxu1 %v651_v36  ;;  %1314 = vmatpush.msra.mxu2 %v1026_v37  ;;  %v1146_v42 = vld [vmem:[#allocation6 + $0x1600] sm:$0xff]  ;;  %v947_v32 = vld [vmem:[#allocation6 + $0xfc8] sm:$0xff] }
 0x178   :  { %1334 = vmatpush.msra.mxu3 %v1154_v38  ;;  %1354 = vmatpush.msrb.mxu0 %v515_v39  ;;  %v1010_v45 = vld [vmem:[#allocation6 + $0x11c0] sm:$0xff]  ;;  %v1075_v33 = vld [vmem:[#allocation6 + $0x13c8] sm:$0xff] }
 0x179   :  { %1374 = vmatpush.msrb.mxu1 %v643_v40  ;;  %1315 = vmatpush.msra.mxu2 %v1018_v41  ;;  %v1138_v46 = vld [vmem:[#allocation6 + $0x15c0] sm:$0xff]  ;;  %v1203_v34 = vld [vmem:[#allocation6 + $0x17c8] sm:$0xff] }
 0x17a   :  { %1335 = vmatpush.msra.mxu3 %v1146_v42  ;;  %1355 = vmatpush.msrb.mxu0 %v507_v43  ;;  %v1002_v49 = vld [vmem:[#allocation6 + $0x1180] sm:$0xff]  ;;  %v1195_v35 = vld [vmem:[#allocation6 + $0x1788] sm:$0xff] }
 0x17b   :  { %1375 = vmatpush.msrb.mxu1 %v635_v44  ;;  %1316 = vmatpush.msra.mxu2 %v1010_v45  ;;  %v1130_v50 = vld [vmem:[#allocation6 + $0x1580] sm:$0xff]  ;;  %v931_v36 = vld [vmem:[#allocation6 + $0xf48] sm:$0xff] }
 0x17c   :  { %1336 = vmatpush.msra.mxu3 %v1138_v46  ;;  %1356 = vmatpush.msrb.mxu0 %v499_v47  ;;  %v994_v53 = vld [vmem:[#allocation6 + $0x1140] sm:$0xff]  ;;  %v1059_v37 = vld [vmem:[#allocation6 + $0x1348] sm:$0xff] }
 0x17d   :  { %1376 = vmatpush.msrb.mxu1 %v627_v48  ;;  %1317 = vmatpush.msra.mxu2 %v1002_v49  ;;  %v1122_v54 = vld [vmem:[#allocation6 + $0x1540] sm:$0xff]  ;;  %v1187_v38 = vld [vmem:[#allocation6 + $0x1748] sm:$0xff] }
 0x17e   :  { %1337 = vmatpush.msra.mxu3 %v1130_v50  ;;  %1357 = vmatpush.msrb.mxu0 %v491_v51  ;;  %v986_v57 = vld [vmem:[#allocation6 + $0x1100] sm:$0xff]  ;;  %v795_v39 = vld [vmem:[#allocation6 + $0xb08] sm:$0xff] }
 0x17f   :  { %1377 = vmatpush.msrb.mxu1 %v619_v52  ;;  %1318 = vmatpush.msra.mxu2 %v994_v53  ;;  %v1114_v58 = vld [vmem:[#allocation6 + $0x1500] sm:$0xff]  ;;  %v923_v40 = vld [vmem:[#allocation6 + $0xf08] sm:$0xff] }
 0x180   :  { %1338 = vmatpush.msra.mxu3 %v1122_v54  ;;  %1358 = vmatpush.msrb.mxu0 %v483_v55  ;;  %v978_v61 = vld [vmem:[#allocation6 + $0x10c0] sm:$0xff]  ;;  %v1051_v41 = vld [vmem:[#allocation6 + $0x1308] sm:$0xff] }
 0x181   :  { %1378 = vmatpush.msrb.mxu1 %v611_v56  ;;  %1319 = vmatpush.msra.mxu2 %v986_v57  ;;  %v1106_v62 = vld [vmem:[#allocation6 + $0x14c0] sm:$0xff]  ;;  %v1179_v42 = vld [vmem:[#allocation6 + $0x1708] sm:$0xff] }
 0x182   :  { %1339 = vmatpush.msra.mxu3 %v1114_v58  ;;  %1359 = vmatpush.msrb.mxu0 %v475_v59  ;;  %v970_v1 = vld [vmem:[#allocation6 + $0x1080] sm:$0xff]  ;;  %v787_v45 = vld [vmem:[#allocation6 + $0xac8] sm:$0xff] }
 0x183   :  { %1379 = vmatpush.msrb.mxu1 %v603_v60  ;;  %1320 = vmatpush.msra.mxu2 %v978_v61  ;;  %v1098_v2 = vld [vmem:[#allocation6 + $0x1480] sm:$0xff]  ;;  %v915_v46 = vld [vmem:[#allocation6 + $0xec8] sm:$0xff] }
 0x184   :  { %1340 = vmatpush.msra.mxu3 %v1106_v62  ;;  %1360 = vmatpush.msrb.mxu0 %v467_v63  ;;  %v962_v5 = vld [vmem:[#allocation6 + $0x1040] sm:$0xff]  ;;  %v1043_v47 = vld [vmem:[#allocation6 + $0x12c8] sm:$0xff] }
 0x185   :  { %1380 = vmatpush.msrb.mxu1 %v595_v0  ;;  %1321 = vmatpush.msra.mxu2 %v970_v1  ;;  %v1090_v6 = vld [vmem:[#allocation6 + $0x1440] sm:$0xff]  ;;  %v1171_v48 = vld [vmem:[#allocation6 + $0x16c8] sm:$0xff] }
 0x186   :  { %1341 = vmatpush.msra.mxu3 %v1098_v2  ;;  %1361 = vmatpush.msrb.mxu0 %v459_v3  ;;  %v954_v11 = vld [vmem:[#allocation6 + $0x1000] sm:$0xff]  ;;  %v907_v49 = vld [vmem:[#allocation6 + $0xe88] sm:$0xff] }
 0x187   :  { %1381 = vmatpush.msrb.mxu1 %v587_v4  ;;  %1322 = vmatpush.msra.mxu2 %v962_v5  ;;  %v1082_v12 = vld [vmem:[#allocation6 + $0x1400] sm:$0xff]  ;;  %v1163_v50 = vld [vmem:[#allocation6 + $0x1688] sm:$0xff] }
 0x188   :  { %1342 = vmatpush.msra.mxu3 %v1090_v6  ;;  %1362 = vmatpush.msrb.mxu0 %v451_v7  ;;  %v771_v51 = vld [vmem:[#allocation6 + $0xa48] sm:$0xff] }
 0x189   :  { %1382 = vmatpush.msrb.mxu1 %v579_v10  ;;  %1323 = vmatpush.msra.mxu2 %v954_v11  ;;  %v899_v52 = vld [vmem:[#allocation6 + $0xe48] sm:$0xff] }
 0x18a   :  { %1343 = vmatpush.msra.mxu3 %v1082_v12  ;;  %1363 = vmatpush.msrb.mxu0 %v443_v13  ;;  %v1027_v53 = vld [vmem:[#allocation6 + $0x1248] sm:$0xff] }
 0x18b   :  { %1383 = vmatpush.msrb.mxu1 %v571_v14  ;;  %v1155_v54 = vld [vmem:[#allocation6 + $0x1648] sm:$0xff] }
 0x18c   :  { %v763_v55 = vld [vmem:[#allocation6 + $0xa08] sm:$0xff] }
 0x18d   :  { %v891_v56 = vld [vmem:[#allocation6 + $0xe08] sm:$0xff] }
 0x18e   :  { %v1019_v57 = vld [vmem:[#allocation6 + $0x1208] sm:$0xff] }
 0x18f   :  { %v1147_v58 = vld [vmem:[#allocation6 + $0x1608] sm:$0xff] }
 0x190   :  { %v755_v59 = vld [vmem:[#allocation6 + $0x9c8] sm:$0xff] }
 0x191   :  { %v883_v60 = vld [vmem:[#allocation6 + $0xdc8] sm:$0xff] }
 0x192   :  { %v1011_v61 = vld [vmem:[#allocation6 + $0x11c8] sm:$0xff] }
 0x193   :  { %v1139_v62 = vld [vmem:[#allocation6 + $0x15c8] sm:$0xff] }
 0x194   :  { %v747_v63 = vld [vmem:[#allocation6 + $0x988] sm:$0xff] }
 0x195   :  { %v875_v0 = vld [vmem:[#allocation6 + $0xd88] sm:$0xff] }
 0x196   :  { %v1003_v1 = vld [vmem:[#allocation6 + $0x1188] sm:$0xff] }
 0x197   :  { %v1131_v2 = vld [vmem:[#allocation6 + $0x1588] sm:$0xff] }
 0x198   :  { %v739_v3 = vld [vmem:[#allocation6 + $0x948] sm:$0xff] }
 0x199   :  { %v867_v4 = vld [vmem:[#allocation6 + $0xd48] sm:$0xff] }
 0x19a   :  { %v995_v5 = vld [vmem:[#allocation6 + $0x1148] sm:$0xff] }
 0x19b   :  { %v1123_v6 = vld [vmem:[#allocation6 + $0x1548] sm:$0xff] }
 0x19c   :  { %v731_v7 = vld [vmem:[#allocation6 + $0x908] sm:$0xff] }
 0x19d   :  { %v859_v10 = vld [vmem:[#allocation6 + $0xd08] sm:$0xff] }
 0x19e   :  { %v987_v11 = vld [vmem:[#allocation6 + $0x1108] sm:$0xff] }
 0x19f   :  { %v1115_v12 = vld [vmem:[#allocation6 + $0x1508] sm:$0xff] }
 0x1a0   :  { %v723_v13 = vld [vmem:[#allocation6 + $0x8c8] sm:$0xff] }
 0x1a1   :  { %v851_v14 = vld [vmem:[#allocation6 + $0xcc8] sm:$0xff] }
 0x1e0   :  { %v425_v15 = vpop.xlane.xlu1 %424 }
 0x1e1   :  { %2249 = vrsqrt.f32 %v425_v15  ;;  %vm432_vm2 = vweird.f32 %v425_v15 }
 0x1e7   :  { %v2250_v18 = vpop.eup %2249 }
 0x1e8   :  { %v427_v19 = vmul.f32 %v2250_v18, %v425_v15  ;;  %vm433_vm1 = vweird.f32 %v2250_v18  ;;  %v979_v15 = vld [vmem:[#allocation6 + $0x10c8] sm:$0xff] }
 0x1e9   :  { %vm434_vm3 = vmor %vm432_vm2, %vm433_vm1 }
 0x1ea   :  { %v428_v20 = vmul.f32 %v2250_v18, %v427_v19  ;;  %v715_v19 = vld [vmem:[#allocation6 + $0x888] sm:$0xff] }
 0x1ec   :  { %v429_v21 = vmul.f32 0.5, %v428_v20  ;;  %v843_v20 = vld [vmem:[#allocation6 + $0xc88] sm:$0xff] }
 0x1ee   :  { %v430_v22 = vsub.f32 1.5, %v429_v21  ;;  %v971_v21 = vld [vmem:[#allocation6 + $0x1088] sm:$0xff] }
 0x1f0   :  { %v431_v25 = vmul.f32 %v2250_v18, %v430_v22  ;;  %v1099_v22 = vld [vmem:[#allocation6 + $0x1488] sm:$0xff] }
 0x1f2   :  { %v435_v26 = vsel %vm434_vm3, %v2250_v18, %v431_v25  ;;  %v1107_v18 = vld [vmem:[#allocation6 + $0x14c8] sm:$0xff] }
 0x1f3   :  { %v2767_v27 = vmul.f32 %v435_v26, %v2735_v9  ;;  %v2770_v28 = vmul.f32 %v435_v26, %v2737_v8  ;;  %v2773_v29 = vmul.f32 %v435_v26, %v2739_v16  ;;  %v2776_v23 = vmul.f32 %v435_v26, %v2741_v17  ;;  %v811_v9 = vld [vmem:[#allocation6 + $0xb88] sm:$0xff] }
 0x1f4   :  { %v939_v8 = vld [vmem:[#allocation6 + $0xf88] sm:$0xff]  ;;  %v2783_v43 = vmul.f32 %v435_v26, %v2744_v24  ;;  %v2786_v44 = vmul.f32 %v435_v26, %v2752_v31 }
 0x1f5   :  { %1244 = vmatmul.f32.vlgmr.msrb.gmra.mxu2 %v2767_v27  ;;  %1264 = vmatmul.f32.vlgmr.msrb.gmra.mxu3 %v2770_v28  ;;  %v1067_v16 = vld [vmem:[#allocation6 + $0x1388] sm:$0xff] }
 0x1f6   :  { %1284 = vmatmul.f32.vlgmr.msra.gmra.mxu0 %v2773_v29  ;;  %1304 = vmatmul.f32.vlgmr.msra.gmra.mxu1 %v2776_v23  ;;  %v803_v17 = vld [vmem:[#allocation6 + $0xb48] sm:$0xff] }
 0x1f7   :  { %1388 = vmatpush.msrb.mxu2 %v819_v30  ;;  %1408 = vmatpush.msrb.mxu3 %v947_v32  ;;  %v779_v24 = vld [vmem:[#allocation6 + $0xa88] sm:$0xff] }
 0x1f8   :  { %1428 = vmatpush.msra.mxu0 %v1075_v33  ;;  %1448 = vmatpush.msra.mxu1 %v1203_v34  ;;  %v1035_v31 = vld [vmem:[#allocation6 + $0x1288] sm:$0xff] }
 0x1f9   :  { %1389 = vmatpush.msrb.mxu2 %v811_v9  ;;  %1409 = vmatpush.msrb.mxu3 %v939_v8  ;;  %v707_v25 = vld [vmem:[#allocation6 + $0x848] sm:$0xff] }
 0x1fa   :  { %1429 = vmatpush.msra.mxu0 %v1067_v16  ;;  %1449 = vmatpush.msra.mxu1 %v1195_v35  ;;  %v835_v26 = vld [vmem:[#allocation6 + $0xc48] sm:$0xff]  ;;  %v564_v16 = vld [vmem:[#allocation6 + $0x3d0] sm:$0xff] }
 0x1fb   :  { %1390 = vmatpush.msrb.mxu2 %v803_v17  ;;  %1410 = vmatpush.msrb.mxu3 %v931_v36  ;;  %v963_v30 = vld [vmem:[#allocation6 + $0x1048] sm:$0xff]  ;;  %v692_v35 = vld [vmem:[#allocation6 + $0x7d0] sm:$0xff] }
 0x1fc   :  { %1430 = vmatpush.msra.mxu0 %v1059_v37  ;;  %1450 = vmatpush.msra.mxu1 %v1187_v38  ;;  %v1091_v32 = vld [vmem:[#allocation6 + $0x1448] sm:$0xff]  ;;  %v820_v17 = vld [vmem:[#allocation6 + $0xbd0] sm:$0xff] }
 0x1fd   :  { %1391 = vmatpush.msrb.mxu2 %v795_v39  ;;  %1411 = vmatpush.msrb.mxu3 %v923_v40  ;;  %v699_v33 = vld [vmem:[#allocation6 + $0x808] sm:$0xff]  ;;  %v948_v36 = vld [vmem:[#allocation6 + $0xfd0] sm:$0xff] }
 0x1fe   :  { %1431 = vmatpush.msra.mxu0 %v1051_v41  ;;  %1451 = vmatpush.msra.mxu1 %v1179_v42  ;;  %v827_v34 = vld [vmem:[#allocation6 + $0xc08] sm:$0xff]  ;;  %v556_v37 = vld [vmem:[#allocation6 + $0x390] sm:$0xff] }
 0x1ff   :  { %1324 = vmatmul.f32.vlgmr.msra.gmra.mxu2 %v2783_v43  ;;  %1344 = vmatmul.f32.vlgmr.msra.gmra.mxu3 %v2786_v44  ;;  %v955_v9 = vld [vmem:[#allocation6 + $0x1008] sm:$0xff]  ;;  %v684_v38 = vld [vmem:[#allocation6 + $0x790] sm:$0xff] }
 0x200   :  { %1364 = vmatmul.f32.vlgmr.msrb.gmra.mxu0 %v2767_v27  ;;  %1384 = vmatmul.f32.vlgmr.msrb.gmra.mxu1 %v2770_v28  ;;  %v1083_v8 = vld [vmem:[#allocation6 + $0x1408] sm:$0xff]  ;;  %v812_v39 = vld [vmem:[#allocation6 + $0xb90] sm:$0xff] }
 0x201   :  { %1392 = vmatpush.msrb.mxu2 %v787_v45  ;;  %1412 = vmatpush.msrb.mxu3 %v915_v46  ;;  %v940_v40 = vld [vmem:[#allocation6 + $0xf90] sm:$0xff] }
 0x202   :  { %1432 = vmatpush.msra.mxu0 %v1043_v47  ;;  %1452 = vmatpush.msra.mxu1 %v1171_v48  ;;  %v548_v41 = vld [vmem:[#allocation6 + $0x350] sm:$0xff] }
 0x203   :  { %1393 = vmatpush.msrb.mxu2 %v779_v24  ;;  %1413 = vmatpush.msrb.mxu3 %v907_v49  ;;  %v676_v42 = vld [vmem:[#allocation6 + $0x750] sm:$0xff] }
 0x204   :  { %1433 = vmatpush.msra.mxu0 %v1035_v31  ;;  %1453 = vmatpush.msra.mxu1 %v1163_v50  ;;  %v804_v45 = vld [vmem:[#allocation6 + $0xb50] sm:$0xff] }
 0x205   :  { %1394 = vmatpush.msrb.mxu2 %v771_v51  ;;  %1414 = vmatpush.msrb.mxu3 %v899_v52  ;;  %v932_v46 = vld [vmem:[#allocation6 + $0xf50] sm:$0xff] }
 0x206   :  { %1434 = vmatpush.msra.mxu0 %v1027_v53  ;;  %1454 = vmatpush.msra.mxu1 %v1155_v54  ;;  %v540_v47 = vld [vmem:[#allocation6 + $0x310] sm:$0xff] }
 0x207   :  { %1395 = vmatpush.msrb.mxu2 %v763_v55  ;;  %1415 = vmatpush.msrb.mxu3 %v891_v56  ;;  %v668_v48 = vld [vmem:[#allocation6 + $0x710] sm:$0xff] }
 0x208   :  { %1435 = vmatpush.msra.mxu0 %v1019_v57  ;;  %1455 = vmatpush.msra.mxu1 %v1147_v58  ;;  %v796_v24 = vld [vmem:[#allocation6 + $0xb10] sm:$0xff] }
 0x209   :  { %1396 = vmatpush.msrb.mxu2 %v755_v59  ;;  %1416 = vmatpush.msrb.mxu3 %v883_v60  ;;  %v924_v49 = vld [vmem:[#allocation6 + $0xf10] sm:$0xff] }
 0x20a   :  { %1436 = vmatpush.msra.mxu0 %v1011_v61  ;;  %1456 = vmatpush.msra.mxu1 %v1139_v62  ;;  %v532_v31 = vld [vmem:[#allocation6 + $0x2d0] sm:$0xff] }
 0x20b   :  { %1397 = vmatpush.msrb.mxu2 %v747_v63  ;;  %1417 = vmatpush.msrb.mxu3 %v875_v0  ;;  %v660_v50 = vld [vmem:[#allocation6 + $0x6d0] sm:$0xff] }
 0x20c   :  { %1437 = vmatpush.msra.mxu0 %v1003_v1  ;;  %1457 = vmatpush.msra.mxu1 %v1131_v2  ;;  %v788_v51 = vld [vmem:[#allocation6 + $0xad0] sm:$0xff] }
 0x20d   :  { %1398 = vmatpush.msrb.mxu2 %v739_v3  ;;  %1418 = vmatpush.msrb.mxu3 %v867_v4  ;;  %v916_v52 = vld [vmem:[#allocation6 + $0xed0] sm:$0xff] }
 0x20e   :  { %1438 = vmatpush.msra.mxu0 %v995_v5  ;;  %1458 = vmatpush.msra.mxu1 %v1123_v6  ;;  %v524_v53 = vld [vmem:[#allocation6 + $0x290] sm:$0xff] }
 0x20f   :  { %1399 = vmatpush.msrb.mxu2 %v731_v7  ;;  %1419 = vmatpush.msrb.mxu3 %v859_v10  ;;  %v652_v54 = vld [vmem:[#allocation6 + $0x690] sm:$0xff] }
 0x210   :  { %1439 = vmatpush.msra.mxu0 %v987_v11  ;;  %1459 = vmatpush.msra.mxu1 %v1115_v12  ;;  %v780_v55 = vld [vmem:[#allocation6 + $0xa90] sm:$0xff] }
 0x211   :  { %1400 = vmatpush.msrb.mxu2 %v723_v13  ;;  %1420 = vmatpush.msrb.mxu3 %v851_v14  ;;  %v908_v56 = vld [vmem:[#allocation6 + $0xe90] sm:$0xff] }
 0x212   :  { %1440 = vmatpush.msra.mxu0 %v979_v15  ;;  %1460 = vmatpush.msra.mxu1 %v1107_v18  ;;  %v516_v57 = vld [vmem:[#allocation6 + $0x250] sm:$0xff] }
 0x213   :  { %1401 = vmatpush.msrb.mxu2 %v715_v19  ;;  %1421 = vmatpush.msrb.mxu3 %v843_v20  ;;  %v644_v58 = vld [vmem:[#allocation6 + $0x650] sm:$0xff] }
 0x214   :  { %1441 = vmatpush.msra.mxu0 %v971_v21  ;;  %1461 = vmatpush.msra.mxu1 %v1099_v22  ;;  %v772_v59 = vld [vmem:[#allocation6 + $0xa50] sm:$0xff] }
 0x215   :  { %1402 = vmatpush.msrb.mxu2 %v707_v25  ;;  %1422 = vmatpush.msrb.mxu3 %v835_v26  ;;  %v900_v60 = vld [vmem:[#allocation6 + $0xe50] sm:$0xff] }
 0x216   :  { %1442 = vmatpush.msra.mxu0 %v963_v30  ;;  %1462 = vmatpush.msra.mxu1 %v1091_v32  ;;  %v508_v61 = vld [vmem:[#allocation6 + $0x210] sm:$0xff] }
 0x217   :  { %1403 = vmatpush.msrb.mxu2 %v699_v33  ;;  %1423 = vmatpush.msrb.mxu3 %v827_v34  ;;  %v636_v62 = vld [vmem:[#allocation6 + $0x610] sm:$0xff] }
 0x218   :  { %1443 = vmatpush.msra.mxu0 %v955_v9  ;;  %1463 = vmatpush.msra.mxu1 %v1083_v8  ;;  %v764_v63 = vld [vmem:[#allocation6 + $0xa10] sm:$0xff] }
 0x219   :  { %1404 = vmatmul.f32.vlgmr.msrb.gmra.mxu2 %v2773_v29  ;;  %1424 = vmatmul.f32.vlgmr.msrb.gmra.mxu3 %v2776_v23  ;;  %v892_v0 = vld [vmem:[#allocation6 + $0xe10] sm:$0xff] }
 0x21a   :  { %1444 = vmatmul.f32.vlgmr.msra.gmra.mxu0 %v2783_v43  ;;  %1464 = vmatmul.f32.vlgmr.msra.gmra.mxu1 %v2786_v44  ;;  %v500_v1 = vld [vmem:[#allocation6 + $0x1d0] sm:$0xff] }
 0x21b   :  { %1468 = vmatpush.msra.mxu2 %v564_v16  ;;  %1488 = vmatpush.msra.mxu3 %v692_v35  ;;  %v628_v2 = vld [vmem:[#allocation6 + $0x5d0] sm:$0xff] }
 0x21c   :  { %1508 = vmatpush.msrb.mxu0 %v820_v17  ;;  %1528 = vmatpush.msrb.mxu1 %v948_v36  ;;  %v756_v3 = vld [vmem:[#allocation6 + $0x9d0] sm:$0xff] }
 0x21d   :  { %1469 = vmatpush.msra.mxu2 %v556_v37  ;;  %1489 = vmatpush.msra.mxu3 %v684_v38  ;;  %v884_v4 = vld [vmem:[#allocation6 + $0xdd0] sm:$0xff] }
 0x21e   :  { %1509 = vmatpush.msrb.mxu0 %v812_v39  ;;  %1529 = vmatpush.msrb.mxu1 %v940_v40  ;;  %v492_v5 = vld [vmem:[#allocation6 + $0x190] sm:$0xff] }
 0x21f   :  { %1470 = vmatpush.msra.mxu2 %v548_v41  ;;  %1490 = vmatpush.msra.mxu3 %v676_v42  ;;  %v620_v6 = vld [vmem:[#allocation6 + $0x590] sm:$0xff]  ;;  %v565_v41 = vld [vmem:[#allocation6 + $0x3d8] sm:$0xff] }
 0x220   :  { %1510 = vmatpush.msrb.mxu0 %v804_v45  ;;  %1530 = vmatpush.msrb.mxu1 %v932_v46  ;;  %v748_v7 = vld [vmem:[#allocation6 + $0x990] sm:$0xff]  ;;  %v693_v42 = vld [vmem:[#allocation6 + $0x7d8] sm:$0xff] }
 0x221   :  { %1471 = vmatpush.msra.mxu2 %v540_v47  ;;  %1491 = vmatpush.msra.mxu3 %v668_v48  ;;  %v876_v10 = vld [vmem:[#allocation6 + $0xd90] sm:$0xff]  ;;  %v557_v47 = vld [vmem:[#allocation6 + $0x398] sm:$0xff] }
 0x222   :  { %1511 = vmatpush.msrb.mxu0 %v796_v24  ;;  %1531 = vmatpush.msrb.mxu1 %v924_v49  ;;  %v484_v11 = vld [vmem:[#allocation6 + $0x150] sm:$0xff]  ;;  %v685_v48 = vld [vmem:[#allocation6 + $0x798] sm:$0xff] }
 0x223   :  { %1472 = vmatpush.msra.mxu2 %v532_v31  ;;  %1492 = vmatpush.msra.mxu3 %v660_v50  ;;  %v612_v12 = vld [vmem:[#allocation6 + $0x550] sm:$0xff]  ;;  %v549_v31 = vld [vmem:[#allocation6 + $0x358] sm:$0xff] }
 0x224   :  { %1512 = vmatpush.msrb.mxu0 %v788_v51  ;;  %1532 = vmatpush.msrb.mxu1 %v916_v52  ;;  %v740_v13 = vld [vmem:[#allocation6 + $0x950] sm:$0xff]  ;;  %v677_v50 = vld [vmem:[#allocation6 + $0x758] sm:$0xff] }
 0x225   :  { %1473 = vmatpush.msra.mxu2 %v524_v53  ;;  %1493 = vmatpush.msra.mxu3 %v652_v54  ;;  %v868_v14 = vld [vmem:[#allocation6 + $0xd50] sm:$0xff]  ;;  %v541_v53 = vld [vmem:[#allocation6 + $0x318] sm:$0xff] }
 0x226   :  { %1513 = vmatpush.msrb.mxu0 %v780_v55  ;;  %1533 = vmatpush.msrb.mxu1 %v908_v56  ;;  %v476_v15 = vld [vmem:[#allocation6 + $0x110] sm:$0xff]  ;;  %v669_v54 = vld [vmem:[#allocation6 + $0x718] sm:$0xff] }
 0x227   :  { %1474 = vmatpush.msra.mxu2 %v516_v57  ;;  %1494 = vmatpush.msra.mxu3 %v644_v58  ;;  %v604_v18 = vld [vmem:[#allocation6 + $0x510] sm:$0xff]  ;;  %v533_v57 = vld [vmem:[#allocation6 + $0x2d8] sm:$0xff] }
 0x228   :  { %1514 = vmatpush.msrb.mxu0 %v772_v59  ;;  %1534 = vmatpush.msrb.mxu1 %v900_v60  ;;  %v732_v19 = vld [vmem:[#allocation6 + $0x910] sm:$0xff]  ;;  %v661_v58 = vld [vmem:[#allocation6 + $0x6d8] sm:$0xff] }
 0x229   :  { %1475 = vmatpush.msra.mxu2 %v508_v61  ;;  %1495 = vmatpush.msra.mxu3 %v636_v62  ;;  %v860_v20 = vld [vmem:[#allocation6 + $0xd10] sm:$0xff]  ;;  %v525_v61 = vld [vmem:[#allocation6 + $0x298] sm:$0xff] }
 0x22a   :  { %1515 = vmatpush.msrb.mxu0 %v764_v63  ;;  %1535 = vmatpush.msrb.mxu1 %v892_v0  ;;  %v468_v21 = vld [vmem:[#allocation6 + $0xd0] sm:$0xff]  ;;  %v653_v62 = vld [vmem:[#allocation6 + $0x698] sm:$0xff] }
 0x22b   :  { %1476 = vmatpush.msra.mxu2 %v500_v1  ;;  %1496 = vmatpush.msra.mxu3 %v628_v2  ;;  %v596_v22 = vld [vmem:[#allocation6 + $0x4d0] sm:$0xff]  ;;  %v517_v1 = vld [vmem:[#allocation6 + $0x258] sm:$0xff] }
 0x22c   :  { %1516 = vmatpush.msrb.mxu0 %v756_v3  ;;  %1536 = vmatpush.msrb.mxu1 %v884_v4  ;;  %v724_v25 = vld [vmem:[#allocation6 + $0x8d0] sm:$0xff]  ;;  %v645_v2 = vld [vmem:[#allocation6 + $0x658] sm:$0xff] }
 0x22d   :  { %1477 = vmatpush.msra.mxu2 %v492_v5  ;;  %1497 = vmatpush.msra.mxu3 %v620_v6  ;;  %v852_v26 = vld [vmem:[#allocation6 + $0xcd0] sm:$0xff]  ;;  %v509_v5 = vld [vmem:[#allocation6 + $0x218] sm:$0xff] }
 0x22e   :  { %1517 = vmatpush.msrb.mxu0 %v748_v7  ;;  %1537 = vmatpush.msrb.mxu1 %v876_v10  ;;  %v460_v30 = vld [vmem:[#allocation6 + $0x90] sm:$0xff]  ;;  %v637_v6 = vld [vmem:[#allocation6 + $0x618] sm:$0xff] }
 0x22f   :  { %1478 = vmatpush.msra.mxu2 %v484_v11  ;;  %1498 = vmatpush.msra.mxu3 %v612_v12  ;;  %v588_v32 = vld [vmem:[#allocation6 + $0x490] sm:$0xff]  ;;  %v501_v11 = vld [vmem:[#allocation6 + $0x1d8] sm:$0xff] }
 0x230   :  { %1518 = vmatpush.msrb.mxu0 %v740_v13  ;;  %1538 = vmatpush.msrb.mxu1 %v868_v14  ;;  %v716_v33 = vld [vmem:[#allocation6 + $0x890] sm:$0xff]  ;;  %v629_v12 = vld [vmem:[#allocation6 + $0x5d8] sm:$0xff] }
 0x231   :  { %1479 = vmatpush.msra.mxu2 %v476_v15  ;;  %1499 = vmatpush.msra.mxu3 %v604_v18  ;;  %v844_v34 = vld [vmem:[#allocation6 + $0xc90] sm:$0xff]  ;;  %v493_v15 = vld [vmem:[#allocation6 + $0x198] sm:$0xff] }
 0x232   :  { %1519 = vmatpush.msrb.mxu0 %v732_v19  ;;  %1539 = vmatpush.msrb.mxu1 %v860_v20  ;;  %v452_v9 = vld [vmem:[#allocation6 + $0x50] sm:$0xff]  ;;  %v621_v18 = vld [vmem:[#allocation6 + $0x598] sm:$0xff] }
 0x233   :  { %1480 = vmatpush.msra.mxu2 %v468_v21  ;;  %1500 = vmatpush.msra.mxu3 %v596_v22  ;;  %v580_v8 = vld [vmem:[#allocation6 + $0x450] sm:$0xff]  ;;  %v485_v21 = vld [vmem:[#allocation6 + $0x158] sm:$0xff] }
 0x234   :  { %1520 = vmatpush.msrb.mxu0 %v724_v25  ;;  %1540 = vmatpush.msrb.mxu1 %v852_v26  ;;  %v708_v16 = vld [vmem:[#allocation6 + $0x850] sm:$0xff]  ;;  %v613_v22 = vld [vmem:[#allocation6 + $0x558] sm:$0xff] }
 0x235   :  { %1481 = vmatpush.msra.mxu2 %v460_v30  ;;  %1501 = vmatpush.msra.mxu3 %v588_v32  ;;  %v836_v35 = vld [vmem:[#allocation6 + $0xc50] sm:$0xff]  ;;  %v477_v30 = vld [vmem:[#allocation6 + $0x118] sm:$0xff] }
 0x236   :  { %1521 = vmatpush.msrb.mxu0 %v716_v33  ;;  %1541 = vmatpush.msrb.mxu1 %v844_v34  ;;  %v444_v17 = vld [vmem:[#allocation6 + $0x10] sm:$0xff]  ;;  %v605_v32 = vld [vmem:[#allocation6 + $0x518] sm:$0xff] }
 0x237   :  { %v572_v36 = vld [vmem:[#allocation6 + $0x410] sm:$0xff]  ;;  %1482 = vmatpush.msra.mxu2 %v452_v9  ;;  %1502 = vmatpush.msra.mxu3 %v580_v8  ;;  %v469_v9 = vld [vmem:[#allocation6 + $0xd8] sm:$0xff] }
 0x238   :  { %v700_v37 = vld [vmem:[#allocation6 + $0x810] sm:$0xff]  ;;  %1522 = vmatpush.msrb.mxu0 %v708_v16  ;;  %1542 = vmatpush.msrb.mxu1 %v836_v35  ;;  %v597_v8 = vld [vmem:[#allocation6 + $0x4d8] sm:$0xff] }
 0x239   :  { %v828_v38 = vld [vmem:[#allocation6 + $0xc10] sm:$0xff]  ;;  %1483 = vmatpush.msra.mxu2 %v444_v17  ;;  %1503 = vmatpush.msra.mxu3 %v572_v36  ;;  %v461_v17 = vld [vmem:[#allocation6 + $0x98] sm:$0xff] }
 0x23a   :  { %1523 = vmatpush.msrb.mxu0 %v700_v37  ;;  %1543 = vmatpush.msrb.mxu1 %v828_v38  ;;  %v1076_v39 = vld [vmem:[#allocation6 + $0x13d0] sm:$0xff]  ;;  %v589_v36 = vld [vmem:[#allocation6 + $0x498] sm:$0xff] }
 0x23b   :  { %v1204_v40 = vld [vmem:[#allocation6 + $0x17d0] sm:$0xff]  ;;  %1484 = vmatmul.f32.vlgmr.msra.gmra.mxu2 %v2767_v27  ;;  %1504 = vmatmul.f32.vlgmr.msra.gmra.mxu3 %v2770_v28 }
 0x23c   :  { %1524 = vmatmul.f32.vlgmr.msrb.gmra.mxu0 %v2773_v29  ;;  %1544 = vmatmul.f32.vlgmr.msrb.gmra.mxu1 %v2776_v23  ;;  %v1068_v45 = vld [vmem:[#allocation6 + $0x1390] sm:$0xff] }
 0x23d   :  { %v1196_v46 = vld [vmem:[#allocation6 + $0x1790] sm:$0xff]  ;;  %1548 = vmatpush.msrb.mxu2 %v1076_v39  ;;  %1568 = vmatpush.msrb.mxu3 %v1204_v40  ;;  %v453_v39 = vld [vmem:[#allocation6 + $0x58] sm:$0xff] }
 0x23e   :  { %1588 = vmatpush.msra.mxu0 %v565_v41  ;;  %1608 = vmatpush.msra.mxu1 %v693_v42  ;;  %v1060_v24 = vld [vmem:[#allocation6 + $0x1350] sm:$0xff]  ;;  %v581_v40 = vld [vmem:[#allocation6 + $0x458] sm:$0xff] }
 0x23f   :  { %v1188_v49 = vld [vmem:[#allocation6 + $0x1750] sm:$0xff]  ;;  %1549 = vmatpush.msrb.mxu2 %v1068_v45  ;;  %1569 = vmatpush.msrb.mxu3 %v1196_v46  ;;  %v445_v45 = vld [vmem:[#allocation6 + $0x18] sm:$0xff] }
 0x240   :  { %1589 = vmatpush.msra.mxu0 %v557_v47  ;;  %1609 = vmatpush.msra.mxu1 %v685_v48  ;;  %v1052_v51 = vld [vmem:[#allocation6 + $0x1310] sm:$0xff]  ;;  %v573_v46 = vld [vmem:[#allocation6 + $0x418] sm:$0xff] }
 0x241   :  { %v1180_v52 = vld [vmem:[#allocation6 + $0x1710] sm:$0xff]  ;;  %1550 = vmatpush.msrb.mxu2 %v1060_v24  ;;  %1570 = vmatpush.msrb.mxu3 %v1188_v49  ;;  %v821_v47 = vld [vmem:[#allocation6 + $0xbd8] sm:$0xff] }
 0x242   :  { %1590 = vmatpush.msra.mxu0 %v549_v31  ;;  %1610 = vmatpush.msra.mxu1 %v677_v50  ;;  %v1044_v55 = vld [vmem:[#allocation6 + $0x12d0] sm:$0xff]  ;;  %v949_v48 = vld [vmem:[#allocation6 + $0xfd8] sm:$0xff] }
 0x243   :  { %v1172_v56 = vld [vmem:[#allocation6 + $0x16d0] sm:$0xff]  ;;  %1551 = vmatpush.msrb.mxu2 %v1052_v51  ;;  %1571 = vmatpush.msrb.mxu3 %v1180_v52  ;;  %v1077_v24 = vld [vmem:[#allocation6 + $0x13d8] sm:$0xff] }
 0x244   :  { %1591 = vmatpush.msra.mxu0 %v541_v53  ;;  %1611 = vmatpush.msra.mxu1 %v669_v54  ;;  %v1036_v59 = vld [vmem:[#allocation6 + $0x1290] sm:$0xff]  ;;  %v1205_v49 = vld [vmem:[#allocation6 + $0x17d8] sm:$0xff] }
 0x245   :  { %v1164_v60 = vld [vmem:[#allocation6 + $0x1690] sm:$0xff]  ;;  %1552 = vmatpush.msrb.mxu2 %v1044_v55  ;;  %1572 = vmatpush.msrb.mxu3 %v1172_v56  ;;  %v813_v31 = vld [vmem:[#allocation6 + $0xb98] sm:$0xff] }
 0x246   :  { %1592 = vmatpush.msra.mxu0 %v533_v57  ;;  %1612 = vmatpush.msra.mxu1 %v661_v58  ;;  %v1028_v63 = vld [vmem:[#allocation6 + $0x1250] sm:$0xff]  ;;  %v941_v50 = vld [vmem:[#allocation6 + $0xf98] sm:$0xff] }
 0x247   :  { %v1156_v0 = vld [vmem:[#allocation6 + $0x1650] sm:$0xff]  ;;  %1553 = vmatpush.msrb.mxu2 %v1036_v59  ;;  %1573 = vmatpush.msrb.mxu3 %v1164_v60  ;;  %v1069_v51 = vld [vmem:[#allocation6 + $0x1398] sm:$0xff] }
 0x248   :  { %1593 = vmatpush.msra.mxu0 %v525_v61  ;;  %1613 = vmatpush.msra.mxu1 %v653_v62  ;;  %v1020_v3 = vld [vmem:[#allocation6 + $0x1210] sm:$0xff]  ;;  %v1197_v52 = vld [vmem:[#allocation6 + $0x1798] sm:$0xff] }
 0x249   :  { %v1148_v4 = vld [vmem:[#allocation6 + $0x1610] sm:$0xff]  ;;  %1554 = vmatpush.msrb.mxu2 %v1028_v63  ;;  %1574 = vmatpush.msrb.mxu3 %v1156_v0  ;;  %v805_v53 = vld [vmem:[#allocation6 + $0xb58] sm:$0xff] }
 0x24a   :  { %1594 = vmatpush.msra.mxu0 %v517_v1  ;;  %1614 = vmatpush.msra.mxu1 %v645_v2  ;;  %v1012_v7 = vld [vmem:[#allocation6 + $0x11d0] sm:$0xff]  ;;  %v933_v54 = vld [vmem:[#allocation6 + $0xf58] sm:$0xff] }
 0x24b   :  { %v1140_v10 = vld [vmem:[#allocation6 + $0x15d0] sm:$0xff]  ;;  %1555 = vmatpush.msrb.mxu2 %v1020_v3  ;;  %1575 = vmatpush.msrb.mxu3 %v1148_v4  ;;  %v1061_v55 = vld [vmem:[#allocation6 + $0x1358] sm:$0xff] }
 0x24c   :  { %1595 = vmatpush.msra.mxu0 %v509_v5  ;;  %1615 = vmatpush.msra.mxu1 %v637_v6  ;;  %v1004_v13 = vld [vmem:[#allocation6 + $0x1190] sm:$0xff]  ;;  %v1189_v56 = vld [vmem:[#allocation6 + $0x1758] sm:$0xff] }
 0x24d   :  { %v1132_v14 = vld [vmem:[#allocation6 + $0x1590] sm:$0xff]  ;;  %1556 = vmatpush.msrb.mxu2 %v1012_v7  ;;  %1576 = vmatpush.msrb.mxu3 %v1140_v10  ;;  %v797_v57 = vld [vmem:[#allocation6 + $0xb18] sm:$0xff] }
 0x24e   :  { %1596 = vmatpush.msra.mxu0 %v501_v11  ;;  %1616 = vmatpush.msra.mxu1 %v629_v12  ;;  %v996_v19 = vld [vmem:[#allocation6 + $0x1150] sm:$0xff]  ;;  %v925_v58 = vld [vmem:[#allocation6 + $0xf18] sm:$0xff] }
 0x24f   :  { %v1124_v20 = vld [vmem:[#allocation6 + $0x1550] sm:$0xff]  ;;  %1557 = vmatpush.msrb.mxu2 %v1004_v13  ;;  %1577 = vmatpush.msrb.mxu3 %v1132_v14  ;;  %v1053_v59 = vld [vmem:[#allocation6 + $0x1318] sm:$0xff] }
 0x250   :  { %1597 = vmatpush.msra.mxu0 %v493_v15  ;;  %1617 = vmatpush.msra.mxu1 %v621_v18  ;;  %v988_v25 = vld [vmem:[#allocation6 + $0x1110] sm:$0xff]  ;;  %v1181_v60 = vld [vmem:[#allocation6 + $0x1718] sm:$0xff] }
 0x251   :  { %v1116_v26 = vld [vmem:[#allocation6 + $0x1510] sm:$0xff]  ;;  %1558 = vmatpush.msrb.mxu2 %v996_v19  ;;  %1578 = vmatpush.msrb.mxu3 %v1124_v20  ;;  %v789_v61 = vld [vmem:[#allocation6 + $0xad8] sm:$0xff] }
 0x252   :  { %1598 = vmatpush.msra.mxu0 %v485_v21  ;;  %1618 = vmatpush.msra.mxu1 %v613_v22  ;;  %v980_v33 = vld [vmem:[#allocation6 + $0x10d0] sm:$0xff]  ;;  %v917_v62 = vld [vmem:[#allocation6 + $0xed8] sm:$0xff] }
 0x253   :  { %v1108_v34 = vld [vmem:[#allocation6 + $0x14d0] sm:$0xff]  ;;  %1559 = vmatpush.msrb.mxu2 %v988_v25  ;;  %1579 = vmatpush.msrb.mxu3 %v1116_v26  ;;  %v1045_v63 = vld [vmem:[#allocation6 + $0x12d8] sm:$0xff] }
 0x254   :  { %1599 = vmatpush.msra.mxu0 %v477_v30  ;;  %1619 = vmatpush.msra.mxu1 %v605_v32  ;;  %v972_v16 = vld [vmem:[#allocation6 + $0x1090] sm:$0xff]  ;;  %v1173_v0 = vld [vmem:[#allocation6 + $0x16d8] sm:$0xff] }
 0x255   :  { %v1100_v35 = vld [vmem:[#allocation6 + $0x1490] sm:$0xff]  ;;  %1560 = vmatpush.msrb.mxu2 %v980_v33  ;;  %1580 = vmatpush.msrb.mxu3 %v1108_v34  ;;  %v781_v1 = vld [vmem:[#allocation6 + $0xa98] sm:$0xff] }
 0x256   :  { %1600 = vmatpush.msra.mxu0 %v469_v9  ;;  %1620 = vmatpush.msra.mxu1 %v597_v8  ;;  %v964_v37 = vld [vmem:[#allocation6 + $0x1050] sm:$0xff]  ;;  %v909_v2 = vld [vmem:[#allocation6 + $0xe98] sm:$0xff] }
 0x257   :  { %v1092_v38 = vld [vmem:[#allocation6 + $0x1450] sm:$0xff]  ;;  %1561 = vmatpush.msrb.mxu2 %v972_v16  ;;  %1581 = vmatpush.msrb.mxu3 %v1100_v35  ;;  %v1037_v3 = vld [vmem:[#allocation6 + $0x1298] sm:$0xff] }
 0x258   :  { %1601 = vmatpush.msra.mxu0 %v461_v17  ;;  %1621 = vmatpush.msra.mxu1 %v589_v36  ;;  %v956_v41 = vld [vmem:[#allocation6 + $0x1010] sm:$0xff]  ;;  %v1165_v4 = vld [vmem:[#allocation6 + $0x1698] sm:$0xff] }
 0x259   :  { %v1084_v42 = vld [vmem:[#allocation6 + $0x1410] sm:$0xff]  ;;  %1562 = vmatpush.msrb.mxu2 %v964_v37  ;;  %1582 = vmatpush.msrb.mxu3 %v1092_v38  ;;  %v773_v5 = vld [vmem:[#allocation6 + $0xa58] sm:$0xff] }
 0x25a   :  { %1602 = vmatpush.msra.mxu0 %v453_v39  ;;  %1622 = vmatpush.msra.mxu1 %v581_v40  ;;  %v901_v6 = vld [vmem:[#allocation6 + $0xe58] sm:$0xff] }
 0x25b   :  { %1563 = vmatpush.msrb.mxu2 %v956_v41  ;;  %1583 = vmatpush.msrb.mxu3 %v1084_v42  ;;  %v1029_v7 = vld [vmem:[#allocation6 + $0x1258] sm:$0xff] }
 0x25c   :  { %1603 = vmatpush.msra.mxu0 %v445_v45  ;;  %1623 = vmatpush.msra.mxu1 %v573_v46  ;;  %v1157_v10 = vld [vmem:[#allocation6 + $0x1658] sm:$0xff] }
 0x25d   :  { %1564 = vmatmul.f32.vlgmr.msrb.gmra.mxu2 %v2783_v43  ;;  %1584 = vmatmul.f32.vlgmr.msrb.gmra.mxu3 %v2786_v44  ;;  %v765_v11 = vld [vmem:[#allocation6 + $0xa18] sm:$0xff] }
 0x25e   :  { %1604 = vmatmul.f32.vlgmr.msra.gmra.mxu0 %v2767_v27  ;;  %1624 = vmatmul.f32.vlgmr.msra.gmra.mxu1 %v2770_v28  ;;  %v893_v12 = vld [vmem:[#allocation6 + $0xe18] sm:$0xff] }
 0x25f   :  { %1628 = vmatpush.msra.mxu2 %v821_v47  ;;  %1648 = vmatpush.msra.mxu3 %v949_v48  ;;  %v1021_v13 = vld [vmem:[#allocation6 + $0x1218] sm:$0xff] }
 0x260   :  { %1668 = vmatpush.msrb.mxu0 %v1077_v24  ;;  %1688 = vmatpush.msrb.mxu1 %v1205_v49  ;;  %v1149_v14 = vld [vmem:[#allocation6 + $0x1618] sm:$0xff] }
 0x261   :  { %1629 = vmatpush.msra.mxu2 %v813_v31  ;;  %1649 = vmatpush.msra.mxu3 %v941_v50  ;;  %v757_v15 = vld [vmem:[#allocation6 + $0x9d8] sm:$0xff] }
 0x262   :  { %1669 = vmatpush.msrb.mxu0 %v1069_v51  ;;  %1689 = vmatpush.msrb.mxu1 %v1197_v52  ;;  %v885_v18 = vld [vmem:[#allocation6 + $0xdd8] sm:$0xff]  ;;  %v566_v51 = vld [vmem:[#allocation6 + $0x3e0] sm:$0xff] }
 0x263   :  { %1630 = vmatpush.msra.mxu2 %v805_v53  ;;  %1650 = vmatpush.msra.mxu3 %v933_v54  ;;  %v1013_v19 = vld [vmem:[#allocation6 + $0x11d8] sm:$0xff]  ;;  %v694_v52 = vld [vmem:[#allocation6 + $0x7e0] sm:$0xff] }
 0x264   :  { %1670 = vmatpush.msrb.mxu0 %v1061_v55  ;;  %1690 = vmatpush.msrb.mxu1 %v1189_v56  ;;  %v1141_v20 = vld [vmem:[#allocation6 + $0x15d8] sm:$0xff]  ;;  %v822_v53 = vld [vmem:[#allocation6 + $0xbe0] sm:$0xff] }
 0x265   :  { %1631 = vmatpush.msra.mxu2 %v797_v57  ;;  %1651 = vmatpush.msra.mxu3 %v925_v58  ;;  %v749_v21 = vld [vmem:[#allocation6 + $0x998] sm:$0xff]  ;;  %v950_v54 = vld [vmem:[#allocation6 + $0xfe0] sm:$0xff] }
 0x266   :  { %1671 = vmatpush.msrb.mxu0 %v1053_v59  ;;  %1691 = vmatpush.msrb.mxu1 %v1181_v60  ;;  %v877_v22 = vld [vmem:[#allocation6 + $0xd98] sm:$0xff]  ;;  %v558_v55 = vld [vmem:[#allocation6 + $0x3a0] sm:$0xff] }
 0x267   :  { %1632 = vmatpush.msra.mxu2 %v789_v61  ;;  %1652 = vmatpush.msra.mxu3 %v917_v62  ;;  %v1005_v25 = vld [vmem:[#allocation6 + $0x1198] sm:$0xff]  ;;  %v686_v56 = vld [vmem:[#allocation6 + $0x7a0] sm:$0xff] }
 0x268   :  { %1672 = vmatpush.msrb.mxu0 %v1045_v63  ;;  %1692 = vmatpush.msrb.mxu1 %v1173_v0  ;;  %v1133_v26 = vld [vmem:[#allocation6 + $0x1598] sm:$0xff]  ;;  %v814_v57 = vld [vmem:[#allocation6 + $0xba0] sm:$0xff] }
 0x269   :  { %1633 = vmatpush.msra.mxu2 %v781_v1  ;;  %1653 = vmatpush.msra.mxu3 %v909_v2  ;;  %v741_v30 = vld [vmem:[#allocation6 + $0x958] sm:$0xff]  ;;  %v942_v58 = vld [vmem:[#allocation6 + $0xfa0] sm:$0xff] }
 0x26a   :  { %1673 = vmatpush.msrb.mxu0 %v1037_v3  ;;  %1693 = vmatpush.msrb.mxu1 %v1165_v4  ;;  %v869_v32 = vld [vmem:[#allocation6 + $0xd58] sm:$0xff]  ;;  %v550_v59 = vld [vmem:[#allocation6 + $0x360] sm:$0xff] }
 0x26b   :  { %1634 = vmatpush.msra.mxu2 %v773_v5  ;;  %1654 = vmatpush.msra.mxu3 %v901_v6  ;;  %v997_v33 = vld [vmem:[#allocation6 + $0x1158] sm:$0xff]  ;;  %v678_v60 = vld [vmem:[#allocation6 + $0x760] sm:$0xff] }
 0x26c   :  { %1674 = vmatpush.msrb.mxu0 %v1029_v7  ;;  %1694 = vmatpush.msrb.mxu1 %v1157_v10  ;;  %v1125_v34 = vld [vmem:[#allocation6 + $0x1558] sm:$0xff]  ;;  %v806_v61 = vld [vmem:[#allocation6 + $0xb60] sm:$0xff] }
 0x26d   :  { %1635 = vmatpush.msra.mxu2 %v765_v11  ;;  %1655 = vmatpush.msra.mxu3 %v893_v12  ;;  %v733_v9 = vld [vmem:[#allocation6 + $0x918] sm:$0xff]  ;;  %v934_v62 = vld [vmem:[#allocation6 + $0xf60] sm:$0xff] }
 0x26e   :  { %1675 = vmatpush.msrb.mxu0 %v1021_v13  ;;  %1695 = vmatpush.msrb.mxu1 %v1149_v14  ;;  %v861_v8 = vld [vmem:[#allocation6 + $0xd18] sm:$0xff]  ;;  %v542_v63 = vld [vmem:[#allocation6 + $0x320] sm:$0xff] }
 0x26f   :  { %1636 = vmatpush.msra.mxu2 %v757_v15  ;;  %1656 = vmatpush.msra.mxu3 %v885_v18  ;;  %v989_v16 = vld [vmem:[#allocation6 + $0x1118] sm:$0xff]  ;;  %v670_v0 = vld [vmem:[#allocation6 + $0x720] sm:$0xff] }
 0x270   :  { %1676 = vmatpush.msrb.mxu0 %v1013_v19  ;;  %1696 = vmatpush.msrb.mxu1 %v1141_v20  ;;  %v1117_v35 = vld [vmem:[#allocation6 + $0x1518] sm:$0xff]  ;;  %v798_v1 = vld [vmem:[#allocation6 + $0xb20] sm:$0xff] }
 0x271   :  { %1637 = vmatpush.msra.mxu2 %v749_v21  ;;  %1657 = vmatpush.msra.mxu3 %v877_v22  ;;  %v725_v17 = vld [vmem:[#allocation6 + $0x8d8] sm:$0xff]  ;;  %v926_v2 = vld [vmem:[#allocation6 + $0xf20] sm:$0xff] }
 0x272   :  { %1677 = vmatpush.msrb.mxu0 %v1005_v25  ;;  %1697 = vmatpush.msrb.mxu1 %v1133_v26  ;;  %v853_v36 = vld [vmem:[#allocation6 + $0xcd8] sm:$0xff]  ;;  %v534_v3 = vld [vmem:[#allocation6 + $0x2e0] sm:$0xff] }
 0x273   :  { %1638 = vmatpush.msra.mxu2 %v741_v30  ;;  %1658 = vmatpush.msra.mxu3 %v869_v32  ;;  %v981_v37 = vld [vmem:[#allocation6 + $0x10d8] sm:$0xff]  ;;  %v662_v4 = vld [vmem:[#allocation6 + $0x6e0] sm:$0xff] }
 0x274   :  { %1678 = vmatpush.msrb.mxu0 %v997_v33  ;;  %1698 = vmatpush.msrb.mxu1 %v1125_v34  ;;  %v1109_v38 = vld [vmem:[#allocation6 + $0x14d8] sm:$0xff]  ;;  %v790_v5 = vld [vmem:[#allocation6 + $0xae0] sm:$0xff] }
 0x275   :  { %1639 = vmatpush.msra.mxu2 %v733_v9  ;;  %1659 = vmatpush.msra.mxu3 %v861_v8  ;;  %v717_v39 = vld [vmem:[#allocation6 + $0x898] sm:$0xff]  ;;  %v918_v6 = vld [vmem:[#allocation6 + $0xee0] sm:$0xff] }
 0x276   :  { %1679 = vmatpush.msrb.mxu0 %v989_v16  ;;  %1699 = vmatpush.msrb.mxu1 %v1117_v35  ;;  %v845_v40 = vld [vmem:[#allocation6 + $0xc98] sm:$0xff]  ;;  %v526_v7 = vld [vmem:[#allocation6 + $0x2a0] sm:$0xff] }
 0x277   :  { %1640 = vmatpush.msra.mxu2 %v725_v17  ;;  %1660 = vmatpush.msra.mxu3 %v853_v36  ;;  %v973_v41 = vld [vmem:[#allocation6 + $0x1098] sm:$0xff]  ;;  %v654_v10 = vld [vmem:[#allocation6 + $0x6a0] sm:$0xff] }
 0x278   :  { %v1101_v42 = vld [vmem:[#allocation6 + $0x1498] sm:$0xff]  ;;  %1680 = vmatpush.msrb.mxu0 %v981_v37  ;;  %1700 = vmatpush.msrb.mxu1 %v1109_v38  ;;  %v782_v11 = vld [vmem:[#allocation6 + $0xaa0] sm:$0xff] }
 0x279   :  { %v709_v45 = vld [vmem:[#allocation6 + $0x858] sm:$0xff]  ;;  %1641 = vmatpush.msra.mxu2 %v717_v39  ;;  %1661 = vmatpush.msra.mxu3 %v845_v40  ;;  %v910_v12 = vld [vmem:[#allocation6 + $0xea0] sm:$0xff] }
 0x27a   :  { %v837_v46 = vld [vmem:[#allocation6 + $0xc58] sm:$0xff]  ;;  %1681 = vmatpush.msrb.mxu0 %v973_v41  ;;  %1701 = vmatpush.msrb.mxu1 %v1101_v42  ;;  %v518_v13 = vld [vmem:[#allocation6 + $0x260] sm:$0xff] }
 0x27b   :  { %v965_v47 = vld [vmem:[#allocation6 + $0x1058] sm:$0xff]  ;;  %1642 = vmatpush.msra.mxu2 %v709_v45  ;;  %1662 = vmatpush.msra.mxu3 %v837_v46  ;;  %v646_v14 = vld [vmem:[#allocation6 + $0x660] sm:$0xff] }
 0x27c   :  { %v1093_v48 = vld [vmem:[#allocation6 + $0x1458] sm:$0xff]  ;;  %1682 = vmatpush.msrb.mxu0 %v965_v47  ;;  %v774_v15 = vld [vmem:[#allocation6 + $0xa60] sm:$0xff] }
 0x27d   :  { %v701_v24 = vld [vmem:[#allocation6 + $0x818] sm:$0xff]  ;;  %1702 = vmatpush.msrb.mxu1 %v1093_v48  ;;  %v902_v18 = vld [vmem:[#allocation6 + $0xe60] sm:$0xff] }
 0x27e   :  { %v829_v49 = vld [vmem:[#allocation6 + $0xc18] sm:$0xff]  ;;  %1643 = vmatpush.msra.mxu2 %v701_v24  ;;  %v510_v19 = vld [vmem:[#allocation6 + $0x220] sm:$0xff] }
 0x27f   :  { %v957_v31 = vld [vmem:[#allocation6 + $0x1018] sm:$0xff]  ;;  %1663 = vmatpush.msra.mxu3 %v829_v49  ;;  %1644 = vmatmul.f32.vlgmr.msra.gmra.mxu2 %v2773_v29  ;;  %v638_v20 = vld [vmem:[#allocation6 + $0x620] sm:$0xff] }
 0x280   :  { %v1085_v50 = vld [vmem:[#allocation6 + $0x1418] sm:$0xff]  ;;  %1683 = vmatpush.msrb.mxu0 %v957_v31  ;;  %1664 = vmatmul.f32.vlgmr.msra.gmra.mxu3 %v2776_v23  ;;  %v766_v21 = vld [vmem:[#allocation6 + $0xa20] sm:$0xff] }
 0x281   :  { %1703 = vmatpush.msrb.mxu1 %v1085_v50  ;;  %1684 = vmatmul.f32.vlgmr.msrb.gmra.mxu0 %v2783_v43  ;;  %v894_v22 = vld [vmem:[#allocation6 + $0xe20] sm:$0xff] }
 0x282   :  { %1704 = vmatmul.f32.vlgmr.msrb.gmra.mxu1 %v2786_v44  ;;  %1708 = vmatpush.msrb.mxu2 %v566_v51  ;;  %v502_v25 = vld [vmem:[#allocation6 + $0x1e0] sm:$0xff] }
 0x283   :  { %1728 = vmatpush.msrb.mxu3 %v694_v52  ;;  %1748 = vmatpush.msra.mxu0 %v822_v53  ;;  %v630_v26 = vld [vmem:[#allocation6 + $0x5e0] sm:$0xff] }
 0x284   :  { %1768 = vmatpush.msra.mxu1 %v950_v54  ;;  %1709 = vmatpush.msrb.mxu2 %v558_v55  ;;  %v758_v30 = vld [vmem:[#allocation6 + $0x9e0] sm:$0xff] }
 0x285   :  { %1729 = vmatpush.msrb.mxu3 %v686_v56  ;;  %1749 = vmatpush.msra.mxu0 %v814_v57  ;;  %v886_v32 = vld [vmem:[#allocation6 + $0xde0] sm:$0xff] }
 0x286   :  { %1769 = vmatpush.msra.mxu1 %v942_v58  ;;  %1710 = vmatpush.msrb.mxu2 %v550_v59  ;;  %v494_v33 = vld [vmem:[#allocation6 + $0x1a0] sm:$0xff]  ;;  %v567_v59 = vld [vmem:[#allocation6 + $0x3e8] sm:$0xff] }
 0x287   :  { %1730 = vmatpush.msrb.mxu3 %v678_v60  ;;  %1750 = vmatpush.msra.mxu0 %v806_v61  ;;  %v622_v34 = vld [vmem:[#allocation6 + $0x5a0] sm:$0xff]  ;;  %v695_v60 = vld [vmem:[#allocation6 + $0x7e8] sm:$0xff] }
 0x288   :  { %1770 = vmatpush.msra.mxu1 %v934_v62  ;;  %1711 = vmatpush.msrb.mxu2 %v542_v63  ;;  %v750_v9 = vld [vmem:[#allocation6 + $0x9a0] sm:$0xff]  ;;  %v559_v63 = vld [vmem:[#allocation6 + $0x3a8] sm:$0xff] }
 0x289   :  { %1731 = vmatpush.msrb.mxu3 %v670_v0  ;;  %1751 = vmatpush.msra.mxu0 %v798_v1  ;;  %v878_v8 = vld [vmem:[#allocation6 + $0xda0] sm:$0xff]  ;;  %v687_v0 = vld [vmem:[#allocation6 + $0x7a8] sm:$0xff] }
 0x28a   :  { %1771 = vmatpush.msra.mxu1 %v926_v2  ;;  %1712 = vmatpush.msrb.mxu2 %v534_v3  ;;  %v486_v16 = vld [vmem:[#allocation6 + $0x160] sm:$0xff]  ;;  %v551_v3 = vld [vmem:[#allocation6 + $0x368] sm:$0xff] }
 0x28b   :  { %1732 = vmatpush.msrb.mxu3 %v662_v4  ;;  %1752 = vmatpush.msra.mxu0 %v790_v5  ;;  %v614_v35 = vld [vmem:[#allocation6 + $0x560] sm:$0xff]  ;;  %v679_v4 = vld [vmem:[#allocation6 + $0x768] sm:$0xff] }
 0x28c   :  { %1772 = vmatpush.msra.mxu1 %v918_v6  ;;  %1713 = vmatpush.msrb.mxu2 %v526_v7  ;;  %v742_v17 = vld [vmem:[#allocation6 + $0x960] sm:$0xff]  ;;  %v543_v7 = vld [vmem:[#allocation6 + $0x328] sm:$0xff] }
 0x28d   :  { %1733 = vmatpush.msrb.mxu3 %v654_v10  ;;  %1753 = vmatpush.msra.mxu0 %v782_v11  ;;  %v870_v36 = vld [vmem:[#allocation6 + $0xd60] sm:$0xff]  ;;  %v671_v10 = vld [vmem:[#allocation6 + $0x728] sm:$0xff] }
 0x28e   :  { %1773 = vmatpush.msra.mxu1 %v910_v12  ;;  %1714 = vmatpush.msrb.mxu2 %v518_v13  ;;  %v478_v37 = vld [vmem:[#allocation6 + $0x120] sm:$0xff]  ;;  %v535_v13 = vld [vmem:[#allocation6 + $0x2e8] sm:$0xff] }
 0x28f   :  { %1734 = vmatpush.msrb.mxu3 %v646_v14  ;;  %1754 = vmatpush.msra.mxu0 %v774_v15  ;;  %v606_v38 = vld [vmem:[#allocation6 + $0x520] sm:$0xff]  ;;  %v663_v14 = vld [vmem:[#allocation6 + $0x6e8] sm:$0xff] }
 0x290   :  { %1774 = vmatpush.msra.mxu1 %v902_v18  ;;  %1715 = vmatpush.msrb.mxu2 %v510_v19  ;;  %v734_v39 = vld [vmem:[#allocation6 + $0x920] sm:$0xff]  ;;  %v527_v19 = vld [vmem:[#allocation6 + $0x2a8] sm:$0xff] }
 0x291   :  { %1735 = vmatpush.msrb.mxu3 %v638_v20  ;;  %1755 = vmatpush.msra.mxu0 %v766_v21  ;;  %v862_v40 = vld [vmem:[#allocation6 + $0xd20] sm:$0xff]  ;;  %v655_v20 = vld [vmem:[#allocation6 + $0x6a8] sm:$0xff] }
 0x292   :  { %1775 = vmatpush.msra.mxu1 %v894_v22  ;;  %1716 = vmatpush.msrb.mxu2 %v502_v25  ;;  %v470_v41 = vld [vmem:[#allocation6 + $0xe0] sm:$0xff]  ;;  %v519_v25 = vld [vmem:[#allocation6 + $0x268] sm:$0xff] }
 0x293   :  { %1736 = vmatpush.msrb.mxu3 %v630_v26  ;;  %1756 = vmatpush.msra.mxu0 %v758_v30  ;;  %v598_v42 = vld [vmem:[#allocation6 + $0x4e0] sm:$0xff]  ;;  %v647_v26 = vld [vmem:[#allocation6 + $0x668] sm:$0xff] }
 0x294   :  { %1776 = vmatpush.msra.mxu1 %v886_v32  ;;  %1717 = vmatpush.msrb.mxu2 %v494_v33  ;;  %v726_v45 = vld [vmem:[#allocation6 + $0x8e0] sm:$0xff]  ;;  %v511_v33 = vld [vmem:[#allocation6 + $0x228] sm:$0xff] }
 0x295   :  { %1737 = vmatpush.msrb.mxu3 %v622_v34  ;;  %1757 = vmatpush.msra.mxu0 %v750_v9  ;;  %v854_v46 = vld [vmem:[#allocation6 + $0xce0] sm:$0xff]  ;;  %v639_v34 = vld [vmem:[#allocation6 + $0x628] sm:$0xff] }
 0x296   :  { %1777 = vmatpush.msra.mxu1 %v878_v8  ;;  %1718 = vmatpush.msrb.mxu2 %v486_v16  ;;  %v462_v47 = vld [vmem:[#allocation6 + $0xa0] sm:$0xff]  ;;  %v503_v16 = vld [vmem:[#allocation6 + $0x1e8] sm:$0xff] }
 0x297   :  { %1738 = vmatpush.msrb.mxu3 %v614_v35  ;;  %1758 = vmatpush.msra.mxu0 %v742_v17  ;;  %v590_v48 = vld [vmem:[#allocation6 + $0x4a0] sm:$0xff]  ;;  %v631_v35 = vld [vmem:[#allocation6 + $0x5e8] sm:$0xff] }
 0x298   :  { %1778 = vmatpush.msra.mxu1 %v870_v36  ;;  %1719 = vmatpush.msrb.mxu2 %v478_v37  ;;  %v718_v24 = vld [vmem:[#allocation6 + $0x8a0] sm:$0xff]  ;;  %v495_v37 = vld [vmem:[#allocation6 + $0x1a8] sm:$0xff] }
 0x299   :  { %1739 = vmatpush.msrb.mxu3 %v606_v38  ;;  %1759 = vmatpush.msra.mxu0 %v734_v39  ;;  %v846_v49 = vld [vmem:[#allocation6 + $0xca0] sm:$0xff]  ;;  %v623_v38 = vld [vmem:[#allocation6 + $0x5a8] sm:$0xff] }
 0x29a   :  { %1779 = vmatpush.msra.mxu1 %v862_v40  ;;  %1720 = vmatpush.msrb.mxu2 %v470_v41  ;;  %v454_v31 = vld [vmem:[#allocation6 + $0x60] sm:$0xff]  ;;  %v487_v41 = vld [vmem:[#allocation6 + $0x168] sm:$0xff] }
 0x29b   :  { %1740 = vmatpush.msrb.mxu3 %v598_v42  ;;  %1760 = vmatpush.msra.mxu0 %v726_v45  ;;  %v582_v50 = vld [vmem:[#allocation6 + $0x460] sm:$0xff]  ;;  %v615_v42 = vld [vmem:[#allocation6 + $0x568] sm:$0xff] }
 0x29c   :  { %1780 = vmatpush.msra.mxu1 %v854_v46  ;;  %1721 = vmatpush.msrb.mxu2 %v462_v47  ;;  %v710_v51 = vld [vmem:[#allocation6 + $0x860] sm:$0xff]  ;;  %v479_v47 = vld [vmem:[#allocation6 + $0x128] sm:$0xff] }
 0x29d   :  { %1741 = vmatpush.msrb.mxu3 %v590_v48  ;;  %v838_v52 = vld [vmem:[#allocation6 + $0xc60] sm:$0xff]  ;;  %1761 = vmatpush.msra.mxu0 %v718_v24  ;;  %v607_v48 = vld [vmem:[#allocation6 + $0x528] sm:$0xff] }
 0x29e   :  { %1781 = vmatpush.msra.mxu1 %v846_v49  ;;  %v446_v53 = vld [vmem:[#allocation6 + $0x20] sm:$0xff]  ;;  %1722 = vmatpush.msrb.mxu2 %v454_v31  ;;  %v471_v31 = vld [vmem:[#allocation6 + $0xe8] sm:$0xff] }
 0x29f   :  { %v574_v54 = vld [vmem:[#allocation6 + $0x420] sm:$0xff]  ;;  %1742 = vmatpush.msrb.mxu3 %v582_v50  ;;  %1762 = vmatpush.msra.mxu0 %v710_v51  ;;  %v599_v50 = vld [vmem:[#allocation6 + $0x4e8] sm:$0xff] }
 0x2a0   :  { %v702_v55 = vld [vmem:[#allocation6 + $0x820] sm:$0xff]  ;;  %1782 = vmatpush.msra.mxu1 %v838_v52  ;;  %1723 = vmatpush.msrb.mxu2 %v446_v53  ;;  %v463_v53 = vld [vmem:[#allocation6 + $0xa8] sm:$0xff] }
 0x2a1   :  { %v830_v56 = vld [vmem:[#allocation6 + $0xc20] sm:$0xff]  ;;  %1743 = vmatpush.msrb.mxu3 %v574_v54  ;;  %1763 = vmatpush.msra.mxu0 %v702_v55  ;;  %v591_v54 = vld [vmem:[#allocation6 + $0x4a8] sm:$0xff] }
 0x2a2   :  { %1783 = vmatpush.msra.mxu1 %v830_v56  ;;  %v1078_v57 = vld [vmem:[#allocation6 + $0x13e0] sm:$0xff]  ;;  %1724 = vmatmul.f32.vlgmr.msrb.gmra.mxu2 %v2767_v27 }
 0x2a3   :  { %v1206_v58 = vld [vmem:[#allocation6 + $0x17e0] sm:$0xff]  ;;  %1744 = vmatmul.f32.vlgmr.msrb.gmra.mxu3 %v2770_v28  ;;  %1764 = vmatmul.f32.vlgmr.msra.gmra.mxu0 %v2773_v29 }
 0x2a4   :  { %1784 = vmatmul.f32.vlgmr.msra.gmra.mxu1 %v2776_v23  ;;  %v1070_v61 = vld [vmem:[#allocation6 + $0x13a0] sm:$0xff]  ;;  %1788 = vmatpush.msra.mxu2 %v1078_v57  ;;  %v455_v57 = vld [vmem:[#allocation6 + $0x68] sm:$0xff] }
 0x2a5   :  { %v1198_v62 = vld [vmem:[#allocation6 + $0x17a0] sm:$0xff]  ;;  %1808 = vmatpush.msra.mxu3 %v1206_v58  ;;  %1828 = vmatpush.msrb.mxu0 %v567_v59  ;;  %v583_v58 = vld [vmem:[#allocation6 + $0x468] sm:$0xff] }
 0x2a6   :  { %1848 = vmatpush.msrb.mxu1 %v695_v60  ;;  %v1062_v1 = vld [vmem:[#allocation6 + $0x1360] sm:$0xff]  ;;  %1789 = vmatpush.msra.mxu2 %v1070_v61  ;;  %v447_v61 = vld [vmem:[#allocation6 + $0x28] sm:$0xff] }
 0x2a7   :  { %v1190_v2 = vld [vmem:[#allocation6 + $0x1760] sm:$0xff]  ;;  %1809 = vmatpush.msra.mxu3 %v1198_v62  ;;  %1829 = vmatpush.msrb.mxu0 %v559_v63  ;;  %v575_v62 = vld [vmem:[#allocation6 + $0x428] sm:$0xff] }
 0x2a8   :  { %1849 = vmatpush.msrb.mxu1 %v687_v0  ;;  %v1054_v5 = vld [vmem:[#allocation6 + $0x1320] sm:$0xff]  ;;  %1790 = vmatpush.msra.mxu2 %v1062_v1  ;;  %v823_v63 = vld [vmem:[#allocation6 + $0xbe8] sm:$0xff] }
 0x2a9   :  { %v1182_v6 = vld [vmem:[#allocation6 + $0x1720] sm:$0xff]  ;;  %1810 = vmatpush.msra.mxu3 %v1190_v2  ;;  %1830 = vmatpush.msrb.mxu0 %v551_v3  ;;  %v951_v0 = vld [vmem:[#allocation6 + $0xfe8] sm:$0xff] }
 0x2aa   :  { %1850 = vmatpush.msrb.mxu1 %v679_v4  ;;  %v1046_v11 = vld [vmem:[#allocation6 + $0x12e0] sm:$0xff]  ;;  %1791 = vmatpush.msra.mxu2 %v1054_v5  ;;  %v1079_v1 = vld [vmem:[#allocation6 + $0x13e8] sm:$0xff] }
 0x2ab   :  { %v1174_v12 = vld [vmem:[#allocation6 + $0x16e0] sm:$0xff]  ;;  %1811 = vmatpush.msra.mxu3 %v1182_v6  ;;  %1831 = vmatpush.msrb.mxu0 %v543_v7  ;;  %v1207_v2 = vld [vmem:[#allocation6 + $0x17e8] sm:$0xff] }
 0x2ac   :  { %1851 = vmatpush.msrb.mxu1 %v671_v10  ;;  %v1038_v15 = vld [vmem:[#allocation6 + $0x12a0] sm:$0xff]  ;;  %1792 = vmatpush.msra.mxu2 %v1046_v11  ;;  %v815_v3 = vld [vmem:[#allocation6 + $0xba8] sm:$0xff] }
 0x2ad   :  { %v1166_v18 = vld [vmem:[#allocation6 + $0x16a0] sm:$0xff]  ;;  %1812 = vmatpush.msra.mxu3 %v1174_v12  ;;  %1832 = vmatpush.msrb.mxu0 %v535_v13  ;;  %v943_v4 = vld [vmem:[#allocation6 + $0xfa8] sm:$0xff] }
 0x2ae   :  { %1852 = vmatpush.msrb.mxu1 %v663_v14  ;;  %v1030_v21 = vld [vmem:[#allocation6 + $0x1260] sm:$0xff]  ;;  %1793 = vmatpush.msra.mxu2 %v1038_v15  ;;  %v1071_v5 = vld [vmem:[#allocation6 + $0x13a8] sm:$0xff] }
 0x2af   :  { %v1158_v22 = vld [vmem:[#allocation6 + $0x1660] sm:$0xff]  ;;  %1813 = vmatpush.msra.mxu3 %v1166_v18  ;;  %1833 = vmatpush.msrb.mxu0 %v527_v19  ;;  %v1199_v6 = vld [vmem:[#allocation6 + $0x17a8] sm:$0xff] }
 0x2b0   :  { %1853 = vmatpush.msrb.mxu1 %v655_v20  ;;  %v1022_v30 = vld [vmem:[#allocation6 + $0x1220] sm:$0xff]  ;;  %1794 = vmatpush.msra.mxu2 %v1030_v21  ;;  %v807_v7 = vld [vmem:[#allocation6 + $0xb68] sm:$0xff] }
 0x2b1   :  { %v1150_v32 = vld [vmem:[#allocation6 + $0x1620] sm:$0xff]  ;;  %1814 = vmatpush.msra.mxu3 %v1158_v22  ;;  %1834 = vmatpush.msrb.mxu0 %v519_v25  ;;  %v935_v10 = vld [vmem:[#allocation6 + $0xf68] sm:$0xff] }
 0x2b2   :  { %1854 = vmatpush.msrb.mxu1 %v647_v26  ;;  %v1014_v9 = vld [vmem:[#allocation6 + $0x11e0] sm:$0xff]  ;;  %1795 = vmatpush.msra.mxu2 %v1022_v30  ;;  %v1063_v11 = vld [vmem:[#allocation6 + $0x1368] sm:$0xff] }
 0x2b3   :  { %v1142_v8 = vld [vmem:[#allocation6 + $0x15e0] sm:$0xff]  ;;  %1815 = vmatpush.msra.mxu3 %v1150_v32  ;;  %1835 = vmatpush.msrb.mxu0 %v511_v33  ;;  %v1191_v12 = vld [vmem:[#allocation6 + $0x1768] sm:$0xff] }
 0x2b4   :  { %1855 = vmatpush.msrb.mxu1 %v639_v34  ;;  %v1006_v17 = vld [vmem:[#allocation6 + $0x11a0] sm:$0xff]  ;;  %1796 = vmatpush.msra.mxu2 %v1014_v9  ;;  %v799_v13 = vld [vmem:[#allocation6 + $0xb28] sm:$0xff] }
 0x2b5   :  { %v1134_v36 = vld [vmem:[#allocation6 + $0x15a0] sm:$0xff]  ;;  %1816 = vmatpush.msra.mxu3 %v1142_v8  ;;  %1836 = vmatpush.msrb.mxu0 %v503_v16  ;;  %v927_v14 = vld [vmem:[#allocation6 + $0xf28] sm:$0xff] }
 0x2b6   :  { %1856 = vmatpush.msrb.mxu1 %v631_v35  ;;  %v998_v39 = vld [vmem:[#allocation6 + $0x1160] sm:$0xff]  ;;  %1797 = vmatpush.msra.mxu2 %v1006_v17  ;;  %v1055_v15 = vld [vmem:[#allocation6 + $0x1328] sm:$0xff] }
 0x2b7   :  { %v1126_v40 = vld [vmem:[#allocation6 + $0x1560] sm:$0xff]  ;;  %1817 = vmatpush.msra.mxu3 %v1134_v36  ;;  %1837 = vmatpush.msrb.mxu0 %v495_v37  ;;  %v1183_v18 = vld [vmem:[#allocation6 + $0x1728] sm:$0xff] }
 0x2b8   :  { %1857 = vmatpush.msrb.mxu1 %v623_v38  ;;  %v990_v45 = vld [vmem:[#allocation6 + $0x1120] sm:$0xff]  ;;  %1798 = vmatpush.msra.mxu2 %v998_v39  ;;  %v791_v19 = vld [vmem:[#allocation6 + $0xae8] sm:$0xff] }
 0x2b9   :  { %v1118_v46 = vld [vmem:[#allocation6 + $0x1520] sm:$0xff]  ;;  %1818 = vmatpush.msra.mxu3 %v1126_v40  ;;  %1838 = vmatpush.msrb.mxu0 %v487_v41  ;;  %v919_v20 = vld [vmem:[#allocation6 + $0xee8] sm:$0xff] }
 0x2ba   :  { %1858 = vmatpush.msrb.mxu1 %v615_v42  ;;  %v982_v24 = vld [vmem:[#allocation6 + $0x10e0] sm:$0xff]  ;;  %1799 = vmatpush.msra.mxu2 %v990_v45  ;;  %v1047_v21 = vld [vmem:[#allocation6 + $0x12e8] sm:$0xff] }
 0x2bb   :  { %v1110_v49 = vld [vmem:[#allocation6 + $0x14e0] sm:$0xff]  ;;  %1819 = vmatpush.msra.mxu3 %v1118_v46  ;;  %1839 = vmatpush.msrb.mxu0 %v479_v47  ;;  %v1175_v22 = vld [vmem:[#allocation6 + $0x16e8] sm:$0xff] }
 0x2bc   :  { %1859 = vmatpush.msrb.mxu1 %v607_v48  ;;  %v974_v51 = vld [vmem:[#allocation6 + $0x10a0] sm:$0xff]  ;;  %1800 = vmatpush.msra.mxu2 %v982_v24  ;;  %v783_v25 = vld [vmem:[#allocation6 + $0xaa8] sm:$0xff] }
 0x2bd   :  { %v1102_v52 = vld [vmem:[#allocation6 + $0x14a0] sm:$0xff]  ;;  %1820 = vmatpush.msra.mxu3 %v1110_v49  ;;  %1840 = vmatpush.msrb.mxu0 %v471_v31  ;;  %v911_v26 = vld [vmem:[#allocation6 + $0xea8] sm:$0xff]  ;;  %v2816_v31 = vpop.f32.mrf.mxu0 }
 0x2be   :  { %1860 = vmatpush.msrb.mxu1 %v599_v50  ;;  %v966_v55 = vld [vmem:[#allocation6 + $0x1060] sm:$0xff]  ;;  %1801 = vmatpush.msra.mxu2 %v974_v51  ;;  %v1039_v30 = vld [vmem:[#allocation6 + $0x12a8] sm:$0xff]  ;;  %v2818_v50 = vpop.f32.mrf.mxu2 }
 0x2bf   :  { %v1094_v56 = vld [vmem:[#allocation6 + $0x1460] sm:$0xff]  ;;  %1821 = vmatpush.msra.mxu3 %v1102_v52  ;;  %1841 = vmatpush.msrb.mxu0 %v463_v53  ;;  %v1167_v32 = vld [vmem:[#allocation6 + $0x16a8] sm:$0xff] }
 0x2c0   :  { %1861 = vmatpush.msrb.mxu1 %v591_v54  ;;  %v958_v59 = vld [vmem:[#allocation6 + $0x1020] sm:$0xff]  ;;  %1802 = vmatpush.msra.mxu2 %v966_v55  ;;  %v775_v33 = vld [vmem:[#allocation6 + $0xa68] sm:$0xff]  ;;  %v2820_v55 = vpop.f32.mrf.mxu3 }
 0x2c1   :  { %v1086_v60 = vld [vmem:[#allocation6 + $0x1420] sm:$0xff]  ;;  %1822 = vmatpush.msra.mxu3 %v1094_v56  ;;  %1842 = vmatpush.msrb.mxu0 %v455_v57  ;;  %v903_v34 = vld [vmem:[#allocation6 + $0xe68] sm:$0xff] }
 0x2c2   :  { %1862 = vmatpush.msrb.mxu1 %v583_v58  ;;  %1803 = vmatpush.msra.mxu2 %v958_v59  ;;  %v1031_v9 = vld [vmem:[#allocation6 + $0x1268] sm:$0xff] }
 0x2c3   :  { %1823 = vmatpush.msra.mxu3 %v1086_v60  ;;  %1843 = vmatpush.msrb.mxu0 %v447_v61  ;;  %v1159_v8 = vld [vmem:[#allocation6 + $0x1668] sm:$0xff] }
 0x2c4   :  { %1863 = vmatpush.msrb.mxu1 %v575_v62  ;;  %1804 = vmatmul.f32.vlgmr.msra.gmra.mxu2 %v2783_v43  ;;  %v767_v16 = vld [vmem:[#allocation6 + $0xa28] sm:$0xff] }
 0x2c5   :  { %1824 = vmatmul.f32.vlgmr.msra.gmra.mxu3 %v2786_v44  ;;  %1844 = vmatmul.f32.vlgmr.msrb.gmra.mxu0 %v2767_v27  ;;  %v895_v35 = vld [vmem:[#allocation6 + $0xe28] sm:$0xff] }
 0x2c6   :  { %1864 = vmatmul.f32.vlgmr.msrb.gmra.mxu1 %v2770_v28  ;;  %1868 = vmatpush.msrb.mxu2 %v823_v63  ;;  %v1023_v17 = vld [vmem:[#allocation6 + $0x1228] sm:$0xff] }
 0x2c7   :  { %1888 = vmatpush.msrb.mxu3 %v951_v0  ;;  %1908 = vmatpush.msra.mxu0 %v1079_v1  ;;  %v1151_v36 = vld [vmem:[#allocation6 + $0x1628] sm:$0xff]  ;;  %v2822_v0 = vpop.f32.mrf.mxu1 }
 0x2c8   :  { %1928 = vmatpush.msra.mxu1 %v1207_v2  ;;  %1869 = vmatpush.msrb.mxu2 %v815_v3  ;;  %v759_v37 = vld [vmem:[#allocation6 + $0x9e8] sm:$0xff] }
 0x2c9   :  { %1889 = vmatpush.msrb.mxu3 %v943_v4  ;;  %1909 = vmatpush.msra.mxu0 %v1071_v5  ;;  %v887_v38 = vld [vmem:[#allocation6 + $0xde8] sm:$0xff] }
 0x2ca   :  { %1929 = vmatpush.msra.mxu1 %v1199_v6  ;;  %1870 = vmatpush.msrb.mxu2 %v807_v7  ;;  %v1015_v39 = vld [vmem:[#allocation6 + $0x11e8] sm:$0xff] }
 0x2cb   :  { %1890 = vmatpush.msrb.mxu3 %v935_v10  ;;  %1910 = vmatpush.msra.mxu0 %v1063_v11  ;;  %v1143_v40 = vld [vmem:[#allocation6 + $0x15e8] sm:$0xff]  ;;  %v2824_v11 = vpop.f32.mrf.mxu0 }
 0x2cc   :  { %1930 = vmatpush.msra.mxu1 %v1191_v12  ;;  %1871 = vmatpush.msrb.mxu2 %v799_v13  ;;  %v751_v41 = vld [vmem:[#allocation6 + $0x9a8] sm:$0xff]  ;;  %v2826_v12 = vpop.f32.mrf.mxu2  ;;  %v2828_v13 = vpop.f32.mrf.mxu3 }
 0x2cd   :  { %1891 = vmatpush.msrb.mxu3 %v927_v14  ;;  %1911 = vmatpush.msra.mxu0 %v1055_v15  ;;  %v879_v42 = vld [vmem:[#allocation6 + $0xda8] sm:$0xff]  ;;  %v568_v14 = vld [vmem:[#allocation6 + $0x3f0] sm:$0xff] }
 0x2ce   :  { %1931 = vmatpush.msra.mxu1 %v1183_v18  ;;  %1872 = vmatpush.msrb.mxu2 %v791_v19  ;;  %v1007_v45 = vld [vmem:[#allocation6 + $0x11a8] sm:$0xff]  ;;  %v696_v15 = vld [vmem:[#allocation6 + $0x7f0] sm:$0xff] }
 0x2cf   :  { %1892 = vmatpush.msrb.mxu3 %v919_v20  ;;  %1912 = vmatpush.msra.mxu0 %v1047_v21  ;;  %v1135_v46 = vld [vmem:[#allocation6 + $0x15a8] sm:$0xff]  ;;  %v824_v18 = vld [vmem:[#allocation6 + $0xbf0] sm:$0xff] }
 0x2d0   :  { %1932 = vmatpush.msra.mxu1 %v1175_v22  ;;  %1873 = vmatpush.msrb.mxu2 %v783_v25  ;;  %v743_v47 = vld [vmem:[#allocation6 + $0x968] sm:$0xff]  ;;  %v952_v19 = vld [vmem:[#allocation6 + $0xff0] sm:$0xff] }
 0x2d1   :  { %1893 = vmatpush.msrb.mxu3 %v911_v26  ;;  %1913 = vmatpush.msra.mxu0 %v1039_v30  ;;  %v871_v48 = vld [vmem:[#allocation6 + $0xd68] sm:$0xff]  ;;  %v560_v20 = vld [vmem:[#allocation6 + $0x3b0] sm:$0xff]  ;;  %v2834_v26 = vpop.f32.mrf.mxu1 }
 0x2d2   :  { %1933 = vmatpush.msra.mxu1 %v1167_v32  ;;  %1874 = vmatpush.msrb.mxu2 %v775_v33  ;;  %v999_v24 = vld [vmem:[#allocation6 + $0x1168] sm:$0xff]  ;;  %v688_v21 = vld [vmem:[#allocation6 + $0x7b0] sm:$0xff] }
 0x2d3   :  { %1894 = vmatpush.msrb.mxu3 %v903_v34  ;;  %1914 = vmatpush.msra.mxu0 %v1031_v9  ;;  %v1127_v49 = vld [vmem:[#allocation6 + $0x1568] sm:$0xff]  ;;  %v816_v22 = vld [vmem:[#allocation6 + $0xbb0] sm:$0xff]  ;;  %v2836_v9 = vpop.f32.mrf.mxu0 }
 0x2d4   :  { %1934 = vmatpush.msra.mxu1 %v1159_v8  ;;  %1875 = vmatpush.msrb.mxu2 %v767_v16  ;;  %v735_v51 = vld [vmem:[#allocation6 + $0x928] sm:$0xff]  ;;  %v944_v25 = vld [vmem:[#allocation6 + $0xfb0] sm:$0xff]  ;;  %v2838_v8 = vpop.f32.mrf.mxu2 }
 0x2d5   :  { %1895 = vmatpush.msrb.mxu3 %v895_v35  ;;  %1915 = vmatpush.msra.mxu0 %v1023_v17  ;;  %v863_v52 = vld [vmem:[#allocation6 + $0xd28] sm:$0xff]  ;;  %v552_v30 = vld [vmem:[#allocation6 + $0x370] sm:$0xff] }
 0x2d6   :  { %1935 = vmatpush.msra.mxu1 %v1151_v36  ;;  %1876 = vmatpush.msrb.mxu2 %v759_v37  ;;  %v991_v53 = vld [vmem:[#allocation6 + $0x1128] sm:$0xff]  ;;  %v680_v32 = vld [vmem:[#allocation6 + $0x770] sm:$0xff]  ;;  %v2840_v37 = vpop.f32.mrf.mxu3 }
 0x2d7   :  { %1896 = vmatpush.msrb.mxu3 %v887_v38  ;;  %1916 = vmatpush.msra.mxu0 %v1015_v39  ;;  %v1119_v54 = vld [vmem:[#allocation6 + $0x1528] sm:$0xff]  ;;  %v808_v33 = vld [vmem:[#allocation6 + $0xb70] sm:$0xff] }
 0x2d8   :  { %1936 = vmatpush.msra.mxu1 %v1143_v40  ;;  %1877 = vmatpush.msrb.mxu2 %v751_v41  ;;  %v727_v56 = vld [vmem:[#allocation6 + $0x8e8] sm:$0xff]  ;;  %v936_v34 = vld [vmem:[#allocation6 + $0xf70] sm:$0xff] }
 0x2d9   :  { %1897 = vmatpush.msrb.mxu3 %v879_v42  ;;  %1917 = vmatpush.msra.mxu0 %v1007_v45  ;;  %v855_v57 = vld [vmem:[#allocation6 + $0xce8] sm:$0xff]  ;;  %v544_v16 = vld [vmem:[#allocation6 + $0x330] sm:$0xff]  ;;  %v2842_v42 = vld [vmem:[#allocation8] sm:$0xff] }
 0x2da   :  { %1937 = vmatpush.msra.mxu1 %v1135_v46  ;;  %1878 = vmatpush.msrb.mxu2 %v743_v47  ;;  %v983_v58 = vld [vmem:[#allocation6 + $0x10e8] sm:$0xff]  ;;  %v672_v35 = vld [vmem:[#allocation6 + $0x730] sm:$0xff]  ;;  %v1213_v47 = vperm.slane %v2842_v42, 1 }
 0x2db   :  { %1898 = vmatpush.msrb.mxu3 %v871_v48  ;;  %1918 = vmatpush.msra.mxu0 %v999_v24  ;;  %v1111_v59 = vld [vmem:[#allocation6 + $0x14e8] sm:$0xff]  ;;  %v800_v17 = vld [vmem:[#allocation6 + $0xb30] sm:$0xff] }
 0x2dc   :  { %1938 = vmatpush.msra.mxu1 %v1127_v49  ;;  %1879 = vmatpush.msrb.mxu2 %v735_v51  ;;  %v719_v60 = vld [vmem:[#allocation6 + $0x8a8] sm:$0xff]  ;;  %v928_v36 = vld [vmem:[#allocation6 + $0xf30] sm:$0xff]  ;;  %v2845_v49 = vpop.f32.mrf.mxu1 }
 0x2dd   :  { %1899 = vmatpush.msrb.mxu3 %v863_v52  ;;  %1919 = vmatpush.msra.mxu0 %v991_v53  ;;  %v847_v61 = vld [vmem:[#allocation6 + $0xca8] sm:$0xff]  ;;  %v536_v38 = vld [vmem:[#allocation6 + $0x2f0] sm:$0xff]  ;;  %v1214_v53 = vperm.slane %v2842_v42, 2 }
 0x2de   :  { %1939 = vmatpush.msra.mxu1 %v1119_v54  ;;  %1880 = vmatpush.msrb.mxu2 %v727_v56  ;;  %v975_v62 = vld [vmem:[#allocation6 + $0x10a8] sm:$0xff]  ;;  %v664_v39 = vld [vmem:[#allocation6 + $0x6f0] sm:$0xff] }
 0x2df   :  { %1900 = vmatpush.msrb.mxu3 %v855_v57  ;;  %v1103_v63 = vld [vmem:[#allocation6 + $0x14a8] sm:$0xff]  ;;  %1920 = vmatpush.msra.mxu0 %v983_v58  ;;  %v792_v40 = vld [vmem:[#allocation6 + $0xaf0] sm:$0xff]  ;;  %v1525_v57 = vpop.f32.mrf.mxu0  ;;  %v1485_v58 = vpop.f32.mrf.mxu2 }
 0x2e0   :  { %1940 = vmatpush.msra.mxu1 %v1111_v59  ;;  %v711_v1 = vld [vmem:[#allocation6 + $0x868] sm:$0xff]  ;;  %1881 = vmatpush.msrb.mxu2 %v719_v60  ;;  %v920_v41 = vld [vmem:[#allocation6 + $0xef0] sm:$0xff] }
 0x2e1   :  { %v839_v2 = vld [vmem:[#allocation6 + $0xc68] sm:$0xff]  ;;  %1901 = vmatpush.msrb.mxu3 %v847_v61  ;;  %1921 = vmatpush.msra.mxu0 %v975_v62  ;;  %v528_v45 = vld [vmem:[#allocation6 + $0x2b0] sm:$0xff]  ;;  %v1212_v61 = vperm.slane %v2842_v42, 0  ;;  %v1366_v62 = vadd.f32 %v2824_v11, %v1213_v47 }
 0x2e2   :  { %v967_v3 = vld [vmem:[#allocation6 + $0x1068] sm:$0xff]  ;;  %1941 = vmatpush.msra.mxu1 %v1103_v63  ;;  %1882 = vmatpush.msrb.mxu2 %v711_v1  ;;  %v656_v46 = vld [vmem:[#allocation6 + $0x6b0] sm:$0xff] }
 0x2e3   :  { %v1095_v4 = vld [vmem:[#allocation6 + $0x1468] sm:$0xff]  ;;  %1902 = vmatpush.msrb.mxu3 %v839_v2  ;;  %1922 = vmatpush.msra.mxu0 %v967_v3  ;;  %v784_v48 = vld [vmem:[#allocation6 + $0xab0] sm:$0xff]  ;;  %v1505_v2 = vpop.f32.mrf.mxu3  ;;  %v1246_v11 = vadd.f32 %v2818_v50, %v1212_v61 }
 0x2e4   :  { %v703_v5 = vld [vmem:[#allocation6 + $0x828] sm:$0xff]  ;;  %1942 = vmatpush.msra.mxu1 %v1095_v4  ;;  %v912_v24 = vld [vmem:[#allocation6 + $0xeb0] sm:$0xff] }
 0x2e5   :  { %v831_v6 = vld [vmem:[#allocation6 + $0xc28] sm:$0xff]  ;;  %1883 = vmatpush.msrb.mxu2 %v703_v5  ;;  %v520_v51 = vld [vmem:[#allocation6 + $0x270] sm:$0xff]  ;;  %v1486_v5 = vadd.f32 %v1485_v58, %v1214_v53 }
 0x2e6   :  { %v959_v7 = vld [vmem:[#allocation6 + $0x1028] sm:$0xff]  ;;  %1903 = vmatpush.msrb.mxu3 %v831_v6  ;;  %1884 = vmatmul.f32.vlgmr.msrb.gmra.mxu2 %v2773_v29  ;;  %v648_v52 = vld [vmem:[#allocation6 + $0x670] sm:$0xff] }
 0x2e7   :  { %v1087_v10 = vld [vmem:[#allocation6 + $0x1428] sm:$0xff]  ;;  %1923 = vmatpush.msra.mxu0 %v959_v7  ;;  %1904 = vmatmul.f32.vlgmr.msrb.gmra.mxu3 %v2776_v23  ;;  %v776_v54 = vld [vmem:[#allocation6 + $0xa70] sm:$0xff] }
 0x2e8   :  { %1943 = vmatpush.msra.mxu1 %v1087_v10  ;;  %1924 = vmatmul.f32.vlgmr.msra.gmra.mxu0 %v2783_v43  ;;  %v904_v56 = vld [vmem:[#allocation6 + $0xe70] sm:$0xff] }
 0x2e9   :  { %1944 = vmatmul.f32.vlgmr.msra.gmra.mxu1 %v2786_v44  ;;  %1948 = vmatpush.msra.mxu2 %v568_v14  ;;  %v512_v59 = vld [vmem:[#allocation6 + $0x230] sm:$0xff] }
 0x2ea   :  { %1968 = vmatpush.msra.mxu3 %v696_v15  ;;  %1988 = vmatpush.msrb.mxu0 %v824_v18  ;;  %v640_v60 = vld [vmem:[#allocation6 + $0x630] sm:$0xff]  ;;  %v1386_v15 = vadd.f32 %v2834_v26, %v1366_v62  ;;  %v1565_v26 = vpop.f32.mrf.mxu2 }
 0x2eb   :  { %2008 = vmatpush.msrb.mxu1 %v952_v19  ;;  %1949 = vmatpush.msra.mxu2 %v560_v20  ;;  %v768_v63 = vld [vmem:[#allocation6 + $0xa30] sm:$0xff]  ;;  %v1545_v20 = vpop.f32.mrf.mxu1 }
 0x2ec   :  { %1969 = vmatpush.msra.mxu3 %v688_v21  ;;  %1989 = vmatpush.msrb.mxu0 %v816_v22  ;;  %v896_v1 = vld [vmem:[#allocation6 + $0xe30] sm:$0xff] }
 0x2ed   :  { %2009 = vmatpush.msrb.mxu1 %v944_v25  ;;  %1950 = vmatpush.msra.mxu2 %v552_v30  ;;  %v504_v3 = vld [vmem:[#allocation6 + $0x1f0] sm:$0xff]  ;;  %v1406_v25 = vadd.f32 %v2838_v8, %v1386_v15  ;;  %v1506_v30 = vadd.f32 %v1505_v2, %v1486_v5  ;;  %v1585_v8 = vpop.f32.mrf.mxu3 }
 0x2ee   :  { %1970 = vmatpush.msra.mxu3 %v680_v32  ;;  %1990 = vmatpush.msrb.mxu0 %v808_v33  ;;  %v632_v4 = vld [vmem:[#allocation6 + $0x5f0] sm:$0xff]  ;;  %v1215_v32 = vperm.slane %v2842_v42, 3 }
 0x2ef   :  { %2010 = vmatpush.msrb.mxu1 %v936_v34  ;;  %1951 = vmatpush.msra.mxu2 %v544_v16  ;;  %v760_v6 = vld [vmem:[#allocation6 + $0x9f0] sm:$0xff]  ;;  %v1605_v34 = vpop.f32.mrf.mxu0 }
 0x2f0   :  { %1971 = vmatpush.msra.mxu3 %v672_v35  ;;  %1991 = vmatpush.msrb.mxu0 %v800_v17  ;;  %v888_v7 = vld [vmem:[#allocation6 + $0xdf0] sm:$0xff]  ;;  %v1266_v17 = vadd.f32 %v2820_v55, %v1246_v11 }
 0x2f1   :  { %2011 = vmatpush.msrb.mxu1 %v928_v36  ;;  %1952 = vmatpush.msra.mxu2 %v536_v38  ;;  %v496_v10 = vld [vmem:[#allocation6 + $0x1b0] sm:$0xff] }
 0x2f2   :  { %1972 = vmatpush.msra.mxu3 %v664_v39  ;;  %1992 = vmatpush.msrb.mxu0 %v792_v40  ;;  %v624_v14 = vld [vmem:[#allocation6 + $0x5b0] sm:$0xff] }
 0x2f3   :  { %2012 = vmatpush.msrb.mxu1 %v920_v41  ;;  %1953 = vmatpush.msra.mxu2 %v528_v45  ;;  %v752_v18 = vld [vmem:[#allocation6 + $0x9b0] sm:$0xff]  ;;  %v1426_v41 = vadd.f32 %v2840_v37, %v1406_v25  ;;  %v1526_v45 = vadd.f32 %v1525_v57, %v1506_v30  ;;  %v561_v30 = vld [vmem:[#allocation6 + $0x3b8] sm:$0xff] }
 0x2f4   :  { %1973 = vmatpush.msra.mxu3 %v656_v46  ;;  %1993 = vmatpush.msrb.mxu0 %v784_v48  ;;  %v880_v19 = vld [vmem:[#allocation6 + $0xdb0] sm:$0xff]  ;;  %v1606_v46 = vadd.f32 %v1605_v34, %v1215_v32 }
 0x2f5   :  { %2013 = vmatpush.msrb.mxu1 %v912_v24  ;;  %1954 = vmatpush.msra.mxu2 %v520_v51  ;;  %v488_v21 = vld [vmem:[#allocation6 + $0x170] sm:$0xff]  ;;  %v1286_v51 = vadd.f32 %v2816_v31, %v1266_v17  ;;  %v1446_v57 = vadd.f32 %v2836_v9, %v1426_v41 }
 0x2f6   :  { %1974 = vmatpush.msra.mxu3 %v648_v52  ;;  %1994 = vmatpush.msrb.mxu0 %v776_v54  ;;  %v616_v22 = vld [vmem:[#allocation6 + $0x570] sm:$0xff]  ;;  %v1625_v54 = vpop.f32.mrf.mxu1 }
 0x2f7   :  { %2014 = vmatpush.msrb.mxu1 %v904_v56  ;;  %1955 = vmatpush.msra.mxu2 %v512_v59  ;;  %v744_v33 = vld [vmem:[#allocation6 + $0x970] sm:$0xff]  ;;  %v1626_v58 = vadd.f32 %v1625_v54, %v1606_v46  ;;  %v1546_v59 = vadd.f32 %v1545_v20, %v1526_v45 }
 0x2f8   :  { %1975 = vmatpush.msra.mxu3 %v640_v60  ;;  %1995 = vmatpush.msrb.mxu0 %v768_v63  ;;  %v872_v50 = vld [vmem:[#allocation6 + $0xd70] sm:$0xff] }
 0x2f9   :  { %2015 = vmatpush.msrb.mxu1 %v896_v1  ;;  %1956 = vmatpush.msra.mxu2 %v504_v3  ;;  %v480_v16 = vld [vmem:[#allocation6 + $0x130] sm:$0xff]  ;;  %v1306_v1 = vadd.f32 %v2822_v0, %v1286_v51  ;;  %v1566_v2 = vadd.f32 %v1565_v26, %v1546_v59  ;;  %v529_v51 = vld [vmem:[#allocation6 + $0x2b8] sm:$0xff] }
 0x2fa   :  { %1976 = vmatpush.msra.mxu3 %v632_v4  ;;  %1996 = vmatpush.msrb.mxu0 %v760_v6  ;;  %v608_v35 = vld [vmem:[#allocation6 + $0x530] sm:$0xff]  ;;  %v1466_v6 = vadd.f32 %v2845_v49, %v1446_v57  ;;  %v513_v59 = vld [vmem:[#allocation6 + $0x238] sm:$0xff] }
 0x2fb   :  { %2016 = vmatpush.msrb.mxu1 %v888_v7  ;;  %1957 = vmatpush.msra.mxu2 %v496_v10  ;;  %v736_v36 = vld [vmem:[#allocation6 + $0x930] sm:$0xff]  ;;  %v1326_v0 = vadd.f32 %v2826_v12, %v1306_v1  ;;  %v1586_v15 = vadd.f32 %v1585_v8, %v1566_v2  ;;  %v689_v12 = vld [vmem:[#allocation6 + $0x7b8] sm:$0xff] }
 0x2fc   :  { %1977 = vmatpush.msra.mxu3 %v624_v14  ;;  %1997 = vmatpush.msrb.mxu0 %v752_v18  ;;  %v864_v38 = vld [vmem:[#allocation6 + $0xd30] sm:$0xff]  ;;  %v569_v18 = vld [vmem:[#allocation6 + $0x3f8] sm:$0xff]  ;;  %v2196_v25 = vrot.slane %v1466_v6, 6 }
 0x2fd   :  { %2017 = vmatpush.msrb.mxu1 %v880_v19  ;;  %1958 = vmatpush.msra.mxu2 %v488_v21  ;;  %v472_v39 = vld [vmem:[#allocation6 + $0xf0] sm:$0xff]  ;;  %v697_v19 = vld [vmem:[#allocation6 + $0x7f8] sm:$0xff]  ;;  %v1346_v34 = vadd.f32 %v2828_v13, %v1326_v0  ;;  %v2197_v26 = vrot.slane %v1586_v15, 4 }
 0x2fe   :  { %1978 = vmatpush.msra.mxu3 %v616_v22  ;;  %1998 = vmatpush.msrb.mxu0 %v744_v33  ;;  %v600_v40 = vld [vmem:[#allocation6 + $0x4f0] sm:$0xff]  ;;  %v1685_v11 = vpop.f32.mrf.mxu0  ;;  %v545_v8 = vld [vmem:[#allocation6 + $0x338] sm:$0xff] }
 0x2ff   :  { %2018 = vmatpush.msrb.mxu1 %v872_v50  ;;  %1959 = vmatpush.msra.mxu2 %v480_v16  ;;  %v728_v47 = vld [vmem:[#allocation6 + $0x8f0] sm:$0xff]  ;;  %v1705_v49 = vpop.f32.mrf.mxu1  ;;  %v553_v16 = vld [vmem:[#allocation6 + $0x378] sm:$0xff] }
 0x300   :  { %1979 = vmatpush.msra.mxu3 %v608_v35  ;;  %v856_v48 = vld [vmem:[#allocation6 + $0xcf0] sm:$0xff]  ;;  %1999 = vmatpush.msrb.mxu0 %v736_v36  ;;  %v681_v35 = vld [vmem:[#allocation6 + $0x778] sm:$0xff] }
 0x301   :  { %2019 = vmatpush.msrb.mxu1 %v864_v38  ;;  %v464_v55 = vld [vmem:[#allocation6 + $0xb0] sm:$0xff]  ;;  %1960 = vmatpush.msra.mxu2 %v472_v39  ;;  %v673_v39 = vld [vmem:[#allocation6 + $0x738] sm:$0xff] }
 0x302   :  { %v592_v24 = vld [vmem:[#allocation6 + $0x4b0] sm:$0xff]  ;;  %1980 = vmatpush.msra.mxu3 %v600_v40  ;;  %2000 = vmatpush.msrb.mxu0 %v728_v47  ;;  %v1645_v63 = vpop.f32.mrf.mxu2  ;;  %v2202_v40 = vsel %vm412_vm0, %v1346_v34, %v2196_v25  ;;  %v537_v47 = vld [vmem:[#allocation6 + $0x2f8] sm:$0xff] }
 0x303   :  { %v720_v52 = vld [vmem:[#allocation6 + $0x8b0] sm:$0xff]  ;;  %2020 = vmatpush.msrb.mxu1 %v856_v48  ;;  %1961 = vmatpush.msra.mxu2 %v464_v55  ;;  %v1646_v5 = vadd.f32 %v1645_v63, %v1626_v58  ;;  %v1665_v9 = vpop.f32.mrf.mxu3  ;;  %v665_v48 = vld [vmem:[#allocation6 + $0x6f8] sm:$0xff] }
 0x304   :  { %v848_v53 = vld [vmem:[#allocation6 + $0xcb0] sm:$0xff]  ;;  %1981 = vmatpush.msra.mxu3 %v592_v24  ;;  %2001 = vmatpush.msrb.mxu0 %v720_v52  ;;  %v657_v52 = vld [vmem:[#allocation6 + $0x6b8] sm:$0xff] }
 0x305   :  { %v456_v37 = vld [vmem:[#allocation6 + $0x70] sm:$0xff]  ;;  %2021 = vmatpush.msrb.mxu1 %v848_v53  ;;  %v1666_v7 = vadd.f32 %v1665_v9, %v1646_v5  ;;  %v633_v63 = vld [vmem:[#allocation6 + $0x5f8] sm:$0xff] }
 0x306   :  { %v584_v56 = vld [vmem:[#allocation6 + $0x470] sm:$0xff]  ;;  %1962 = vmatpush.msra.mxu2 %v456_v37  ;;  %v521_v37 = vld [vmem:[#allocation6 + $0x278] sm:$0xff] }
 0x307   :  { %v712_v60 = vld [vmem:[#allocation6 + $0x870] sm:$0xff]  ;;  %1982 = vmatpush.msra.mxu3 %v584_v56  ;;  %v1686_v20 = vadd.f32 %v1685_v11, %v1666_v7  ;;  %v649_v56 = vld [vmem:[#allocation6 + $0x678] sm:$0xff] }
 0x308   :  { %v840_v61 = vld [vmem:[#allocation6 + $0xc70] sm:$0xff]  ;;  %2002 = vmatpush.msrb.mxu0 %v712_v60  ;;  %v641_v60 = vld [vmem:[#allocation6 + $0x638] sm:$0xff] }
 0x309   :  { %v448_v31 = vld [vmem:[#allocation6 + $0x30] sm:$0xff]  ;;  %2022 = vmatpush.msrb.mxu1 %v840_v61  ;;  %v1706_v32 = vadd.f32 %v1705_v49, %v1686_v20  ;;  %v489_v6 = vld [vmem:[#allocation6 + $0x178] sm:$0xff] }
 0x30a   :  { %v576_v62 = vld [vmem:[#allocation6 + $0x430] sm:$0xff]  ;;  %1963 = vmatpush.msra.mxu2 %v448_v31  ;;  %v617_v7 = vld [vmem:[#allocation6 + $0x578] sm:$0xff] }
 0x30b   :  { %v704_v3 = vld [vmem:[#allocation6 + $0x830] sm:$0xff]  ;;  %1983 = vmatpush.msra.mxu3 %v576_v62  ;;  %1964 = vmatmul.f32.vlgmr.msra.gmra.mxu2 %v2767_v27  ;;  %v2198_v17 = vrot.slane %v1706_v32, 2  ;;  %v505_v62 = vld [vmem:[#allocation6 + $0x1f8] sm:$0xff] }
 0x30c   :  { %v832_v4 = vld [vmem:[#allocation6 + $0xc30] sm:$0xff]  ;;  %2003 = vmatpush.msrb.mxu0 %v704_v3  ;;  %1984 = vmatmul.f32.vlgmr.msra.gmra.mxu3 %v2770_v28  ;;  %v497_v3 = vld [vmem:[#allocation6 + $0x1b8] sm:$0xff] }
 0x30d   :  { %2023 = vmatpush.msrb.mxu1 %v832_v4  ;;  %v1080_v10 = vld [vmem:[#allocation6 + $0x13f0] sm:$0xff]  ;;  %2004 = vmatmul.f32.vlgmr.msrb.gmra.mxu0 %v2773_v29  ;;  %v2204_v41 = vsel %vm2203_vm4, %v2197_v26, %v2198_v17  ;;  %v625_v4 = vld [vmem:[#allocation6 + $0x5b8] sm:$0xff] }
 0x30e   :  { %v1208_v14 = vld [vmem:[#allocation6 + $0x17f0] sm:$0xff]  ;;  %2024 = vmatmul.f32.vlgmr.msrb.gmra.mxu1 %v2776_v23  ;;  %2028 = vmatpush.msrb.mxu2 %v1080_v10  ;;  %v2206_v46 = vsel %vm2205_vm5, %v2202_v40, %v2204_v41  ;;  %v481_v11 = vld [vmem:[#allocation6 + $0x138] sm:$0xff] }
 0x30f   :  { %v1072_v21 = vld [vmem:[#allocation6 + $0x13b0] sm:$0xff]  ;;  %2048 = vmatpush.msrb.mxu3 %v1208_v14  ;;  %2068 = vmatpush.msra.mxu0 %v569_v18  ;;  %2212 = vst [vmem:[#allocation9] sm:$0xff] %v2206_v46  ;;  %v609_v0 = vld [vmem:[#allocation6 + $0x538] sm:$0xff] }
 0x310   :  { %v1200_v22 = vld [vmem:[#allocation6 + $0x17b0] sm:$0xff]  ;;  %2088 = vmatpush.msra.mxu1 %v697_v19  ;;  %2029 = vmatpush.msrb.mxu2 %v1072_v21  ;;  %v473_v19 = vld [vmem:[#allocation6 + $0xf8] sm:$0xff] }
 0x311   :  { %v1064_v33 = vld [vmem:[#allocation6 + $0x1370] sm:$0xff]  ;;  %2049 = vmatpush.msrb.mxu3 %v1200_v22  ;;  %2069 = vmatpush.msra.mxu0 %v561_v30  ;;  %v601_v20 = vld [vmem:[#allocation6 + $0x4f8] sm:$0xff] }
 0x312   :  { %v1192_v50 = vld [vmem:[#allocation6 + $0x1770] sm:$0xff]  ;;  %2089 = vmatpush.msra.mxu1 %v689_v12  ;;  %2030 = vmatpush.msrb.mxu2 %v1064_v33  ;;  %v465_v22 = vld [vmem:[#allocation6 + $0xb8] sm:$0xff] }
 0x313   :  { %v1056_v36 = vld [vmem:[#allocation6 + $0x1330] sm:$0xff]  ;;  %2050 = vmatpush.msrb.mxu3 %v1192_v50  ;;  %2070 = vmatpush.msra.mxu0 %v553_v16  ;;  %v593_v25 = vld [vmem:[#allocation6 + $0x4b8] sm:$0xff] }
 0x314   :  { %v1184_v38 = vld [vmem:[#allocation6 + $0x1730] sm:$0xff]  ;;  %2090 = vmatpush.msra.mxu1 %v681_v35  ;;  %2031 = vmatpush.msrb.mxu2 %v1056_v36  ;;  %v457_v32 = vld [vmem:[#allocation6 + $0x78] sm:$0xff] }
 0x315   :  { %v1048_v13 = vld [vmem:[#allocation6 + $0x12f0] sm:$0xff]  ;;  %2051 = vmatpush.msrb.mxu3 %v1184_v38  ;;  %2071 = vmatpush.msra.mxu0 %v545_v8  ;;  %v585_v33 = vld [vmem:[#allocation6 + $0x478] sm:$0xff] }
 0x316   :  { %v1176_v45 = vld [vmem:[#allocation6 + $0x16f0] sm:$0xff]  ;;  %2091 = vmatpush.msra.mxu1 %v673_v39  ;;  %2032 = vmatpush.msrb.mxu2 %v1048_v13  ;;  %v449_v26 = vld [vmem:[#allocation6 + $0x38] sm:$0xff] }
 0x317   :  { %v1040_v55 = vld [vmem:[#allocation6 + $0x12b0] sm:$0xff]  ;;  %2052 = vmatpush.msrb.mxu3 %v1176_v45  ;;  %2072 = vmatpush.msra.mxu0 %v537_v47  ;;  %v577_v16 = vld [vmem:[#allocation6 + $0x438] sm:$0xff] }
 0x318   :  { %v1168_v24 = vld [vmem:[#allocation6 + $0x16b0] sm:$0xff]  ;;  %2092 = vmatpush.msra.mxu1 %v665_v48  ;;  %2033 = vmatpush.msrb.mxu2 %v1040_v55  ;;  %v825_v35 = vld [vmem:[#allocation6 + $0xbf8] sm:$0xff] }
 0x319   :  { %v1032_v53 = vld [vmem:[#allocation6 + $0x1270] sm:$0xff]  ;;  %2053 = vmatpush.msrb.mxu3 %v1168_v24  ;;  %2073 = vmatpush.msra.mxu0 %v529_v51  ;;  %v953_v17 = vld [vmem:[#allocation6 + $0xff8] sm:$0xff] }
 0x31a   :  { %v1160_v54 = vld [vmem:[#allocation6 + $0x1670] sm:$0xff]  ;;  %2093 = vmatpush.msra.mxu1 %v657_v52  ;;  %2034 = vmatpush.msrb.mxu2 %v1032_v53  ;;  %v1081_v36 = vld [vmem:[#allocation6 + $0x13f8] sm:$0xff] }
 0x31b   :  { %v1024_v57 = vld [vmem:[#allocation6 + $0x1230] sm:$0xff]  ;;  %2054 = vmatpush.msrb.mxu3 %v1160_v54  ;;  %2074 = vmatpush.msra.mxu0 %v521_v37  ;;  %v1209_v38 = vld [vmem:[#allocation6 + $0x17f8] sm:$0xff] }
 0x31c   :  { %v1152_v58 = vld [vmem:[#allocation6 + $0x1630] sm:$0xff]  ;;  %2094 = vmatpush.msra.mxu1 %v649_v56  ;;  %2035 = vmatpush.msrb.mxu2 %v1024_v57  ;;  %v817_v8 = vld [vmem:[#allocation6 + $0xbb8] sm:$0xff] }
 0x31d   :  { %v1016_v61 = vld [vmem:[#allocation6 + $0x11f0] sm:$0xff]  ;;  %2055 = vmatpush.msrb.mxu3 %v1152_v58  ;;  %2075 = vmatpush.msra.mxu0 %v513_v59  ;;  %v945_v39 = vld [vmem:[#allocation6 + $0xfb8] sm:$0xff] }
 0x31e   :  { %v1144_v31 = vld [vmem:[#allocation6 + $0x15f0] sm:$0xff]  ;;  %2095 = vmatpush.msra.mxu1 %v641_v60  ;;  %2036 = vmatpush.msrb.mxu2 %v1016_v61  ;;  %v1073_v40 = vld [vmem:[#allocation6 + $0x13b8] sm:$0xff] }
 0x31f   :  { %v1008_v1 = vld [vmem:[#allocation6 + $0x11b0] sm:$0xff]  ;;  %2056 = vmatpush.msrb.mxu3 %v1144_v31  ;;  %2076 = vmatpush.msra.mxu0 %v505_v62  ;;  %v1201_v41 = vld [vmem:[#allocation6 + $0x17b8] sm:$0xff] }
 0x320   :  { %v1136_v2 = vld [vmem:[#allocation6 + $0x15b0] sm:$0xff]  ;;  %2096 = vmatpush.msra.mxu1 %v633_v63  ;;  %2037 = vmatpush.msrb.mxu2 %v1008_v1  ;;  %v809_v13 = vld [vmem:[#allocation6 + $0xb78] sm:$0xff] }
 0x321   :  { %v1000_v5 = vld [vmem:[#allocation6 + $0x1170] sm:$0xff]  ;;  %2057 = vmatpush.msrb.mxu3 %v1136_v2  ;;  %2077 = vmatpush.msra.mxu0 %v497_v3  ;;  %v937_v45 = vld [vmem:[#allocation6 + $0xf78] sm:$0xff] }
 0x322   :  { %v1128_v9 = vld [vmem:[#allocation6 + $0x1570] sm:$0xff]  ;;  %2097 = vmatpush.msra.mxu1 %v625_v4  ;;  %2038 = vmatpush.msrb.mxu2 %v1000_v5  ;;  %v1065_v46 = vld [vmem:[#allocation6 + $0x1378] sm:$0xff] }
 0x323   :  { %v992_v10 = vld [vmem:[#allocation6 + $0x1130] sm:$0xff]  ;;  %2058 = vmatpush.msrb.mxu3 %v1128_v9  ;;  %2078 = vmatpush.msra.mxu0 %v489_v6  ;;  %v1193_v47 = vld [vmem:[#allocation6 + $0x1778] sm:$0xff] }
 0x324   :  { %v1120_v14 = vld [vmem:[#allocation6 + $0x1530] sm:$0xff]  ;;  %2098 = vmatpush.msra.mxu1 %v617_v7  ;;  %2039 = vmatpush.msrb.mxu2 %v992_v10  ;;  %v801_v48 = vld [vmem:[#allocation6 + $0xb38] sm:$0xff] }
 0x325   :  { %v984_v15 = vld [vmem:[#allocation6 + $0x10f0] sm:$0xff]  ;;  %2059 = vmatpush.msrb.mxu3 %v1120_v14  ;;  %2079 = vmatpush.msra.mxu0 %v481_v11  ;;  %v1185_v55 = vld [vmem:[#allocation6 + $0x1738] sm:$0xff] }
 0x326   :  { %v1112_v18 = vld [vmem:[#allocation6 + $0x14f0] sm:$0xff]  ;;  %2099 = vmatpush.msra.mxu1 %v609_v0  ;;  %2040 = vmatpush.msrb.mxu2 %v984_v15  ;;  %v793_v24 = vld [vmem:[#allocation6 + $0xaf8] sm:$0xff] }
 0x327   :  { %v976_v49 = vld [vmem:[#allocation6 + $0x10b0] sm:$0xff]  ;;  %2060 = vmatpush.msrb.mxu3 %v1112_v18  ;;  %2080 = vmatpush.msra.mxu0 %v473_v19  ;;  %v921_v51 = vld [vmem:[#allocation6 + $0xef8] sm:$0xff] }
 0x328   :  { %v1104_v21 = vld [vmem:[#allocation6 + $0x14b0] sm:$0xff]  ;;  %2100 = vmatpush.msra.mxu1 %v601_v20  ;;  %2041 = vmatpush.msrb.mxu2 %v976_v49  ;;  %v1049_v52 = vld [vmem:[#allocation6 + $0x12f8] sm:$0xff] }
 0x329   :  { %v968_v30 = vld [vmem:[#allocation6 + $0x1070] sm:$0xff]  ;;  %2061 = vmatpush.msrb.mxu3 %v1104_v21  ;;  %2081 = vmatpush.msra.mxu0 %v465_v22  ;;  %v1177_v53 = vld [vmem:[#allocation6 + $0x16f8] sm:$0xff] }
 0x32a   :  { %v1096_v12 = vld [vmem:[#allocation6 + $0x1470] sm:$0xff]  ;;  %2101 = vmatpush.msra.mxu1 %v593_v25  ;;  %2042 = vmatpush.msrb.mxu2 %v968_v30  ;;  %v785_v54 = vld [vmem:[#allocation6 + $0xab8] sm:$0xff] }
 0x32b   :  { %v960_v50 = vld [vmem:[#allocation6 + $0x1030] sm:$0xff]  ;;  %2062 = vmatpush.msrb.mxu3 %v1096_v12  ;;  %2082 = vmatpush.msra.mxu0 %v457_v32  ;;  %v913_v37 = vld [vmem:[#allocation6 + $0xeb8] sm:$0xff] }
 0x32c   :  { %v1088_v34 = vld [vmem:[#allocation6 + $0x1430] sm:$0xff]  ;;  %2102 = vmatpush.msra.mxu1 %v585_v33  ;;  %2043 = vmatpush.msrb.mxu2 %v960_v50  ;;  %v1041_v56 = vld [vmem:[#allocation6 + $0x12b8] sm:$0xff] }
 0x32d   :  { %2063 = vmatpush.msrb.mxu3 %v1088_v34  ;;  %2083 = vmatpush.msra.mxu0 %v449_v26  ;;  %v1169_v57 = vld [vmem:[#allocation6 + $0x16b8] sm:$0xff] }
 0x32e   :  { %2103 = vmatpush.msra.mxu1 %v577_v16  ;;  %2044 = vmatmul.f32.vlgmr.msrb.gmra.mxu2 %v2783_v43  ;;  %v777_v58 = vld [vmem:[#allocation6 + $0xa78] sm:$0xff] }
 0x32f   :  { %2064 = vmatmul.f32.vlgmr.msrb.gmra.mxu3 %v2786_v44  ;;  %2084 = vmatmul.f32.vlgmr.msra.gmra.mxu0 %v2767_v27  ;;  %v929_v27 = vld [vmem:[#allocation6 + $0xf38] sm:$0xff] }
 0x330   :  { %2104 = vmatmul.f32.vlgmr.msra.gmra.mxu1 %v2770_v28  ;;  %2108 = vmatpush.msra.mxu2 %v825_v35  ;;  %v1057_v28 = vld [vmem:[#allocation6 + $0x1338] sm:$0xff] }
 0x331   :  { %2128 = vmatpush.msra.mxu3 %v953_v17  ;;  %2148 = vmatpush.msrb.mxu0 %v1081_v36  ;;  %v905_v59 = vld [vmem:[#allocation6 + $0xe78] sm:$0xff] }
 0x332   :  { %2168 = vmatpush.msrb.mxu1 %v1209_v38  ;;  %2109 = vmatpush.msra.mxu2 %v817_v8  ;;  %v1033_v60 = vld [vmem:[#allocation6 + $0x1278] sm:$0xff] }
 0x333   :  { %2129 = vmatpush.msra.mxu3 %v945_v39  ;;  %2149 = vmatpush.msrb.mxu0 %v1073_v40  ;;  %v1161_v61 = vld [vmem:[#allocation6 + $0x1678] sm:$0xff]  ;;  %v1765_v39 = vpop.f32.mrf.mxu0  ;;  %v1725_v40 = vpop.f32.mrf.mxu2 }
 0x334   :  { %2169 = vmatpush.msrb.mxu1 %v1201_v41  ;;  %2110 = vmatpush.msra.mxu2 %v809_v13  ;;  %v769_v31 = vld [vmem:[#allocation6 + $0xa38] sm:$0xff]  ;;  %v1745_v41 = vpop.f32.mrf.mxu3  ;;  %v1785_v13 = vpop.f32.mrf.mxu1 }
 0x335   :  { %2130 = vmatpush.msra.mxu3 %v937_v45  ;;  %2150 = vmatpush.msrb.mxu0 %v1065_v46  ;;  %v897_v62 = vld [vmem:[#allocation6 + $0xe38] sm:$0xff] }
 0x336   :  { %2170 = vmatpush.msrb.mxu1 %v1193_v47  ;;  %2111 = vmatpush.msra.mxu2 %v801_v48  ;;  %v1025_v63 = vld [vmem:[#allocation6 + $0x1238] sm:$0xff] }
 0x337   :  { %2131 = vmatpush.msra.mxu3 %v929_v27  ;;  %2151 = vmatpush.msrb.mxu0 %v1057_v28  ;;  %v1153_v1 = vld [vmem:[#allocation6 + $0x1638] sm:$0xff] }
 0x338   :  { %2171 = vmatpush.msrb.mxu1 %v1185_v55  ;;  %2112 = vmatpush.msra.mxu2 %v793_v24  ;;  %v761_v2 = vld [vmem:[#allocation6 + $0x9f8] sm:$0xff]  ;;  %v1217_v24 = vperm.slane %v2842_v42, 5 }
 0x339   :  { %2132 = vmatpush.msra.mxu3 %v921_v51  ;;  %2152 = vmatpush.msrb.mxu0 %v1049_v52  ;;  %v889_v3 = vld [vmem:[#allocation6 + $0xdf8] sm:$0xff] }
 0x33a   :  { %2172 = vmatpush.msrb.mxu1 %v1177_v53  ;;  %2113 = vmatpush.msra.mxu2 %v785_v54  ;;  %v1017_v4 = vld [vmem:[#allocation6 + $0x11f8] sm:$0xff]  ;;  %v1216_v53 = vperm.slane %v2842_v42, 4 }
 0x33b   :  { %2133 = vmatpush.msra.mxu3 %v913_v37  ;;  %2153 = vmatpush.msrb.mxu0 %v1041_v56  ;;  %v1145_v5 = vld [vmem:[#allocation6 + $0x15f8] sm:$0xff] }
 0x33c   :  { %2173 = vmatpush.msrb.mxu1 %v1169_v57  ;;  %2114 = vmatpush.msra.mxu2 %v777_v58  ;;  %v753_v9 = vld [vmem:[#allocation6 + $0x9b8] sm:$0xff]  ;;  %v1726_v57 = vadd.f32 %v1725_v40, %v1216_v53 }
 0x33d   :  { %2134 = vmatpush.msra.mxu3 %v905_v59  ;;  %2154 = vmatpush.msrb.mxu0 %v1033_v60  ;;  %v881_v6 = vld [vmem:[#allocation6 + $0xdb8] sm:$0xff]  ;;  %v1219_v60 = vperm.slane %v2842_v42, 7 }
 0x33e   :  { %2174 = vmatpush.msrb.mxu1 %v1161_v61  ;;  %2115 = vmatpush.msra.mxu2 %v769_v31  ;;  %v1009_v7 = vld [vmem:[#allocation6 + $0x11b8] sm:$0xff] }
 0x33f   :  { %2135 = vmatpush.msra.mxu3 %v897_v62  ;;  %2155 = vmatpush.msrb.mxu0 %v1025_v63  ;;  %v1137_v10 = vld [vmem:[#allocation6 + $0x15b8] sm:$0xff]  ;;  %v1746_v63 = vadd.f32 %v1745_v41, %v1726_v57 }
 0x340   :  { %2175 = vmatpush.msrb.mxu1 %v1153_v1  ;;  %2116 = vmatpush.msra.mxu2 %v761_v2  ;;  %v745_v14 = vld [vmem:[#allocation6 + $0x978] sm:$0xff] }
 0x341   :  { %2136 = vmatpush.msra.mxu3 %v889_v3  ;;  %2156 = vmatpush.msrb.mxu0 %v1017_v4  ;;  %v873_v11 = vld [vmem:[#allocation6 + $0xd78] sm:$0xff] }
 0x342   :  { %2176 = vmatpush.msrb.mxu1 %v1145_v5  ;;  %2117 = vmatpush.msra.mxu2 %v753_v9  ;;  %v1001_v0 = vld [vmem:[#allocation6 + $0x1178] sm:$0xff]  ;;  %v1845_v45 = vpop.f32.mrf.mxu0  ;;  %v1766_v5 = vadd.f32 %v1765_v39, %v1746_v63 }
 0x343   :  { %2137 = vmatpush.msra.mxu3 %v881_v6  ;;  %v1129_v15 = vld [vmem:[#allocation6 + $0x1578] sm:$0xff]  ;;  %2157 = vmatpush.msrb.mxu0 %v1009_v7  ;;  %v1865_v48 = vpop.f32.mrf.mxu1  ;;  %v1846_v52 = vadd.f32 %v1845_v45, %v1217_v24 }
 0x344   :  { %2177 = vmatpush.msrb.mxu1 %v1137_v10  ;;  %v737_v18 = vld [vmem:[#allocation6 + $0x938] sm:$0xff]  ;;  %2118 = vmatpush.msra.mxu2 %v745_v14 }
 0x345   :  { %v865_v19 = vld [vmem:[#allocation6 + $0xd38] sm:$0xff]  ;;  %2138 = vmatpush.msra.mxu3 %v873_v11  ;;  %2158 = vmatpush.msrb.mxu0 %v1001_v0  ;;  %v1866_v37 = vadd.f32 %v1865_v48, %v1846_v52 }
 0x346   :  { %v993_v20 = vld [vmem:[#allocation6 + $0x1138] sm:$0xff]  ;;  %2178 = vmatpush.msrb.mxu1 %v1129_v15  ;;  %2119 = vmatpush.msra.mxu2 %v737_v18  ;;  %v1786_v15 = vadd.f32 %v1785_v13, %v1766_v5 }
 0x347   :  { %v1121_v49 = vld [vmem:[#allocation6 + $0x1538] sm:$0xff]  ;;  %2139 = vmatpush.msra.mxu3 %v865_v19  ;;  %2159 = vmatpush.msrb.mxu0 %v993_v20  ;;  %v1805_v46 = vpop.f32.mrf.mxu2 }
 0x348   :  { %v729_v21 = vld [vmem:[#allocation6 + $0x8f8] sm:$0xff]  ;;  %2179 = vmatpush.msrb.mxu1 %v1121_v49  ;;  %v1825_v47 = vpop.f32.mrf.mxu3  ;;  %v1806_v20 = vadd.f32 %v1805_v46, %v1786_v15 }
 0x349   :  { %v857_v22 = vld [vmem:[#allocation6 + $0xcf8] sm:$0xff]  ;;  %2120 = vmatpush.msra.mxu2 %v729_v21 }
 0x34a   :  { %v985_v25 = vld [vmem:[#allocation6 + $0x10f8] sm:$0xff]  ;;  %2140 = vmatpush.msra.mxu3 %v857_v22 }
 0x34b   :  { %v1113_v30 = vld [vmem:[#allocation6 + $0x14f8] sm:$0xff]  ;;  %2160 = vmatpush.msrb.mxu0 %v985_v25 }
 0x34c   :  { %v721_v12 = vld [vmem:[#allocation6 + $0x8b8] sm:$0xff]  ;;  %2180 = vmatpush.msrb.mxu1 %v1113_v30 }
 0x34d   :  { %v849_v32 = vld [vmem:[#allocation6 + $0xcb8] sm:$0xff]  ;;  %2121 = vmatpush.msra.mxu2 %v721_v12  ;;  %v1826_v12 = vadd.f32 %v1825_v47, %v1806_v20 }
 0x34e   :  { %v977_v33 = vld [vmem:[#allocation6 + $0x10b8] sm:$0xff]  ;;  %2141 = vmatpush.msra.mxu3 %v849_v32 }
 0x34f   :  { %v1105_v50 = vld [vmem:[#allocation6 + $0x14b8] sm:$0xff]  ;;  %2161 = vmatpush.msrb.mxu0 %v977_v33 }
 0x350   :  { %v713_v34 = vld [vmem:[#allocation6 + $0x878] sm:$0xff]  ;;  %2181 = vmatpush.msrb.mxu1 %v1105_v50 }
 0x351   :  { %v841_v26 = vld [vmem:[#allocation6 + $0xc78] sm:$0xff]  ;;  %2122 = vmatpush.msra.mxu2 %v713_v34 }
 0x352   :  { %v969_v16 = vld [vmem:[#allocation6 + $0x1078] sm:$0xff]  ;;  %2142 = vmatpush.msra.mxu3 %v841_v26 }
 0x353   :  { %v1097_v35 = vld [vmem:[#allocation6 + $0x1478] sm:$0xff]  ;;  %2162 = vmatpush.msrb.mxu0 %v969_v16 }
 0x354   :  { %v705_v17 = vld [vmem:[#allocation6 + $0x838] sm:$0xff]  ;;  %2182 = vmatpush.msrb.mxu1 %v1097_v35 }
 0x355   :  { %v833_v36 = vld [vmem:[#allocation6 + $0xc38] sm:$0xff]  ;;  %2123 = vmatpush.msra.mxu2 %v705_v17 }
 0x356   :  { %v961_v38 = vld [vmem:[#allocation6 + $0x1038] sm:$0xff]  ;;  %2143 = vmatpush.msra.mxu3 %v833_v36  ;;  %2124 = vmatmul.f32.vlgmr.msra.gmra.mxu2 %v2773_v29 }
 0x357   :  { %v1089_v8 = vld [vmem:[#allocation6 + $0x1438] sm:$0xff]  ;;  %2163 = vmatpush.msrb.mxu0 %v961_v38  ;;  %2144 = vmatmul.f32.vlgmr.msra.gmra.mxu3 %v2776_v23  ;;  %v1218_v23 = vperm.slane %v2842_v42, 6 }
 0x358   :  { %2183 = vmatpush.msrb.mxu1 %v1089_v8  ;;  %2164 = vmatmul.f32.vlgmr.msrb.gmra.mxu0 %v2783_v43 }
 0x359   :  { %2184 = vmatmul.f32.vlgmr.msrb.gmra.mxu1 %v2786_v44 }
 0x365   :  { %v1925_v27 = vpop.f32.mrf.mxu0 }
 0x366   :  { %v1945_v29 = vpop.f32.mrf.mxu1 }
 0x369   :  { %v1885_v28 = vpop.f32.mrf.mxu2 }
 0x36a   :  { %v1905_v55 = vpop.f32.mrf.mxu3  ;;  %v1886_v58 = vadd.f32 %v1885_v28, %v1866_v37 }
 0x36c   :  { %v1906_v1 = vadd.f32 %v1905_v55, %v1886_v58 }
 0x36e   :  { %v1926_v9 = vadd.f32 %v1925_v27, %v1906_v1 }
 0x370   :  { %v1946_v18 = vadd.f32 %v1945_v29, %v1926_v9 }
 0x372   :  { %v2199_v25 = vrot.slane %v1946_v18, 6 }
 0x374   :  { %v2207_v50 = vsel %vm412_vm0, %v1826_v12, %v2199_v25 }
 0x38a   :  { %v2005_v51 = vpop.f32.mrf.mxu0 }
 0x38b   :  { %v2025_v56 = vpop.f32.mrf.mxu1 }
 0x38e   :  { %v1965_v43 = vpop.f32.mrf.mxu2 }
 0x38f   :  { %v1985_v44 = vpop.f32.mrf.mxu3  ;;  %v1966_v54 = vadd.f32 %v1965_v43, %v1218_v23 }
 0x391   :  { %v1986_v59 = vadd.f32 %v1985_v44, %v1966_v54 }
 0x393   :  { %v2006_v2 = vadd.f32 %v2005_v51, %v1986_v59 }
 0x395   :  { %v2026_v7 = vadd.f32 %v2025_v56, %v2006_v2 }
 0x3ac   :  { %v2085_v61 = vpop.f32.mrf.mxu0 }
 0x3ad   :  { %v2086_v3 = vadd.f32 %v2085_v61, %v1219_v60  ;;  %v2105_v4 = vpop.f32.mrf.mxu1 }
 0x3af   :  { %v2106_v6 = vadd.f32 %v2105_v4, %v2086_v3 }
 0x3b1   :  { %v2045_v31 = vpop.f32.mrf.mxu2 }
 0x3b2   :  { %v2065_v62 = vpop.f32.mrf.mxu3  ;;  %v2046_v14 = vadd.f32 %v2045_v31, %v2026_v7 }
 0x3b4   :  { %v2066_v49 = vadd.f32 %v2065_v62, %v2046_v14 }
 0x3b6   :  { %v2200_v32 = vrot.slane %v2066_v49, 4 }
 0x3d5   :  { %v2165_v42 = vpop.f32.mrf.mxu0 }
 0x3d6   :  { %v2185_v22 = vpop.f32.mrf.mxu1 }
 0x3d9   :  { %v2125_v10 = vpop.f32.mrf.mxu2 }
 0x3da   :  { %v2126_v11 = vadd.f32 %v2125_v10, %v2106_v6  ;;  %v2145_v0 = vpop.f32.mrf.mxu3 }
 0x3dc   :  { %v2146_v19 = vadd.f32 %v2145_v0, %v2126_v11 }
 0x3de   :  { %v2166_v21 = vadd.f32 %v2165_v42, %v2146_v19 }
 0x3e0   :  { %v2186_v30 = vadd.f32 %v2185_v22, %v2166_v21 }
 0x3e2   :  { %v2201_v33 = vrot.slane %v2186_v30, 2 }
 0x3e4   :  { %v2208_v34 = vsel %vm2203_vm4, %v2200_v32, %v2201_v33 }
 0x3e5   :  { %v2209_v26 = vsel %vm2205_vm5, %v2207_v50, %v2208_v34 }
 0x3e6   :  { %2213 = vst [vmem:[#allocation9 + $0x8] sm:$0xff] %v2209_v26 }
 0x3e7   :  { %2224 = dma.vmem_to_hbm [thread:$0]  %s2220_s3, 256, %s2222_s2, [#allocation5]  }
 0x3e8   :  { %2351 = dma.done.wait [#allocation5], 256  }
 0x3e9   :  { %2352 = vsyncadd [#allocation5], 4294967040 }
 0x3ea   :  { %2229 = vsyncpa [#allocation4], 1 }
 0x3eb   :  { %2230 = vsyncpa [#allocation7], 1 }
 0x3ec   :  { %2231 = vsyncpa [#allocation5], 1 }

</bundles_post_ra>
